<compile_context>
chip_gen: v7x
topology: tpu7x:2x2x1
jax: 0.10.0
libtpu: 0.0.40
codegen_flags: <defaults>
</compile_context>

<pallas_src>
import math

import jax
import jax.numpy as jnp
import numpy as np
from jax import lax
from jax.experimental import pallas as pl
from jax.experimental.pallas import tpu as pltpu

# ------------------------- config (small test shapes) ------------------------
B = 2            # batch
S = 8            # sequence length
D = 32           # d_model
H = 4            # num_heads
HD = D // H      # head_dim
FFN = 64         # ffn_hidden
V = 128          # vocab size for the test (real 133-entry vocab -> pad to 256 lanes)
N = B * S        # tokens per call
EPS = 1e-5
NEG_INF = -1e9
INV_SQRT_HD = 1.0 / math.sqrt(HD)

# Matmul-operand dtype (accumulation is always f32).  bf16 is the v6e/v7x MXU
# rate choice; set to jnp.float32 for bit-exact f32-PyTorch numerics.  All
# elementwise (softmax / LayerNorm / ReLU / residual) math stays f32 because
# v5e has no bf16 VPU/EUP path.
MM_DTYPE = jnp.bfloat16


# ------------------------------- the kernel ----------------------------------
def transformer_kernel(
        x_ref, y_ref,                                   # (N, D) f32 embeddings
        enc_mask_ref, dec_mask_ref, crs_mask_ref,       # (H*N, H*N) f32
        enc_wq_ref, enc_wkv_ref, enc_bq_ref, enc_bkv_ref, enc_wo_ref,
        enc_w1_ref, enc_w2_ref,
        dec_wq_ref, dec_wkv_ref, dec_bq_ref, dec_bkv_ref, dec_wo_ref,
        crs_wq_ref, crs_wkv_ref, crs_bq_ref, crs_bkv_ref, crs_wo_ref,
        dec_w1_ref, dec_w2_ref,
        wv_ref, bv_ref,                                 # (D, V) bf16, (1, V) f32
        dvecs_ref, fvecs_ref,                           # (15, D) f32, (2, FFN) f32
        out_ref):                                       # (N, V) f32 logits
    """Single-invocation Transformer forward (num_layers = 1, eval mode).

    Per-attention weight layout (packed in the wrapper):
      *_wq_ref  : (H, D, HD)    bf16   per-head query projection
      *_wkv_ref : (H, D, 2*HD)  bf16   per-head [Wk | Wv]
      *_bq_ref  : (H, 1, HD)    f32
      *_bkv_ref : (H, 1, 2*HD)  f32
      *_wo_ref  : (H, HD, D)    bf16   per-head output projection
    dvecs_ref rows: [enc_bo, enc_g1, enc_b1, enc_b2ffn, enc_g2, enc_b2,
                     dec_bo, dec_g1, dec_b1, crs_bo, dec_g2, dec_b2,
                     dec_b2ffn, dec_g3, dec_b3]
    fvecs_ref rows: [enc_b1ffn, dec_b1ffn]
    """
    x = x_ref[...]                                      # (N, D) f32
    y = y_ref[...]
    x_mm = x.astype(MM_DTYPE)
    y_mm = y.astype(MM_DTYPE)

    def layer_norm(t, gamma, beta):
        mu = jnp.mean(t, axis=-1, keepdims=True)
        var = jnp.mean(jnp.square(t - mu), axis=-1, keepdims=True)
        return gamma * ((t - mu) * lax.rsqrt(var + EPS)) + beta

    def attention(xq_mm, xkv_mm, big_mask,
                  wq_ref, wkv_ref, bq_ref, bkv_ref, wo_ref, bo_row):
        # Per-head Q/KV projections; heads stacked on the sublane axis.
        q_rows, kv_rows = [], []
        for h in range(H):                              # static, H == 4
            q_rows.append(
                jnp.dot(xq_mm, wq_ref[h], preferred_element_type=jnp.float32)
                + bq_ref[h])                            # (N, HD) f32
            kv_rows.append(
                jnp.dot(xkv_mm, wkv_ref[h], preferred_element_type=jnp.float32)
                + bkv_ref[h])                           # (N, 2*HD) f32
        q_s = jnp.concatenate(q_rows, axis=0)           # (H*N, HD)
        kv_s = jnp.concatenate(kv_rows, axis=0)         # (H*N, 2*HD)
        k_s = kv_s[:, 0:HD]
        v_s = kv_s[:, HD:2 * HD]

        # One scores matmul / one softmax for all heads & batches (block-diag
        # additive mask keeps the per-(head, batch) softmax semantics).
        scores = lax.dot_general(                       # q @ k^T, no transpose
            q_s.astype(MM_DTYPE), k_s.astype(MM_DTYPE),
            dimension_numbers=(((1,), (1,)), ((), ())),
            preferred_element_type=jnp.float32) * INV_SQRT_HD
        scores = scores + big_mask
        m = jnp.max(scores, axis=-1, keepdims=True)
        e = jnp.exp(scores - m)                         # off-block entries -> 0
        p = e * pl.reciprocal(jnp.sum(e, axis=-1, keepdims=True), approx=True)
        values_s = jnp.dot(p.astype(MM_DTYPE), v_s.astype(MM_DTYPE),
                           preferred_element_type=jnp.float32)  # (H*N, HD)

        # Output projection folded into per-head accumulation (no lane concat).
        out = jnp.zeros((N, D), jnp.float32)
        for h in range(H):
            v_h = values_s[h * N:(h + 1) * N, :].astype(MM_DTYPE)
            out = out + jnp.dot(v_h, wo_ref[h],
                                preferred_element_type=jnp.float32)
        return out + bo_row                             # dropout = identity

    def feed_forward(t, w1_ref, b1_row, w2_ref, b2_row):
        h1 = jnp.dot(t.astype(MM_DTYPE), w1_ref[...],
                     preferred_element_type=jnp.float32) + b1_row
        h1 = jnp.maximum(h1, 0.0)                       # ReLU; dropout = id
        return jnp.dot(h1.astype(MM_DTYPE), w2_ref[...],
                       preferred_element_type=jnp.float32) + b2_row

    # ----------------------------- Encoder layer -----------------------------
    attn_x = attention(x_mm, x_mm, enc_mask_ref[...],
                       enc_wq_ref, enc_wkv_ref, enc_bq_ref, enc_bkv_ref,
                       enc_wo_ref, dvecs_ref[0:1, :])
    x1 = layer_norm(attn_x + x, dvecs_ref[1:2, :], dvecs_ref[2:3, :])
    ffn_x = feed_forward(x1, enc_w1_ref, fvecs_ref[0:1, :],
                         enc_w2_ref, dvecs_ref[3:4, :])
    x_enc = layer_norm(ffn_x + x1, dvecs_ref[4:5, :], dvecs_ref[5:6, :])  # (N, D)
    x_enc_mm = x_enc.astype(MM_DTYPE)

    # ----------------------------- Decoder layer -----------------------------
    attn_y = attention(y_mm, y_mm, dec_mask_ref[...],
                       dec_wq_ref, dec_wkv_ref, dec_bq_ref, dec_bkv_ref,
                       dec_wo_ref, dvecs_ref[6:7, :])
    y1 = layer_norm(attn_y + y, dvecs_ref[7:8, :], dvecs_ref[8:9, :])
    y1_mm = y1.astype(MM_DTYPE)

    # cross attention: queries from y1, keys/values from encoder output
    cross = attention(y1_mm, x_enc_mm, crs_mask_ref[...],
                      crs_wq_ref, crs_wkv_ref, crs_bq_ref, crs_bkv_ref,
                      crs_wo_ref, dvecs_ref[9:10, :])
    # NOTE: the reference module applies norm2 WITHOUT the residual here.
    y2 = layer_norm(cross, dvecs_ref[10:11, :], dvecs_ref[11:12, :])
    ffn_y = feed_forward(y2, dec_w1_ref, fvecs_ref[1:2, :],
                         dec_w2_ref, dvecs_ref[12:13, :])
    y3 = layer_norm(ffn_y + y1, dvecs_ref[13:14, :], dvecs_ref[14:15, :])

    # -------------------- final vocab projection (lane-dense) ----------------
    logits = jnp.dot(y3.astype(MM_DTYPE), wv_ref[...],
                     preferred_element_type=jnp.float32) + bv_ref[...]
    out_ref[...] = logits.astype(out_ref.dtype)         # (N, V) = (16, 128)


# ------------------------------- wrapper --------------------------------------
def pack_params(p):
    """One-time repack of the (pre-transposed, PyTorch-layout) f32 weights into
    the kernel layout: per-head Q / KV / Wo blocks, bf16 matmul weights, and
    all width-D 1-D params consolidated into a single (15, D) f32 array."""
    def split_qkv(wqkv_t, bqkv):
        wh = wqkv_t.reshape(D, H, 3 * HD).transpose(1, 0, 2)       # (H, D, 3*HD)
        bh = bqkv.reshape(H, 1, 3 * HD)
        return (wh[..., :HD].astype(MM_DTYPE),                      # (H, D, HD)
                wh[..., HD:].astype(MM_DTYPE),                       # (H, D, 2*HD)
                bh[..., :HD].astype(jnp.float32),
                bh[..., HD:].astype(jnp.float32))

    enc_wq, enc_wkv, enc_bq, enc_bkv = split_qkv(p["enc_wqkv_t"], p["enc_bqkv"])
    dec_wq, dec_wkv, dec_bq, dec_bkv = split_qkv(p["dec_wqkv_t"], p["dec_bqkv"])

    crs_wq = p["crs_wq_t"].reshape(D, H, HD).transpose(1, 0, 2).astype(MM_DTYPE)
    crs_bq = p["crs_bq"].reshape(H, 1, HD).astype(jnp.float32)
    crs_wkv = p["crs_wkv_t"].reshape(D, H, 2 * HD).transpose(1, 0, 2).astype(MM_DTYPE)
    crs_bkv = p["crs_bkv"].reshape(H, 1, 2 * HD).astype(jnp.float32)

    dvecs = jnp.stack([
        p["enc_bo"], p["enc_gamma1"], p["enc_beta1"], p["enc_b2"],
        p["enc_gamma2"], p["enc_beta2"],
        p["dec_bo"], p["dec_gamma1"], p["dec_beta1"],
        p["crs_bo"], p["dec_gamma2"], p["dec_beta2"],
        p["dec_b2"], p["dec_gamma3"], p["dec_beta3"]], axis=0).astype(jnp.float32)
    fvecs = jnp.stack([p["enc_b1"], p["dec_b1"]], axis=0).astype(jnp.float32)

    return dict(
        enc_wq=enc_wq, enc_wkv=enc_wkv, enc_bq=enc_bq, enc_bkv=enc_bkv,
        enc_wo=p["enc_wo_t"].reshape(H, HD, D).astype(MM_DTYPE),
        enc_w1=p["enc_w1_t"].astype(MM_DTYPE), enc_w2=p["enc_w2_t"].astype(MM_DTYPE),
        dec_wq=dec_wq, dec_wkv=dec_wkv, dec_bq=dec_bq, dec_bkv=dec_bkv,
        dec_wo=p["dec_wo_t"].reshape(H, HD, D).astype(MM_DTYPE),
        crs_wq=crs_wq, crs_wkv=crs_wkv, crs_bq=crs_bq, crs_bkv=crs_bkv,
        crs_wo=p["crs_wo_t"].reshape(H, HD, D).astype(MM_DTYPE),
        dec_w1=p["dec_w1_t"].astype(MM_DTYPE), dec_w2=p["dec_w2_t"].astype(MM_DTYPE),
        wv=p["wv_t"].astype(MM_DTYPE), bv=p["bv"].reshape(1, V).astype(jnp.float32),
        dvecs=dvecs, fvecs=fvecs,
    )


def _block_diag_mask(user_mask):
    """Block-diagonal additive mask over the H*B (head, batch) blocks: the user
    (S, S) mask on the diagonal blocks, -1e9 elsewhere, so ONE softmax over the
    head/batch-stacked scores reproduces the per-(batch, head) softmax."""
    block_eye = jnp.kron(jnp.eye(H * B, dtype=jnp.float32),
                         jnp.ones((S, S), jnp.float32))
    tiled = jnp.tile(user_mask.astype(jnp.float32), (H * B, H * B))
    return jnp.where(block_eye > 0.0, tiled, jnp.float32(NEG_INF))


@jax.jit
def transformer_forward(x_emb, y_emb, enc_mask, dec_mask, crs_mask, packed):
    """x_emb, y_emb: (B, S, D) f32 (post embedding + positional encoding);
    masks: (S, S) additive attention masks; packed: pack_params() output."""
    big_enc = _block_diag_mask(enc_mask)
    big_dec = _block_diag_mask(dec_mask)
    big_crs = _block_diag_mask(crs_mask)

    vmem = pltpu.MemorySpace.VMEM
    logits = pl.pallas_call(
        transformer_kernel,
        out_shape=jax.ShapeDtypeStruct((N, V), jnp.float32),   # (16, 128)
        in_specs=[pl.BlockSpec(memory_space=vmem)] * 28,
        out_specs=pl.BlockSpec(memory_space=vmem),
        # Collapsed grid: the whole problem is one invocation — no per-step
        # pipeline/DMA setup, and the encoder output stays in VMEM.
    )(
        x_emb.reshape(N, D), y_emb.reshape(N, D),
        big_enc, big_dec, big_crs,
        packed["enc_wq"], packed["enc_wkv"], packed["enc_bq"], packed["enc_bkv"],
        packed["enc_wo"], packed["enc_w1"], packed["enc_w2"],
        packed["dec_wq"], packed["dec_wkv"], packed["dec_bq"], packed["dec_bkv"],
        packed["dec_wo"],
        packed["crs_wq"], packed["crs_wkv"], packed["crs_bq"], packed["crs_bkv"],
        packed["crs_wo"],
        packed["dec_w1"], packed["dec_w2"],
        packed["wv"], packed["bv"],
        packed["dvecs"], packed["fvecs"],
    )
    return logits.reshape(B, S, V)


# --------------------------- pure-JAX reference --------------------------------
def transformer_ref(x_emb, y_emb, enc_mask, dec_mask, crs_mask, p):
    """Mirrors the PyTorch Transformer forward (num_layers=1, eval mode).
    Matmul operands are cast to MM_DTYPE exactly as in the kernel (f32
    accumulation); all other math is f32."""
    def mm(a, b):
        return jnp.dot(a.astype(MM_DTYPE), b.astype(MM_DTYPE),
                       preferred_element_type=jnp.float32)

    def layer_norm(t, g, b):
        mu = jnp.mean(t, axis=-1, keepdims=True)
        var = jnp.mean((t - mu) ** 2, axis=-1, keepdims=True)
        return g * ((t - mu) / jnp.sqrt(var + EPS)) + b

    def softmax_attn(q, k, v, mask):
        att = jnp.einsum("bhqd,bhkd->bhqk", q.astype(MM_DTYPE), k.astype(MM_DTYPE),
                         preferred_element_type=jnp.float32) / math.sqrt(HD)
        att = jax.nn.softmax(att + mask, axis=-1)
        vals = jnp.einsum("bhqk,bhkd->bhqd", att.astype(MM_DTYPE), v.astype(MM_DTYPE),
                          preferred_element_type=jnp.float32)
        return vals.transpose(0, 2, 1, 3).reshape(B, S, D)

    def mha(x, mask, wqkv_t, bqkv, wo_t, bo):
        qkv = mm(x, wqkv_t) + bqkv                                   # (B, S, 3D)
        qkv = qkv.reshape(B, S, H, 3 * HD).transpose(0, 2, 1, 3)
        q, k, v = jnp.split(qkv, 3, axis=-1)
        return mm(softmax_attn(q, k, v, mask), wo_t) + bo

    def cross_mha(x, y, mask, wkv_t, bkv, wq_t, bq, wo_t, bo):
        kv = mm(x, wkv_t) + bkv                                      # (B, S, 2D)
        q = mm(y, wq_t) + bq                                         # (B, S, D)
        kv = kv.reshape(B, S, H, 2 * HD).transpose(0, 2, 1, 3)
        q = q.reshape(B, S, H, HD).transpose(0, 2, 1, 3)
        k, v = jnp.split(kv, 2, axis=-1)
        return mm(softmax_attn(q, k, v, mask), wo_t) + bo

    def ffn(t, w1_t, b1, w2_t, b2):
        h1 = jnp.maximum(mm(t, w1_t) + b1, 0.0)
        return mm(h1, w2_t) + b2

    # --- EncoderLayer (dropout = identity) ---
    ax = mha(x_emb, enc_mask, p["enc_wqkv_t"], p["enc_bqkv"], p["enc_wo_t"], p["enc_bo"])
    x1 = layer_norm(ax + x_emb, p["enc_gamma1"], p["enc_beta1"])
    fx = ffn(x1, p["enc_w1_t"], p["enc_b1"], p["enc_w2_t"], p["enc_b2"])
    x_enc = layer_norm(fx + x1, p["enc_gamma2"], p["enc_beta2"])

    # --- DecoderLayer (dropout = identity; norm2 has NO residual per spec) ---
    ay = mha(y_emb, dec_mask, p["dec_wqkv_t"], p["dec_bqkv"], p["dec_wo_t"], p["dec_bo"])
    y1 = layer_norm(ay + y_emb, p["dec_gamma1"], p["dec_beta1"])
    cy = cross_mha(x_enc, y1, crs_mask, p["crs_wkv_t"], p["crs_bkv"],
                   p["crs_wq_t"], p["crs_bq"], p["crs_wo_t"], p["crs_bo"])
    y2 = layer_norm(cy, p["dec_gamma2"], p["dec_beta2"])
    fy = ffn(y2, p["dec_w1_t"], p["dec_b1"], p["dec_w2_t"], p["dec_b2"])
    y3 = layer_norm(fy + y1, p["dec_gamma3"], p["dec_beta3"])

    # --- final vocab projection ---
    return mm(y3, p["wv_t"]) + p["bv"]


# ------------------------------- params init -----------------------------------
def init_params(key):
    ks = jax.random.split(key, 12)

    def linear(k, fan_in, fan_out):
        bound = 1.0 / math.sqrt(fan_in)
        kw, kb = jax.random.split(k)
        # PyTorch Linear weight is (out, in); pre-transposed here to (in, out).
        w_t = jax.random.uniform(kw, (fan_in, fan_out), jnp.float32, -bound, bound)
        b = jax.random.uniform(kb, (fan_out,), jnp.float32, -bound, bound)
        return w_t, b

    enc_wqkv_t, enc_bqkv = linear(ks[0], D, 3 * D)
    enc_wo_t, enc_bo = linear(ks[1], D, D)
    enc_w1_t, enc_b1 = linear(ks[2], D, FFN)
    enc_w2_t, enc_b2 = linear(ks[3], FFN, D)
    dec_wqkv_t, dec_bqkv = linear(ks[4], D, 3 * D)
    dec_wo_t, dec_bo = linear(ks[5], D, D)
    crs_wkv_t, crs_bkv = linear(ks[6], D, 2 * D)
    crs_wq_t, crs_bq = linear(ks[7], D, D)
    crs_wo_t, crs_bo = linear(ks[8], D, D)
    dec_w1_t, dec_b1 = linear(ks[9], D, FFN)
    dec_w2_t, dec_b2 = linear(ks[10], FFN, D)
    wv_t, bv = linear(ks[11], D, V)

    ones = jnp.ones((D,), jnp.float32)
    zeros = jnp.zeros((D,), jnp.float32)
    return dict(
        enc_wqkv_t=enc_wqkv_t, enc_bqkv=enc_bqkv, enc_wo_t=enc_wo_t, enc_bo=enc_bo,
        enc_gamma1=ones, enc_beta1=zeros,
        enc_w1_t=enc_w1_t, enc_b1=enc_b1, enc_w2_t=enc_w2_t, enc_b2=enc_b2,
        enc_gamma2=ones, enc_beta2=zeros,
        dec_wqkv_t=dec_wqkv_t, dec_bqkv=dec_bqkv, dec_wo_t=dec_wo_t, dec_bo=dec_bo,
        dec_gamma1=ones, dec_beta1=zeros,
        crs_wkv_t=crs_wkv_t, crs_bkv=crs_bkv, crs_wq_t=crs_wq_t, crs_bq=crs_bq,
        crs_wo_t=crs_wo_t, crs_bo=crs_bo,
        dec_gamma2=ones, dec_beta2=zeros,
        dec_w1_t=dec_w1_t, dec_b1=dec_b1, dec_w2_t=dec_w2_t, dec_b2=dec_b2,
        dec_gamma3=ones, dec_beta3=zeros,
        wv_t=wv_t, bv=bv,
    )


# ----------------------------------- main ---------------------------------------
if __name__ == "__main__":
    key = jax.random.PRNGKey(0)
    kx, ky, km1, km3, kp = jax.random.split(key, 5)

    # TODO(synk): tokenization / embedding lookup / positional encoding are
    # host/XLA-side; random normals stand in for the SentenceEmbedding output.
    x_emb = jax.random.normal(kx, (B, S, D), jnp.float32)   # encoder input
    y_emb = jax.random.normal(ky, (B, S, D), jnp.float32)   # decoder input
    # additive attention masks, broadcast over batch and heads (as in the module)
    enc_mask = 0.1 * jax.random.normal(km1, (S, S), jnp.float32)
    dec_mask = jnp.where(jnp.tril(jnp.ones((S, S), jnp.bool_)),
                         0.0, NEG_INF).astype(jnp.float32)   # causal
    crs_mask = 0.1 * jax.random.normal(km3, (S, S), jnp.float32)

    params = init_params(kp)
    packed = pack_params(params)

    out = transformer_forward(x_emb, y_emb, enc_mask, dec_mask, crs_mask, packed)
    out = jax.block_until_ready(out)

    ref = transformer_ref(x_emb, y_emb, enc_mask, dec_mask, crs_mask, params)
    # Tolerance budget: approx-reciprocal softmax denominators (EUP fast recip)
    # in three attention blocks; bf16 dot-input rounding is mirrored in the ref.
    np.testing.assert_allclose(np.asarray(out), np.asarray(ref),
                               rtol=2.5e-2, atol=2.5e-2)

    print("KERNEL_OK")
</pallas_src>

<mosaic_0001>
module attributes {stable_mosaic.version = 11 : i64} {
  func.func @transformer_kernel(%arg0: memref<16x32xf32, #tpu.memory_space<vmem>>, %arg1: memref<16x32xf32, #tpu.memory_space<vmem>>, %arg2: memref<64x64xf32, #tpu.memory_space<vmem>>, %arg3: memref<64x64xf32, #tpu.memory_space<vmem>>, %arg4: memref<64x64xf32, #tpu.memory_space<vmem>>, %arg5: memref<4x32x8xbf16, #tpu.memory_space<vmem>>, %arg6: memref<4x32x16xbf16, #tpu.memory_space<vmem>>, %arg7: memref<4x1x8xf32, #tpu.memory_space<vmem>>, %arg8: memref<4x1x16xf32, #tpu.memory_space<vmem>>, %arg9: memref<4x8x32xbf16, #tpu.memory_space<vmem>>, %arg10: memref<32x64xbf16, #tpu.memory_space<vmem>>, %arg11: memref<64x32xbf16, #tpu.memory_space<vmem>>, %arg12: memref<4x32x8xbf16, #tpu.memory_space<vmem>>, %arg13: memref<4x32x16xbf16, #tpu.memory_space<vmem>>, %arg14: memref<4x1x8xf32, #tpu.memory_space<vmem>>, %arg15: memref<4x1x16xf32, #tpu.memory_space<vmem>>, %arg16: memref<4x8x32xbf16, #tpu.memory_space<vmem>>, %arg17: memref<4x32x8xbf16, #tpu.memory_space<vmem>>, %arg18: memref<4x32x16xbf16, #tpu.memory_space<vmem>>, %arg19: memref<4x1x8xf32, #tpu.memory_space<vmem>>, %arg20: memref<4x1x16xf32, #tpu.memory_space<vmem>>, %arg21: memref<4x8x32xbf16, #tpu.memory_space<vmem>>, %arg22: memref<32x64xbf16, #tpu.memory_space<vmem>>, %arg23: memref<64x32xbf16, #tpu.memory_space<vmem>>, %arg24: memref<32x128xbf16, #tpu.memory_space<vmem>>, %arg25: memref<1x128xf32, #tpu.memory_space<vmem>>, %arg26: memref<15x32xf32, #tpu.memory_space<vmem>>, %arg27: memref<2x64xf32, #tpu.memory_space<vmem>>, %arg28: memref<16x128xf32, #tpu.memory_space<vmem>>) attributes {dimension_semantics = [], scalar_prefetch = 0 : i64, scratch_operands = 0 : i64, tpu.core_type = #tpu.core_type<tc>} {
    %c0 = arith.constant 0 : index
    %c0_0 = arith.constant 0 : index
    %0 = vector.load %arg0[%c0, %c0_0] : memref<16x32xf32, #tpu.memory_space<vmem>>, vector<16x32xf32>
    %c0_1 = arith.constant 0 : index
    %c0_2 = arith.constant 0 : index
    %1 = vector.load %arg1[%c0_1, %c0_2] : memref<16x32xf32, #tpu.memory_space<vmem>>, vector<16x32xf32>
    %2 = arith.truncf %0 : vector<16x32xf32> to vector<16x32xbf16>
    %3 = arith.truncf %1 : vector<16x32xf32> to vector<16x32xbf16>
    %c0_3 = arith.constant 0 : index
    %c0_4 = arith.constant 0 : index
    %4 = vector.load %arg2[%c0_3, %c0_4] : memref<64x64xf32, #tpu.memory_space<vmem>>, vector<64x64xf32>
    %c0_5 = arith.constant 0 : index
    %c0_6 = arith.constant 0 : index
    %5 = vector.load %arg26[%c0_5, %c0_6] : memref<15x32xf32, #tpu.memory_space<vmem>>, vector<1x32xf32>
    %c0_7 = arith.constant 0 : index
    %c0_8 = arith.constant 0 : index
    %c0_9 = arith.constant 0 : index
    %6 = vector.load %arg5[%c0_7, %c0_8, %c0_9] : memref<4x32x8xbf16, #tpu.memory_space<vmem>>, vector<1x32x8xbf16>
    %7 = vector.shape_cast %6 : vector<1x32x8xbf16> to vector<32x8xbf16>
    %cst = arith.constant dense<0.000000e+00> : vector<16x8xf32>
    %8 = tpu.matmul %2, %7, %cst {dimension_numbers = #tpu.dot_dimension_numbers<[1], [0], [0], [1], [0, 0, 1, 1], [], []>} : vector<16x32xbf16>, vector<32x8xbf16>, vector<16x8xf32> -> vector<16x8xf32>
    %c0_10 = arith.constant 0 : index
    %c0_11 = arith.constant 0 : index
    %c0_12 = arith.constant 0 : index
    %9 = vector.load %arg7[%c0_10, %c0_11, %c0_12] : memref<4x1x8xf32, #tpu.memory_space<vmem>>, vector<1x1x8xf32>
    %10 = vector.shape_cast %9 : vector<1x1x8xf32> to vector<1x8xf32>
    %11 = vector.broadcast %10 : vector<1x8xf32> to vector<16x8xf32>
    %12 = arith.addf %8, %11 : vector<16x8xf32>
    %c0_13 = arith.constant 0 : index
    %c0_14 = arith.constant 0 : index
    %c0_15 = arith.constant 0 : index
    %13 = vector.load %arg6[%c0_13, %c0_14, %c0_15] : memref<4x32x16xbf16, #tpu.memory_space<vmem>>, vector<1x32x16xbf16>
    %14 = vector.shape_cast %13 : vector<1x32x16xbf16> to vector<32x16xbf16>
    %cst_16 = arith.constant dense<0.000000e+00> : vector<16x16xf32>
    %15 = tpu.matmul %2, %14, %cst_16 {dimension_numbers = #tpu.dot_dimension_numbers<[1], [0], [0], [1], [0, 0, 1, 1], [], []>} : vector<16x32xbf16>, vector<32x16xbf16>, vector<16x16xf32> -> vector<16x16xf32>
    %c0_17 = arith.constant 0 : index
    %c0_18 = arith.constant 0 : index
    %c0_19 = arith.constant 0 : index
    %16 = vector.load %arg8[%c0_17, %c0_18, %c0_19] : memref<4x1x16xf32, #tpu.memory_space<vmem>>, vector<1x1x16xf32>
    %17 = vector.shape_cast %16 : vector<1x1x16xf32> to vector<1x16xf32>
    %18 = vector.broadcast %17 : vector<1x16xf32> to vector<16x16xf32>
    %19 = arith.addf %15, %18 : vector<16x16xf32>
    %c1 = arith.constant 1 : index
    %c0_20 = arith.constant 0 : index
    %c0_21 = arith.constant 0 : index
    %20 = vector.load %arg5[%c1, %c0_20, %c0_21] : memref<4x32x8xbf16, #tpu.memory_space<vmem>>, vector<1x32x8xbf16>
    %21 = vector.shape_cast %20 : vector<1x32x8xbf16> to vector<32x8xbf16>
    %cst_22 = arith.constant dense<0.000000e+00> : vector<16x8xf32>
    %22 = tpu.matmul %2, %21, %cst_22 {dimension_numbers = #tpu.dot_dimension_numbers<[1], [0], [0], [1], [0, 0, 1, 1], [], []>} : vector<16x32xbf16>, vector<32x8xbf16>, vector<16x8xf32> -> vector<16x8xf32>
    %c1_23 = arith.constant 1 : index
    %c0_24 = arith.constant 0 : index
    %c0_25 = arith.constant 0 : index
    %23 = vector.load %arg7[%c1_23, %c0_24, %c0_25] : memref<4x1x8xf32, #tpu.memory_space<vmem>>, vector<1x1x8xf32>
    %24 = vector.shape_cast %23 : vector<1x1x8xf32> to vector<1x8xf32>
    %25 = vector.broadcast %24 : vector<1x8xf32> to vector<16x8xf32>
    %26 = arith.addf %22, %25 : vector<16x8xf32>
    %c1_26 = arith.constant 1 : index
    %c0_27 = arith.constant 0 : index
    %c0_28 = arith.constant 0 : index
    %27 = vector.load %arg6[%c1_26, %c0_27, %c0_28] : memref<4x32x16xbf16, #tpu.memory_space<vmem>>, vector<1x32x16xbf16>
    %28 = vector.shape_cast %27 : vector<1x32x16xbf16> to vector<32x16xbf16>
    %cst_29 = arith.constant dense<0.000000e+00> : vector<16x16xf32>
    %29 = tpu.matmul %2, %28, %cst_29 {dimension_numbers = #tpu.dot_dimension_numbers<[1], [0], [0], [1], [0, 0, 1, 1], [], []>} : vector<16x32xbf16>, vector<32x16xbf16>, vector<16x16xf32> -> vector<16x16xf32>
    %c1_30 = arith.constant 1 : index
    %c0_31 = arith.constant 0 : index
    %c0_32 = arith.constant 0 : index
    %30 = vector.load %arg8[%c1_30, %c0_31, %c0_32] : memref<4x1x16xf32, #tpu.memory_space<vmem>>, vector<1x1x16xf32>
    %31 = vector.shape_cast %30 : vector<1x1x16xf32> to vector<1x16xf32>
    %32 = vector.broadcast %31 : vector<1x16xf32> to vector<16x16xf32>
    %33 = arith.addf %29, %32 : vector<16x16xf32>
    %c2 = arith.constant 2 : index
    %c0_33 = arith.constant 0 : index
    %c0_34 = arith.constant 0 : index
    %34 = vector.load %arg5[%c2, %c0_33, %c0_34] : memref<4x32x8xbf16, #tpu.memory_space<vmem>>, vector<1x32x8xbf16>
    %35 = vector.shape_cast %34 : vector<1x32x8xbf16> to vector<32x8xbf16>
    %cst_35 = arith.constant dense<0.000000e+00> : vector<16x8xf32>
    %36 = tpu.matmul %2, %35, %cst_35 {dimension_numbers = #tpu.dot_dimension_numbers<[1], [0], [0], [1], [0, 0, 1, 1], [], []>} : vector<16x32xbf16>, vector<32x8xbf16>, vector<16x8xf32> -> vector<16x8xf32>
    %c2_36 = arith.constant 2 : index
    %c0_37 = arith.constant 0 : index
    %c0_38 = arith.constant 0 : index
    %37 = vector.load %arg7[%c2_36, %c0_37, %c0_38] : memref<4x1x8xf32, #tpu.memory_space<vmem>>, vector<1x1x8xf32>
    %38 = vector.shape_cast %37 : vector<1x1x8xf32> to vector<1x8xf32>
    %39 = vector.broadcast %38 : vector<1x8xf32> to vector<16x8xf32>
    %40 = arith.addf %36, %39 : vector<16x8xf32>
    %c2_39 = arith.constant 2 : index
    %c0_40 = arith.constant 0 : index
    %c0_41 = arith.constant 0 : index
    %41 = vector.load %arg6[%c2_39, %c0_40, %c0_41] : memref<4x32x16xbf16, #tpu.memory_space<vmem>>, vector<1x32x16xbf16>
    %42 = vector.shape_cast %41 : vector<1x32x16xbf16> to vector<32x16xbf16>
    %cst_42 = arith.constant dense<0.000000e+00> : vector<16x16xf32>
    %43 = tpu.matmul %2, %42, %cst_42 {dimension_numbers = #tpu.dot_dimension_numbers<[1], [0], [0], [1], [0, 0, 1, 1], [], []>} : vector<16x32xbf16>, vector<32x16xbf16>, vector<16x16xf32> -> vector<16x16xf32>
    %c2_43 = arith.constant 2 : index
    %c0_44 = arith.constant 0 : index
    %c0_45 = arith.constant 0 : index
    %44 = vector.load %arg8[%c2_43, %c0_44, %c0_45] : memref<4x1x16xf32, #tpu.memory_space<vmem>>, vector<1x1x16xf32>
    %45 = vector.shape_cast %44 : vector<1x1x16xf32> to vector<1x16xf32>
    %46 = vector.broadcast %45 : vector<1x16xf32> to vector<16x16xf32>
    %47 = arith.addf %43, %46 : vector<16x16xf32>
    %c3 = arith.constant 3 : index
    %c0_46 = arith.constant 0 : index
    %c0_47 = arith.constant 0 : index
    %48 = vector.load %arg5[%c3, %c0_46, %c0_47] : memref<4x32x8xbf16, #tpu.memory_space<vmem>>, vector<1x32x8xbf16>
    %49 = vector.shape_cast %48 : vector<1x32x8xbf16> to vector<32x8xbf16>
    %cst_48 = arith.constant dense<0.000000e+00> : vector<16x8xf32>
    %50 = tpu.matmul %2, %49, %cst_48 {dimension_numbers = #tpu.dot_dimension_numbers<[1], [0], [0], [1], [0, 0, 1, 1], [], []>} : vector<16x32xbf16>, vector<32x8xbf16>, vector<16x8xf32> -> vector<16x8xf32>
    %c3_49 = arith.constant 3 : index
    %c0_50 = arith.constant 0 : index
    %c0_51 = arith.constant 0 : index
    %51 = vector.load %arg7[%c3_49, %c0_50, %c0_51] : memref<4x1x8xf32, #tpu.memory_space<vmem>>, vector<1x1x8xf32>
    %52 = vector.shape_cast %51 : vector<1x1x8xf32> to vector<1x8xf32>
    %53 = vector.broadcast %52 : vector<1x8xf32> to vector<16x8xf32>
    %54 = arith.addf %50, %53 : vector<16x8xf32>
    %c3_52 = arith.constant 3 : index
    %c0_53 = arith.constant 0 : index
    %c0_54 = arith.constant 0 : index
    %55 = vector.load %arg6[%c3_52, %c0_53, %c0_54] : memref<4x32x16xbf16, #tpu.memory_space<vmem>>, vector<1x32x16xbf16>
    %56 = vector.shape_cast %55 : vector<1x32x16xbf16> to vector<32x16xbf16>
    %cst_55 = arith.constant dense<0.000000e+00> : vector<16x16xf32>
    %57 = tpu.matmul %2, %56, %cst_55 {dimension_numbers = #tpu.dot_dimension_numbers<[1], [0], [0], [1], [0, 0, 1, 1], [], []>} : vector<16x32xbf16>, vector<32x16xbf16>, vector<16x16xf32> -> vector<16x16xf32>
    %c3_56 = arith.constant 3 : index
    %c0_57 = arith.constant 0 : index
    %c0_58 = arith.constant 0 : index
    %58 = vector.load %arg8[%c3_56, %c0_57, %c0_58] : memref<4x1x16xf32, #tpu.memory_space<vmem>>, vector<1x1x16xf32>
    %59 = vector.shape_cast %58 : vector<1x1x16xf32> to vector<1x16xf32>
    %60 = vector.broadcast %59 : vector<1x16xf32> to vector<16x16xf32>
    %61 = arith.addf %57, %60 : vector<16x16xf32>
    %62 = tpu.concatenate %12, %26, %40, %54 in 0 : vector<16x8xf32>, vector<16x8xf32>, vector<16x8xf32>, vector<16x8xf32> -> vector<64x8xf32>
    %63 = tpu.concatenate %19, %33, %47, %61 in 0 : vector<16x16xf32>, vector<16x16xf32>, vector<16x16xf32>, vector<16x16xf32> -> vector<64x16xf32>
    %64 = vector.extract_strided_slice %63 {offsets = [0, 0], sizes = [64, 8], strides = [1, 1]} : vector<64x16xf32> to vector<64x8xf32>
    %65 = vector.extract_strided_slice %63 {offsets = [0, 8], sizes = [64, 8], strides = [1, 1]} : vector<64x16xf32> to vector<64x8xf32>
    %66 = arith.truncf %62 : vector<64x8xf32> to vector<64x8xbf16>
    %67 = arith.truncf %64 : vector<64x8xf32> to vector<64x8xbf16>
    %cst_59 = arith.constant dense<0.000000e+00> : vector<64x64xf32>
    %68 = tpu.matmul %66, %67, %cst_59 {dimension_numbers = #tpu.dot_dimension_numbers<[1], [1], [0], [0], [0, 0, 1, 0], [], []>} : vector<64x8xbf16>, vector<64x8xbf16>, vector<64x64xf32> -> vector<64x64xf32>
    %cst_60 = arith.constant 0.353553385 : f32
    %69 = vector.broadcast %cst_60 : f32 to vector<64x64xf32>
    %70 = arith.mulf %68, %69 : vector<64x64xf32>
    %71 = arith.addf %70, %4 : vector<64x64xf32>
    %cst_61 = arith.constant dense<0xFF800000> : vector<64xf32>
    %72 = vector.multi_reduction <maximumf>, %71, %cst_61 [1] : vector<64x64xf32> to vector<64xf32>
    %73 = vector.shape_cast %72 : vector<64xf32> to vector<64x1xf32>
    %74 = vector.broadcast %73 : vector<64x1xf32> to vector<64x64xf32>
    %75 = arith.subf %71, %74 : vector<64x64xf32>
    %76 = math.exp %75 : vector<64x64xf32>
    %cst_62 = arith.constant dense<0.000000e+00> : vector<64xf32>
    %77 = vector.multi_reduction <add>, %76, %cst_62 [1] : vector<64x64xf32> to vector<64xf32>
    %78 = vector.shape_cast %77 : vector<64xf32> to vector<64x1xf32>
    %79 = tpu.reciprocal %78 {approx = true} : vector<64x1xf32> -> vector<64x1xf32>
    %80 = vector.broadcast %79 : vector<64x1xf32> to vector<64x64xf32>
    %81 = arith.mulf %76, %80 : vector<64x64xf32>
    %82 = arith.truncf %81 : vector<64x64xf32> to vector<64x64xbf16>
    %83 = arith.truncf %65 : vector<64x8xf32> to vector<64x8xbf16>
    %cst_63 = arith.constant dense<0.000000e+00> : vector<64x8xf32>
    %84 = tpu.matmul %82, %83, %cst_63 {dimension_numbers = #tpu.dot_dimension_numbers<[1], [0], [0], [1], [0, 0, 1, 1], [], []>} : vector<64x64xbf16>, vector<64x8xbf16>, vector<64x8xf32> -> vector<64x8xf32>
    %cst_64 = arith.constant 0.000000e+00 : f32
    %85 = vector.broadcast %cst_64 : f32 to vector<16x32xf32>
    %86 = vector.extract_strided_slice %84 {offsets = [0, 0], sizes = [16, 8], strides = [1, 1]} : vector<64x8xf32> to vector<16x8xf32>
    %87 = arith.truncf %86 : vector<16x8xf32> to vector<16x8xbf16>
    %c0_65 = arith.constant 0 : index
    %c0_66 = arith.constant 0 : index
    %c0_67 = arith.constant 0 : index
    %88 = vector.load %arg9[%c0_65, %c0_66, %c0_67] : memref<4x8x32xbf16, #tpu.memory_space<vmem>>, vector<1x8x32xbf16>
    %89 = vector.shape_cast %88 : vector<1x8x32xbf16> to vector<8x32xbf16>
    %cst_68 = arith.constant dense<0.000000e+00> : vector<16x32xf32>
    %90 = tpu.matmul %87, %89, %cst_68 {dimension_numbers = #tpu.dot_dimension_numbers<[1], [0], [0], [1], [0, 0, 1, 1], [], []>} : vector<16x8xbf16>, vector<8x32xbf16>, vector<16x32xf32> -> vector<16x32xf32>
    %91 = arith.addf %85, %90 : vector<16x32xf32>
    %92 = vector.extract_strided_slice %84 {offsets = [16, 0], sizes = [16, 8], strides = [1, 1]} : vector<64x8xf32> to vector<16x8xf32>
    %93 = arith.truncf %92 : vector<16x8xf32> to vector<16x8xbf16>
    %c1_69 = arith.constant 1 : index
    %c0_70 = arith.constant 0 : index
    %c0_71 = arith.constant 0 : index
    %94 = vector.load %arg9[%c1_69, %c0_70, %c0_71] : memref<4x8x32xbf16, #tpu.memory_space<vmem>>, vector<1x8x32xbf16>
    %95 = vector.shape_cast %94 : vector<1x8x32xbf16> to vector<8x32xbf16>
    %cst_72 = arith.constant dense<0.000000e+00> : vector<16x32xf32>
    %96 = tpu.matmul %93, %95, %cst_72 {dimension_numbers = #tpu.dot_dimension_numbers<[1], [0], [0], [1], [0, 0, 1, 1], [], []>} : vector<16x8xbf16>, vector<8x32xbf16>, vector<16x32xf32> -> vector<16x32xf32>
    %97 = arith.addf %91, %96 : vector<16x32xf32>
    %98 = vector.extract_strided_slice %84 {offsets = [32, 0], sizes = [16, 8], strides = [1, 1]} : vector<64x8xf32> to vector<16x8xf32>
    %99 = arith.truncf %98 : vector<16x8xf32> to vector<16x8xbf16>
    %c2_73 = arith.constant 2 : index
    %c0_74 = arith.constant 0 : index
    %c0_75 = arith.constant 0 : index
    %100 = vector.load %arg9[%c2_73, %c0_74, %c0_75] : memref<4x8x32xbf16, #tpu.memory_space<vmem>>, vector<1x8x32xbf16>
    %101 = vector.shape_cast %100 : vector<1x8x32xbf16> to vector<8x32xbf16>
    %cst_76 = arith.constant dense<0.000000e+00> : vector<16x32xf32>
    %102 = tpu.matmul %99, %101, %cst_76 {dimension_numbers = #tpu.dot_dimension_numbers<[1], [0], [0], [1], [0, 0, 1, 1], [], []>} : vector<16x8xbf16>, vector<8x32xbf16>, vector<16x32xf32> -> vector<16x32xf32>
    %103 = arith.addf %97, %102 : vector<16x32xf32>
    %104 = vector.extract_strided_slice %84 {offsets = [48, 0], sizes = [16, 8], strides = [1, 1]} : vector<64x8xf32> to vector<16x8xf32>
    %105 = arith.truncf %104 : vector<16x8xf32> to vector<16x8xbf16>
    %c3_77 = arith.constant 3 : index
    %c0_78 = arith.constant 0 : index
    %c0_79 = arith.constant 0 : index
    %106 = vector.load %arg9[%c3_77, %c0_78, %c0_79] : memref<4x8x32xbf16, #tpu.memory_space<vmem>>, vector<1x8x32xbf16>
    %107 = vector.shape_cast %106 : vector<1x8x32xbf16> to vector<8x32xbf16>
    %cst_80 = arith.constant dense<0.000000e+00> : vector<16x32xf32>
    %108 = tpu.matmul %105, %107, %cst_80 {dimension_numbers = #tpu.dot_dimension_numbers<[1], [0], [0], [1], [0, 0, 1, 1], [], []>} : vector<16x8xbf16>, vector<8x32xbf16>, vector<16x32xf32> -> vector<16x32xf32>
    %109 = arith.addf %103, %108 : vector<16x32xf32>
    %110 = vector.broadcast %5 : vector<1x32xf32> to vector<16x32xf32>
    %111 = arith.addf %109, %110 : vector<16x32xf32>
    %112 = arith.addf %111, %0 : vector<16x32xf32>
    %c1_81 = arith.constant 1 : index
    %c0_82 = arith.constant 0 : index
    %113 = vector.load %arg26[%c1_81, %c0_82] : memref<15x32xf32, #tpu.memory_space<vmem>>, vector<1x32xf32>
    %c2_83 = arith.constant 2 : index
    %c0_84 = arith.constant 0 : index
    %114 = vector.load %arg26[%c2_83, %c0_84] : memref<15x32xf32, #tpu.memory_space<vmem>>, vector<1x32xf32>
    %cst_85 = arith.constant dense<0.000000e+00> : vector<16xf32>
    %115 = vector.multi_reduction <add>, %112, %cst_85 [1] : vector<16x32xf32> to vector<16xf32>
    %116 = vector.shape_cast %115 : vector<16xf32> to vector<16x1xf32>
    %cst_86 = arith.constant 3.200000e+01 : f32
    %117 = vector.broadcast %cst_86 : f32 to vector<16x1xf32>
    %118 = arith.divf %116, %117 : vector<16x1xf32>
    %119 = vector.broadcast %118 : vector<16x1xf32> to vector<16x32xf32>
    %120 = arith.subf %112, %119 : vector<16x32xf32>
    %121 = arith.mulf %120, %120 : vector<16x32xf32>
    %cst_87 = arith.constant dense<0.000000e+00> : vector<16xf32>
    %122 = vector.multi_reduction <add>, %121, %cst_87 [1] : vector<16x32xf32> to vector<16xf32>
    %123 = vector.shape_cast %122 : vector<16xf32> to vector<16x1xf32>
    %cst_88 = arith.constant 3.200000e+01 : f32
    %124 = vector.broadcast %cst_88 : f32 to vector<16x1xf32>
    %125 = arith.divf %123, %124 : vector<16x1xf32>
    %126 = vector.broadcast %118 : vector<16x1xf32> to vector<16x32xf32>
    %127 = arith.subf %112, %126 : vector<16x32xf32>
    %cst_89 = arith.constant 9.99999974E-6 : f32
    %128 = vector.broadcast %cst_89 : f32 to vector<16x1xf32>
    %129 = arith.addf %125, %128 : vector<16x1xf32>
    %130 = math.rsqrt %129 : vector<16x1xf32>
    %131 = vector.broadcast %130 : vector<16x1xf32> to vector<16x32xf32>
    %132 = arith.mulf %127, %131 : vector<16x32xf32>
    %133 = vector.broadcast %113 : vector<1x32xf32> to vector<16x32xf32>
    %134 = arith.mulf %133, %132 : vector<16x32xf32>
    %135 = vector.broadcast %114 : vector<1x32xf32> to vector<16x32xf32>
    %136 = arith.addf %134, %135 : vector<16x32xf32>
    %c0_90 = arith.constant 0 : index
    %c0_91 = arith.constant 0 : index
    %137 = vector.load %arg27[%c0_90, %c0_91] : memref<2x64xf32, #tpu.memory_space<vmem>>, vector<1x64xf32>
    %c3_92 = arith.constant 3 : index
    %c0_93 = arith.constant 0 : index
    %138 = vector.load %arg26[%c3_92, %c0_93] : memref<15x32xf32, #tpu.memory_space<vmem>>, vector<1x32xf32>
    %139 = arith.truncf %136 : vector<16x32xf32> to vector<16x32xbf16>
    %c0_94 = arith.constant 0 : index
    %c0_95 = arith.constant 0 : index
    %140 = vector.load %arg10[%c0_94, %c0_95] : memref<32x64xbf16, #tpu.memory_space<vmem>>, vector<32x64xbf16>
    %cst_96 = arith.constant dense<0.000000e+00> : vector<16x64xf32>
    %141 = tpu.matmul %139, %140, %cst_96 {dimension_numbers = #tpu.dot_dimension_numbers<[1], [0], [0], [1], [0, 0, 1, 1], [], []>} : vector<16x32xbf16>, vector<32x64xbf16>, vector<16x64xf32> -> vector<16x64xf32>
    %142 = vector.broadcast %137 : vector<1x64xf32> to vector<16x64xf32>
    %143 = arith.addf %141, %142 : vector<16x64xf32>
    %cst_97 = arith.constant 0.000000e+00 : f32
    %144 = vector.broadcast %cst_97 : f32 to vector<16x64xf32>
    %145 = arith.maximumf %143, %144 : vector<16x64xf32>
    %146 = arith.truncf %145 : vector<16x64xf32> to vector<16x64xbf16>
    %c0_98 = arith.constant 0 : index
    %c0_99 = arith.constant 0 : index
    %147 = vector.load %arg11[%c0_98, %c0_99] : memref<64x32xbf16, #tpu.memory_space<vmem>>, vector<64x32xbf16>
    %cst_100 = arith.constant dense<0.000000e+00> : vector<16x32xf32>
    %148 = tpu.matmul %146, %147, %cst_100 {dimension_numbers = #tpu.dot_dimension_numbers<[1], [0], [0], [1], [0, 0, 1, 1], [], []>} : vector<16x64xbf16>, vector<64x32xbf16>, vector<16x32xf32> -> vector<16x32xf32>
    %149 = vector.broadcast %138 : vector<1x32xf32> to vector<16x32xf32>
    %150 = arith.addf %148, %149 : vector<16x32xf32>
    %151 = arith.addf %150, %136 : vector<16x32xf32>
    %c4 = arith.constant 4 : index
    %c0_101 = arith.constant 0 : index
    %152 = vector.load %arg26[%c4, %c0_101] : memref<15x32xf32, #tpu.memory_space<vmem>>, vector<1x32xf32>
    %c5 = arith.constant 5 : index
    %c0_102 = arith.constant 0 : index
    %153 = vector.load %arg26[%c5, %c0_102] : memref<15x32xf32, #tpu.memory_space<vmem>>, vector<1x32xf32>
    %cst_103 = arith.constant dense<0.000000e+00> : vector<16xf32>
    %154 = vector.multi_reduction <add>, %151, %cst_103 [1] : vector<16x32xf32> to vector<16xf32>
    %155 = vector.shape_cast %154 : vector<16xf32> to vector<16x1xf32>
    %cst_104 = arith.constant 3.200000e+01 : f32
    %156 = vector.broadcast %cst_104 : f32 to vector<16x1xf32>
    %157 = arith.divf %155, %156 : vector<16x1xf32>
    %158 = vector.broadcast %157 : vector<16x1xf32> to vector<16x32xf32>
    %159 = arith.subf %151, %158 : vector<16x32xf32>
    %160 = arith.mulf %159, %159 : vector<16x32xf32>
    %cst_105 = arith.constant dense<0.000000e+00> : vector<16xf32>
    %161 = vector.multi_reduction <add>, %160, %cst_105 [1] : vector<16x32xf32> to vector<16xf32>
    %162 = vector.shape_cast %161 : vector<16xf32> to vector<16x1xf32>
    %cst_106 = arith.constant 3.200000e+01 : f32
    %163 = vector.broadcast %cst_106 : f32 to vector<16x1xf32>
    %164 = arith.divf %162, %163 : vector<16x1xf32>
    %165 = vector.broadcast %157 : vector<16x1xf32> to vector<16x32xf32>
    %166 = arith.subf %151, %165 : vector<16x32xf32>
    %cst_107 = arith.constant 9.99999974E-6 : f32
    %167 = vector.broadcast %cst_107 : f32 to vector<16x1xf32>
    %168 = arith.addf %164, %167 : vector<16x1xf32>
    %169 = math.rsqrt %168 : vector<16x1xf32>
    %170 = vector.broadcast %169 : vector<16x1xf32> to vector<16x32xf32>
    %171 = arith.mulf %166, %170 : vector<16x32xf32>
    %172 = vector.broadcast %152 : vector<1x32xf32> to vector<16x32xf32>
    %173 = arith.mulf %172, %171 : vector<16x32xf32>
    %174 = vector.broadcast %153 : vector<1x32xf32> to vector<16x32xf32>
    %175 = arith.addf %173, %174 : vector<16x32xf32>
    %176 = arith.truncf %175 : vector<16x32xf32> to vector<16x32xbf16>
    %c0_108 = arith.constant 0 : index
    %c0_109 = arith.constant 0 : index
    %177 = vector.load %arg3[%c0_108, %c0_109] : memref<64x64xf32, #tpu.memory_space<vmem>>, vector<64x64xf32>
    %c6 = arith.constant 6 : index
    %c0_110 = arith.constant 0 : index
    %178 = vector.load %arg26[%c6, %c0_110] : memref<15x32xf32, #tpu.memory_space<vmem>>, vector<1x32xf32>
    %c0_111 = arith.constant 0 : index
    %c0_112 = arith.constant 0 : index
    %c0_113 = arith.constant 0 : index
    %179 = vector.load %arg12[%c0_111, %c0_112, %c0_113] : memref<4x32x8xbf16, #tpu.memory_space<vmem>>, vector<1x32x8xbf16>
    %180 = vector.shape_cast %179 : vector<1x32x8xbf16> to vector<32x8xbf16>
    %cst_114 = arith.constant dense<0.000000e+00> : vector<16x8xf32>
    %181 = tpu.matmul %3, %180, %cst_114 {dimension_numbers = #tpu.dot_dimension_numbers<[1], [0], [0], [1], [0, 0, 1, 1], [], []>} : vector<16x32xbf16>, vector<32x8xbf16>, vector<16x8xf32> -> vector<16x8xf32>
    %c0_115 = arith.constant 0 : index
    %c0_116 = arith.constant 0 : index
    %c0_117 = arith.constant 0 : index
    %182 = vector.load %arg14[%c0_115, %c0_116, %c0_117] : memref<4x1x8xf32, #tpu.memory_space<vmem>>, vector<1x1x8xf32>
    %183 = vector.shape_cast %182 : vector<1x1x8xf32> to vector<1x8xf32>
    %184 = vector.broadcast %183 : vector<1x8xf32> to vector<16x8xf32>
    %185 = arith.addf %181, %184 : vector<16x8xf32>
    %c0_118 = arith.constant 0 : index
    %c0_119 = arith.constant 0 : index
    %c0_120 = arith.constant 0 : index
    %186 = vector.load %arg13[%c0_118, %c0_119, %c0_120] : memref<4x32x16xbf16, #tpu.memory_space<vmem>>, vector<1x32x16xbf16>
    %187 = vector.shape_cast %186 : vector<1x32x16xbf16> to vector<32x16xbf16>
    %cst_121 = arith.constant dense<0.000000e+00> : vector<16x16xf32>
    %188 = tpu.matmul %3, %187, %cst_121 {dimension_numbers = #tpu.dot_dimension_numbers<[1], [0], [0], [1], [0, 0, 1, 1], [], []>} : vector<16x32xbf16>, vector<32x16xbf16>, vector<16x16xf32> -> vector<16x16xf32>
    %c0_122 = arith.constant 0 : index
    %c0_123 = arith.constant 0 : index
    %c0_124 = arith.constant 0 : index
    %189 = vector.load %arg15[%c0_122, %c0_123, %c0_124] : memref<4x1x16xf32, #tpu.memory_space<vmem>>, vector<1x1x16xf32>
    %190 = vector.shape_cast %189 : vector<1x1x16xf32> to vector<1x16xf32>
    %191 = vector.broadcast %190 : vector<1x16xf32> to vector<16x16xf32>
    %192 = arith.addf %188, %191 : vector<16x16xf32>
    %c1_125 = arith.constant 1 : index
    %c0_126 = arith.constant 0 : index
    %c0_127 = arith.constant 0 : index
    %193 = vector.load %arg12[%c1_125, %c0_126, %c0_127] : memref<4x32x8xbf16, #tpu.memory_space<vmem>>, vector<1x32x8xbf16>
    %194 = vector.shape_cast %193 : vector<1x32x8xbf16> to vector<32x8xbf16>
    %cst_128 = arith.constant dense<0.000000e+00> : vector<16x8xf32>
    %195 = tpu.matmul %3, %194, %cst_128 {dimension_numbers = #tpu.dot_dimension_numbers<[1], [0], [0], [1], [0, 0, 1, 1], [], []>} : vector<16x32xbf16>, vector<32x8xbf16>, vector<16x8xf32> -> vector<16x8xf32>
    %c1_129 = arith.constant 1 : index
    %c0_130 = arith.constant 0 : index
    %c0_131 = arith.constant 0 : index
    %196 = vector.load %arg14[%c1_129, %c0_130, %c0_131] : memref<4x1x8xf32, #tpu.memory_space<vmem>>, vector<1x1x8xf32>
    %197 = vector.shape_cast %196 : vector<1x1x8xf32> to vector<1x8xf32>
    %198 = vector.broadcast %197 : vector<1x8xf32> to vector<16x8xf32>
    %199 = arith.addf %195, %198 : vector<16x8xf32>
    %c1_132 = arith.constant 1 : index
    %c0_133 = arith.constant 0 : index
    %c0_134 = arith.constant 0 : index
    %200 = vector.load %arg13[%c1_132, %c0_133, %c0_134] : memref<4x32x16xbf16, #tpu.memory_space<vmem>>, vector<1x32x16xbf16>
    %201 = vector.shape_cast %200 : vector<1x32x16xbf16> to vector<32x16xbf16>
    %cst_135 = arith.constant dense<0.000000e+00> : vector<16x16xf32>
    %202 = tpu.matmul %3, %201, %cst_135 {dimension_numbers = #tpu.dot_dimension_numbers<[1], [0], [0], [1], [0, 0, 1, 1], [], []>} : vector<16x32xbf16>, vector<32x16xbf16>, vector<16x16xf32> -> vector<16x16xf32>
    %c1_136 = arith.constant 1 : index
    %c0_137 = arith.constant 0 : index
    %c0_138 = arith.constant 0 : index
    %203 = vector.load %arg15[%c1_136, %c0_137, %c0_138] : memref<4x1x16xf32, #tpu.memory_space<vmem>>, vector<1x1x16xf32>
    %204 = vector.shape_cast %203 : vector<1x1x16xf32> to vector<1x16xf32>
    %205 = vector.broadcast %204 : vector<1x16xf32> to vector<16x16xf32>
    %206 = arith.addf %202, %205 : vector<16x16xf32>
    %c2_139 = arith.constant 2 : index
    %c0_140 = arith.constant 0 : index
    %c0_141 = arith.constant 0 : index
    %207 = vector.load %arg12[%c2_139, %c0_140, %c0_141] : memref<4x32x8xbf16, #tpu.memory_space<vmem>>, vector<1x32x8xbf16>
    %208 = vector.shape_cast %207 : vector<1x32x8xbf16> to vector<32x8xbf16>
    %cst_142 = arith.constant dense<0.000000e+00> : vector<16x8xf32>
    %209 = tpu.matmul %3, %208, %cst_142 {dimension_numbers = #tpu.dot_dimension_numbers<[1], [0], [0], [1], [0, 0, 1, 1], [], []>} : vector<16x32xbf16>, vector<32x8xbf16>, vector<16x8xf32> -> vector<16x8xf32>
    %c2_143 = arith.constant 2 : index
    %c0_144 = arith.constant 0 : index
    %c0_145 = arith.constant 0 : index
    %210 = vector.load %arg14[%c2_143, %c0_144, %c0_145] : memref<4x1x8xf32, #tpu.memory_space<vmem>>, vector<1x1x8xf32>
    %211 = vector.shape_cast %210 : vector<1x1x8xf32> to vector<1x8xf32>
    %212 = vector.broadcast %211 : vector<1x8xf32> to vector<16x8xf32>
    %213 = arith.addf %209, %212 : vector<16x8xf32>
    %c2_146 = arith.constant 2 : index
    %c0_147 = arith.constant 0 : index
    %c0_148 = arith.constant 0 : index
    %214 = vector.load %arg13[%c2_146, %c0_147, %c0_148] : memref<4x32x16xbf16, #tpu.memory_space<vmem>>, vector<1x32x16xbf16>
    %215 = vector.shape_cast %214 : vector<1x32x16xbf16> to vector<32x16xbf16>
    %cst_149 = arith.constant dense<0.000000e+00> : vector<16x16xf32>
    %216 = tpu.matmul %3, %215, %cst_149 {dimension_numbers = #tpu.dot_dimension_numbers<[1], [0], [0], [1], [0, 0, 1, 1], [], []>} : vector<16x32xbf16>, vector<32x16xbf16>, vector<16x16xf32> -> vector<16x16xf32>
    %c2_150 = arith.constant 2 : index
    %c0_151 = arith.constant 0 : index
    %c0_152 = arith.constant 0 : index
    %217 = vector.load %arg15[%c2_150, %c0_151, %c0_152] : memref<4x1x16xf32, #tpu.memory_space<vmem>>, vector<1x1x16xf32>
    %218 = vector.shape_cast %217 : vector<1x1x16xf32> to vector<1x16xf32>
    %219 = vector.broadcast %218 : vector<1x16xf32> to vector<16x16xf32>
    %220 = arith.addf %216, %219 : vector<16x16xf32>
    %c3_153 = arith.constant 3 : index
    %c0_154 = arith.constant 0 : index
    %c0_155 = arith.constant 0 : index
    %221 = vector.load %arg12[%c3_153, %c0_154, %c0_155] : memref<4x32x8xbf16, #tpu.memory_space<vmem>>, vector<1x32x8xbf16>
    %222 = vector.shape_cast %221 : vector<1x32x8xbf16> to vector<32x8xbf16>
    %cst_156 = arith.constant dense<0.000000e+00> : vector<16x8xf32>
    %223 = tpu.matmul %3, %222, %cst_156 {dimension_numbers = #tpu.dot_dimension_numbers<[1], [0], [0], [1], [0, 0, 1, 1], [], []>} : vector<16x32xbf16>, vector<32x8xbf16>, vector<16x8xf32> -> vector<16x8xf32>
    %c3_157 = arith.constant 3 : index
    %c0_158 = arith.constant 0 : index
    %c0_159 = arith.constant 0 : index
    %224 = vector.load %arg14[%c3_157, %c0_158, %c0_159] : memref<4x1x8xf32, #tpu.memory_space<vmem>>, vector<1x1x8xf32>
    %225 = vector.shape_cast %224 : vector<1x1x8xf32> to vector<1x8xf32>
    %226 = vector.broadcast %225 : vector<1x8xf32> to vector<16x8xf32>
    %227 = arith.addf %223, %226 : vector<16x8xf32>
    %c3_160 = arith.constant 3 : index
    %c0_161 = arith.constant 0 : index
    %c0_162 = arith.constant 0 : index
    %228 = vector.load %arg13[%c3_160, %c0_161, %c0_162] : memref<4x32x16xbf16, #tpu.memory_space<vmem>>, vector<1x32x16xbf16>
    %229 = vector.shape_cast %228 : vector<1x32x16xbf16> to vector<32x16xbf16>
    %cst_163 = arith.constant dense<0.000000e+00> : vector<16x16xf32>
    %230 = tpu.matmul %3, %229, %cst_163 {dimension_numbers = #tpu.dot_dimension_numbers<[1], [0], [0], [1], [0, 0, 1, 1], [], []>} : vector<16x32xbf16>, vector<32x16xbf16>, vector<16x16xf32> -> vector<16x16xf32>
    %c3_164 = arith.constant 3 : index
    %c0_165 = arith.constant 0 : index
    %c0_166 = arith.constant 0 : index
    %231 = vector.load %arg15[%c3_164, %c0_165, %c0_166] : memref<4x1x16xf32, #tpu.memory_space<vmem>>, vector<1x1x16xf32>
    %232 = vector.shape_cast %231 : vector<1x1x16xf32> to vector<1x16xf32>
    %233 = vector.broadcast %232 : vector<1x16xf32> to vector<16x16xf32>
    %234 = arith.addf %230, %233 : vector<16x16xf32>
    %235 = tpu.concatenate %185, %199, %213, %227 in 0 : vector<16x8xf32>, vector<16x8xf32>, vector<16x8xf32>, vector<16x8xf32> -> vector<64x8xf32>
    %236 = tpu.concatenate %192, %206, %220, %234 in 0 : vector<16x16xf32>, vector<16x16xf32>, vector<16x16xf32>, vector<16x16xf32> -> vector<64x16xf32>
    %237 = vector.extract_strided_slice %236 {offsets = [0, 0], sizes = [64, 8], strides = [1, 1]} : vector<64x16xf32> to vector<64x8xf32>
    %238 = vector.extract_strided_slice %236 {offsets = [0, 8], sizes = [64, 8], strides = [1, 1]} : vector<64x16xf32> to vector<64x8xf32>
    %239 = arith.truncf %235 : vector<64x8xf32> to vector<64x8xbf16>
    %240 = arith.truncf %237 : vector<64x8xf32> to vector<64x8xbf16>
    %cst_167 = arith.constant dense<0.000000e+00> : vector<64x64xf32>
    %241 = tpu.matmul %239, %240, %cst_167 {dimension_numbers = #tpu.dot_dimension_numbers<[1], [1], [0], [0], [0, 0, 1, 0], [], []>} : vector<64x8xbf16>, vector<64x8xbf16>, vector<64x64xf32> -> vector<64x64xf32>
    %cst_168 = arith.constant 0.353553385 : f32
    %242 = vector.broadcast %cst_168 : f32 to vector<64x64xf32>
    %243 = arith.mulf %241, %242 : vector<64x64xf32>
    %244 = arith.addf %243, %177 : vector<64x64xf32>
    %cst_169 = arith.constant dense<0xFF800000> : vector<64xf32>
    %245 = vector.multi_reduction <maximumf>, %244, %cst_169 [1] : vector<64x64xf32> to vector<64xf32>
    %246 = vector.shape_cast %245 : vector<64xf32> to vector<64x1xf32>
    %247 = vector.broadcast %246 : vector<64x1xf32> to vector<64x64xf32>
    %248 = arith.subf %244, %247 : vector<64x64xf32>
    %249 = math.exp %248 : vector<64x64xf32>
    %cst_170 = arith.constant dense<0.000000e+00> : vector<64xf32>
    %250 = vector.multi_reduction <add>, %249, %cst_170 [1] : vector<64x64xf32> to vector<64xf32>
    %251 = vector.shape_cast %250 : vector<64xf32> to vector<64x1xf32>
    %252 = tpu.reciprocal %251 {approx = true} : vector<64x1xf32> -> vector<64x1xf32>
    %253 = vector.broadcast %252 : vector<64x1xf32> to vector<64x64xf32>
    %254 = arith.mulf %249, %253 : vector<64x64xf32>
    %255 = arith.truncf %254 : vector<64x64xf32> to vector<64x64xbf16>
    %256 = arith.truncf %238 : vector<64x8xf32> to vector<64x8xbf16>
    %cst_171 = arith.constant dense<0.000000e+00> : vector<64x8xf32>
    %257 = tpu.matmul %255, %256, %cst_171 {dimension_numbers = #tpu.dot_dimension_numbers<[1], [0], [0], [1], [0, 0, 1, 1], [], []>} : vector<64x64xbf16>, vector<64x8xbf16>, vector<64x8xf32> -> vector<64x8xf32>
    %cst_172 = arith.constant 0.000000e+00 : f32
    %258 = vector.broadcast %cst_172 : f32 to vector<16x32xf32>
    %259 = vector.extract_strided_slice %257 {offsets = [0, 0], sizes = [16, 8], strides = [1, 1]} : vector<64x8xf32> to vector<16x8xf32>
    %260 = arith.truncf %259 : vector<16x8xf32> to vector<16x8xbf16>
    %c0_173 = arith.constant 0 : index
    %c0_174 = arith.constant 0 : index
    %c0_175 = arith.constant 0 : index
    %261 = vector.load %arg16[%c0_173, %c0_174, %c0_175] : memref<4x8x32xbf16, #tpu.memory_space<vmem>>, vector<1x8x32xbf16>
    %262 = vector.shape_cast %261 : vector<1x8x32xbf16> to vector<8x32xbf16>
    %cst_176 = arith.constant dense<0.000000e+00> : vector<16x32xf32>
    %263 = tpu.matmul %260, %262, %cst_176 {dimension_numbers = #tpu.dot_dimension_numbers<[1], [0], [0], [1], [0, 0, 1, 1], [], []>} : vector<16x8xbf16>, vector<8x32xbf16>, vector<16x32xf32> -> vector<16x32xf32>
    %264 = arith.addf %258, %263 : vector<16x32xf32>
    %265 = vector.extract_strided_slice %257 {offsets = [16, 0], sizes = [16, 8], strides = [1, 1]} : vector<64x8xf32> to vector<16x8xf32>
    %266 = arith.truncf %265 : vector<16x8xf32> to vector<16x8xbf16>
    %c1_177 = arith.constant 1 : index
    %c0_178 = arith.constant 0 : index
    %c0_179 = arith.constant 0 : index
    %267 = vector.load %arg16[%c1_177, %c0_178, %c0_179] : memref<4x8x32xbf16, #tpu.memory_space<vmem>>, vector<1x8x32xbf16>
    %268 = vector.shape_cast %267 : vector<1x8x32xbf16> to vector<8x32xbf16>
    %cst_180 = arith.constant dense<0.000000e+00> : vector<16x32xf32>
    %269 = tpu.matmul %266, %268, %cst_180 {dimension_numbers = #tpu.dot_dimension_numbers<[1], [0], [0], [1], [0, 0, 1, 1], [], []>} : vector<16x8xbf16>, vector<8x32xbf16>, vector<16x32xf32> -> vector<16x32xf32>
    %270 = arith.addf %264, %269 : vector<16x32xf32>
    %271 = vector.extract_strided_slice %257 {offsets = [32, 0], sizes = [16, 8], strides = [1, 1]} : vector<64x8xf32> to vector<16x8xf32>
    %272 = arith.truncf %271 : vector<16x8xf32> to vector<16x8xbf16>
    %c2_181 = arith.constant 2 : index
    %c0_182 = arith.constant 0 : index
    %c0_183 = arith.constant 0 : index
    %273 = vector.load %arg16[%c2_181, %c0_182, %c0_183] : memref<4x8x32xbf16, #tpu.memory_space<vmem>>, vector<1x8x32xbf16>
    %274 = vector.shape_cast %273 : vector<1x8x32xbf16> to vector<8x32xbf16>
    %cst_184 = arith.constant dense<0.000000e+00> : vector<16x32xf32>
    %275 = tpu.matmul %272, %274, %cst_184 {dimension_numbers = #tpu.dot_dimension_numbers<[1], [0], [0], [1], [0, 0, 1, 1], [], []>} : vector<16x8xbf16>, vector<8x32xbf16>, vector<16x32xf32> -> vector<16x32xf32>
    %276 = arith.addf %270, %275 : vector<16x32xf32>
    %277 = vector.extract_strided_slice %257 {offsets = [48, 0], sizes = [16, 8], strides = [1, 1]} : vector<64x8xf32> to vector<16x8xf32>
    %278 = arith.truncf %277 : vector<16x8xf32> to vector<16x8xbf16>
    %c3_185 = arith.constant 3 : index
    %c0_186 = arith.constant 0 : index
    %c0_187 = arith.constant 0 : index
    %279 = vector.load %arg16[%c3_185, %c0_186, %c0_187] : memref<4x8x32xbf16, #tpu.memory_space<vmem>>, vector<1x8x32xbf16>
    %280 = vector.shape_cast %279 : vector<1x8x32xbf16> to vector<8x32xbf16>
    %cst_188 = arith.constant dense<0.000000e+00> : vector<16x32xf32>
    %281 = tpu.matmul %278, %280, %cst_188 {dimension_numbers = #tpu.dot_dimension_numbers<[1], [0], [0], [1], [0, 0, 1, 1], [], []>} : vector<16x8xbf16>, vector<8x32xbf16>, vector<16x32xf32> -> vector<16x32xf32>
    %282 = arith.addf %276, %281 : vector<16x32xf32>
    %283 = vector.broadcast %178 : vector<1x32xf32> to vector<16x32xf32>
    %284 = arith.addf %282, %283 : vector<16x32xf32>
    %285 = arith.addf %284, %1 : vector<16x32xf32>
    %c7 = arith.constant 7 : index
    %c0_189 = arith.constant 0 : index
    %286 = vector.load %arg26[%c7, %c0_189] : memref<15x32xf32, #tpu.memory_space<vmem>>, vector<1x32xf32>
    %c8 = arith.constant 8 : index
    %c0_190 = arith.constant 0 : index
    %287 = vector.load %arg26[%c8, %c0_190] : memref<15x32xf32, #tpu.memory_space<vmem>>, vector<1x32xf32>
    %cst_191 = arith.constant dense<0.000000e+00> : vector<16xf32>
    %288 = vector.multi_reduction <add>, %285, %cst_191 [1] : vector<16x32xf32> to vector<16xf32>
    %289 = vector.shape_cast %288 : vector<16xf32> to vector<16x1xf32>
    %cst_192 = arith.constant 3.200000e+01 : f32
    %290 = vector.broadcast %cst_192 : f32 to vector<16x1xf32>
    %291 = arith.divf %289, %290 : vector<16x1xf32>
    %292 = vector.broadcast %291 : vector<16x1xf32> to vector<16x32xf32>
    %293 = arith.subf %285, %292 : vector<16x32xf32>
    %294 = arith.mulf %293, %293 : vector<16x32xf32>
    %cst_193 = arith.constant dense<0.000000e+00> : vector<16xf32>
    %295 = vector.multi_reduction <add>, %294, %cst_193 [1] : vector<16x32xf32> to vector<16xf32>
    %296 = vector.shape_cast %295 : vector<16xf32> to vector<16x1xf32>
    %cst_194 = arith.constant 3.200000e+01 : f32
    %297 = vector.broadcast %cst_194 : f32 to vector<16x1xf32>
    %298 = arith.divf %296, %297 : vector<16x1xf32>
    %299 = vector.broadcast %291 : vector<16x1xf32> to vector<16x32xf32>
    %300 = arith.subf %285, %299 : vector<16x32xf32>
    %cst_195 = arith.constant 9.99999974E-6 : f32
    %301 = vector.broadcast %cst_195 : f32 to vector<16x1xf32>
    %302 = arith.addf %298, %301 : vector<16x1xf32>
    %303 = math.rsqrt %302 : vector<16x1xf32>
    %304 = vector.broadcast %303 : vector<16x1xf32> to vector<16x32xf32>
    %305 = arith.mulf %300, %304 : vector<16x32xf32>
    %306 = vector.broadcast %286 : vector<1x32xf32> to vector<16x32xf32>
    %307 = arith.mulf %306, %305 : vector<16x32xf32>
    %308 = vector.broadcast %287 : vector<1x32xf32> to vector<16x32xf32>
    %309 = arith.addf %307, %308 : vector<16x32xf32>
    %310 = arith.truncf %309 : vector<16x32xf32> to vector<16x32xbf16>
    %c0_196 = arith.constant 0 : index
    %c0_197 = arith.constant 0 : index
    %311 = vector.load %arg4[%c0_196, %c0_197] : memref<64x64xf32, #tpu.memory_space<vmem>>, vector<64x64xf32>
    %c9 = arith.constant 9 : index
    %c0_198 = arith.constant 0 : index
    %312 = vector.load %arg26[%c9, %c0_198] : memref<15x32xf32, #tpu.memory_space<vmem>>, vector<1x32xf32>
    %c0_199 = arith.constant 0 : index
    %c0_200 = arith.constant 0 : index
    %c0_201 = arith.constant 0 : index
    %313 = vector.load %arg17[%c0_199, %c0_200, %c0_201] : memref<4x32x8xbf16, #tpu.memory_space<vmem>>, vector<1x32x8xbf16>
    %314 = vector.shape_cast %313 : vector<1x32x8xbf16> to vector<32x8xbf16>
    %cst_202 = arith.constant dense<0.000000e+00> : vector<16x8xf32>
    %315 = tpu.matmul %310, %314, %cst_202 {dimension_numbers = #tpu.dot_dimension_numbers<[1], [0], [0], [1], [0, 0, 1, 1], [], []>} : vector<16x32xbf16>, vector<32x8xbf16>, vector<16x8xf32> -> vector<16x8xf32>
    %c0_203 = arith.constant 0 : index
    %c0_204 = arith.constant 0 : index
    %c0_205 = arith.constant 0 : index
    %316 = vector.load %arg19[%c0_203, %c0_204, %c0_205] : memref<4x1x8xf32, #tpu.memory_space<vmem>>, vector<1x1x8xf32>
    %317 = vector.shape_cast %316 : vector<1x1x8xf32> to vector<1x8xf32>
    %318 = vector.broadcast %317 : vector<1x8xf32> to vector<16x8xf32>
    %319 = arith.addf %315, %318 : vector<16x8xf32>
    %c0_206 = arith.constant 0 : index
    %c0_207 = arith.constant 0 : index
    %c0_208 = arith.constant 0 : index
    %320 = vector.load %arg18[%c0_206, %c0_207, %c0_208] : memref<4x32x16xbf16, #tpu.memory_space<vmem>>, vector<1x32x16xbf16>
    %321 = vector.shape_cast %320 : vector<1x32x16xbf16> to vector<32x16xbf16>
    %cst_209 = arith.constant dense<0.000000e+00> : vector<16x16xf32>
    %322 = tpu.matmul %176, %321, %cst_209 {dimension_numbers = #tpu.dot_dimension_numbers<[1], [0], [0], [1], [0, 0, 1, 1], [], []>} : vector<16x32xbf16>, vector<32x16xbf16>, vector<16x16xf32> -> vector<16x16xf32>
    %c0_210 = arith.constant 0 : index
    %c0_211 = arith.constant 0 : index
    %c0_212 = arith.constant 0 : index
    %323 = vector.load %arg20[%c0_210, %c0_211, %c0_212] : memref<4x1x16xf32, #tpu.memory_space<vmem>>, vector<1x1x16xf32>
    %324 = vector.shape_cast %323 : vector<1x1x16xf32> to vector<1x16xf32>
    %325 = vector.broadcast %324 : vector<1x16xf32> to vector<16x16xf32>
    %326 = arith.addf %322, %325 : vector<16x16xf32>
    %c1_213 = arith.constant 1 : index
    %c0_214 = arith.constant 0 : index
    %c0_215 = arith.constant 0 : index
    %327 = vector.load %arg17[%c1_213, %c0_214, %c0_215] : memref<4x32x8xbf16, #tpu.memory_space<vmem>>, vector<1x32x8xbf16>
    %328 = vector.shape_cast %327 : vector<1x32x8xbf16> to vector<32x8xbf16>
    %cst_216 = arith.constant dense<0.000000e+00> : vector<16x8xf32>
    %329 = tpu.matmul %310, %328, %cst_216 {dimension_numbers = #tpu.dot_dimension_numbers<[1], [0], [0], [1], [0, 0, 1, 1], [], []>} : vector<16x32xbf16>, vector<32x8xbf16>, vector<16x8xf32> -> vector<16x8xf32>
    %c1_217 = arith.constant 1 : index
    %c0_218 = arith.constant 0 : index
    %c0_219 = arith.constant 0 : index
    %330 = vector.load %arg19[%c1_217, %c0_218, %c0_219] : memref<4x1x8xf32, #tpu.memory_space<vmem>>, vector<1x1x8xf32>
    %331 = vector.shape_cast %330 : vector<1x1x8xf32> to vector<1x8xf32>
    %332 = vector.broadcast %331 : vector<1x8xf32> to vector<16x8xf32>
    %333 = arith.addf %329, %332 : vector<16x8xf32>
    %c1_220 = arith.constant 1 : index
    %c0_221 = arith.constant 0 : index
    %c0_222 = arith.constant 0 : index
    %334 = vector.load %arg18[%c1_220, %c0_221, %c0_222] : memref<4x32x16xbf16, #tpu.memory_space<vmem>>, vector<1x32x16xbf16>
    %335 = vector.shape_cast %334 : vector<1x32x16xbf16> to vector<32x16xbf16>
    %cst_223 = arith.constant dense<0.000000e+00> : vector<16x16xf32>
    %336 = tpu.matmul %176, %335, %cst_223 {dimension_numbers = #tpu.dot_dimension_numbers<[1], [0], [0], [1], [0, 0, 1, 1], [], []>} : vector<16x32xbf16>, vector<32x16xbf16>, vector<16x16xf32> -> vector<16x16xf32>
    %c1_224 = arith.constant 1 : index
    %c0_225 = arith.constant 0 : index
    %c0_226 = arith.constant 0 : index
    %337 = vector.load %arg20[%c1_224, %c0_225, %c0_226] : memref<4x1x16xf32, #tpu.memory_space<vmem>>, vector<1x1x16xf32>
    %338 = vector.shape_cast %337 : vector<1x1x16xf32> to vector<1x16xf32>
    %339 = vector.broadcast %338 : vector<1x16xf32> to vector<16x16xf32>
    %340 = arith.addf %336, %339 : vector<16x16xf32>
    %c2_227 = arith.constant 2 : index
    %c0_228 = arith.constant 0 : index
    %c0_229 = arith.constant 0 : index
    %341 = vector.load %arg17[%c2_227, %c0_228, %c0_229] : memref<4x32x8xbf16, #tpu.memory_space<vmem>>, vector<1x32x8xbf16>
    %342 = vector.shape_cast %341 : vector<1x32x8xbf16> to vector<32x8xbf16>
    %cst_230 = arith.constant dense<0.000000e+00> : vector<16x8xf32>
    %343 = tpu.matmul %310, %342, %cst_230 {dimension_numbers = #tpu.dot_dimension_numbers<[1], [0], [0], [1], [0, 0, 1, 1], [], []>} : vector<16x32xbf16>, vector<32x8xbf16>, vector<16x8xf32> -> vector<16x8xf32>
    %c2_231 = arith.constant 2 : index
    %c0_232 = arith.constant 0 : index
    %c0_233 = arith.constant 0 : index
    %344 = vector.load %arg19[%c2_231, %c0_232, %c0_233] : memref<4x1x8xf32, #tpu.memory_space<vmem>>, vector<1x1x8xf32>
    %345 = vector.shape_cast %344 : vector<1x1x8xf32> to vector<1x8xf32>
    %346 = vector.broadcast %345 : vector<1x8xf32> to vector<16x8xf32>
    %347 = arith.addf %343, %346 : vector<16x8xf32>
    %c2_234 = arith.constant 2 : index
    %c0_235 = arith.constant 0 : index
    %c0_236 = arith.constant 0 : index
    %348 = vector.load %arg18[%c2_234, %c0_235, %c0_236] : memref<4x32x16xbf16, #tpu.memory_space<vmem>>, vector<1x32x16xbf16>
    %349 = vector.shape_cast %348 : vector<1x32x16xbf16> to vector<32x16xbf16>
    %cst_237 = arith.constant dense<0.000000e+00> : vector<16x16xf32>
    %350 = tpu.matmul %176, %349, %cst_237 {dimension_numbers = #tpu.dot_dimension_numbers<[1], [0], [0], [1], [0, 0, 1, 1], [], []>} : vector<16x32xbf16>, vector<32x16xbf16>, vector<16x16xf32> -> vector<16x16xf32>
    %c2_238 = arith.constant 2 : index
    %c0_239 = arith.constant 0 : index
    %c0_240 = arith.constant 0 : index
    %351 = vector.load %arg20[%c2_238, %c0_239, %c0_240] : memref<4x1x16xf32, #tpu.memory_space<vmem>>, vector<1x1x16xf32>
    %352 = vector.shape_cast %351 : vector<1x1x16xf32> to vector<1x16xf32>
    %353 = vector.broadcast %352 : vector<1x16xf32> to vector<16x16xf32>
    %354 = arith.addf %350, %353 : vector<16x16xf32>
    %c3_241 = arith.constant 3 : index
    %c0_242 = arith.constant 0 : index
    %c0_243 = arith.constant 0 : index
    %355 = vector.load %arg17[%c3_241, %c0_242, %c0_243] : memref<4x32x8xbf16, #tpu.memory_space<vmem>>, vector<1x32x8xbf16>
    %356 = vector.shape_cast %355 : vector<1x32x8xbf16> to vector<32x8xbf16>
    %cst_244 = arith.constant dense<0.000000e+00> : vector<16x8xf32>
    %357 = tpu.matmul %310, %356, %cst_244 {dimension_numbers = #tpu.dot_dimension_numbers<[1], [0], [0], [1], [0, 0, 1, 1], [], []>} : vector<16x32xbf16>, vector<32x8xbf16>, vector<16x8xf32> -> vector<16x8xf32>
    %c3_245 = arith.constant 3 : index
    %c0_246 = arith.constant 0 : index
    %c0_247 = arith.constant 0 : index
    %358 = vector.load %arg19[%c3_245, %c0_246, %c0_247] : memref<4x1x8xf32, #tpu.memory_space<vmem>>, vector<1x1x8xf32>
    %359 = vector.shape_cast %358 : vector<1x1x8xf32> to vector<1x8xf32>
    %360 = vector.broadcast %359 : vector<1x8xf32> to vector<16x8xf32>
    %361 = arith.addf %357, %360 : vector<16x8xf32>
    %c3_248 = arith.constant 3 : index
    %c0_249 = arith.constant 0 : index
    %c0_250 = arith.constant 0 : index
    %362 = vector.load %arg18[%c3_248, %c0_249, %c0_250] : memref<4x32x16xbf16, #tpu.memory_space<vmem>>, vector<1x32x16xbf16>
    %363 = vector.shape_cast %362 : vector<1x32x16xbf16> to vector<32x16xbf16>
    %cst_251 = arith.constant dense<0.000000e+00> : vector<16x16xf32>
    %364 = tpu.matmul %176, %363, %cst_251 {dimension_numbers = #tpu.dot_dimension_numbers<[1], [0], [0], [1], [0, 0, 1, 1], [], []>} : vector<16x32xbf16>, vector<32x16xbf16>, vector<16x16xf32> -> vector<16x16xf32>
    %c3_252 = arith.constant 3 : index
    %c0_253 = arith.constant 0 : index
    %c0_254 = arith.constant 0 : index
    %365 = vector.load %arg20[%c3_252, %c0_253, %c0_254] : memref<4x1x16xf32, #tpu.memory_space<vmem>>, vector<1x1x16xf32>
    %366 = vector.shape_cast %365 : vector<1x1x16xf32> to vector<1x16xf32>
    %367 = vector.broadcast %366 : vector<1x16xf32> to vector<16x16xf32>
    %368 = arith.addf %364, %367 : vector<16x16xf32>
    %369 = tpu.concatenate %319, %333, %347, %361 in 0 : vector<16x8xf32>, vector<16x8xf32>, vector<16x8xf32>, vector<16x8xf32> -> vector<64x8xf32>
    %370 = tpu.concatenate %326, %340, %354, %368 in 0 : vector<16x16xf32>, vector<16x16xf32>, vector<16x16xf32>, vector<16x16xf32> -> vector<64x16xf32>
    %371 = vector.extract_strided_slice %370 {offsets = [0, 0], sizes = [64, 8], strides = [1, 1]} : vector<64x16xf32> to vector<64x8xf32>
    %372 = vector.extract_strided_slice %370 {offsets = [0, 8], sizes = [64, 8], strides = [1, 1]} : vector<64x16xf32> to vector<64x8xf32>
    %373 = arith.truncf %369 : vector<64x8xf32> to vector<64x8xbf16>
    %374 = arith.truncf %371 : vector<64x8xf32> to vector<64x8xbf16>
    %cst_255 = arith.constant dense<0.000000e+00> : vector<64x64xf32>
    %375 = tpu.matmul %373, %374, %cst_255 {dimension_numbers = #tpu.dot_dimension_numbers<[1], [1], [0], [0], [0, 0, 1, 0], [], []>} : vector<64x8xbf16>, vector<64x8xbf16>, vector<64x64xf32> -> vector<64x64xf32>
    %cst_256 = arith.constant 0.353553385 : f32
    %376 = vector.broadcast %cst_256 : f32 to vector<64x64xf32>
    %377 = arith.mulf %375, %376 : vector<64x64xf32>
    %378 = arith.addf %377, %311 : vector<64x64xf32>
    %cst_257 = arith.constant dense<0xFF800000> : vector<64xf32>
    %379 = vector.multi_reduction <maximumf>, %378, %cst_257 [1] : vector<64x64xf32> to vector<64xf32>
    %380 = vector.shape_cast %379 : vector<64xf32> to vector<64x1xf32>
    %381 = vector.broadcast %380 : vector<64x1xf32> to vector<64x64xf32>
    %382 = arith.subf %378, %381 : vector<64x64xf32>
    %383 = math.exp %382 : vector<64x64xf32>
    %cst_258 = arith.constant dense<0.000000e+00> : vector<64xf32>
    %384 = vector.multi_reduction <add>, %383, %cst_258 [1] : vector<64x64xf32> to vector<64xf32>
    %385 = vector.shape_cast %384 : vector<64xf32> to vector<64x1xf32>
    %386 = tpu.reciprocal %385 {approx = true} : vector<64x1xf32> -> vector<64x1xf32>
    %387 = vector.broadcast %386 : vector<64x1xf32> to vector<64x64xf32>
    %388 = arith.mulf %383, %387 : vector<64x64xf32>
    %389 = arith.truncf %388 : vector<64x64xf32> to vector<64x64xbf16>
    %390 = arith.truncf %372 : vector<64x8xf32> to vector<64x8xbf16>
    %cst_259 = arith.constant dense<0.000000e+00> : vector<64x8xf32>
    %391 = tpu.matmul %389, %390, %cst_259 {dimension_numbers = #tpu.dot_dimension_numbers<[1], [0], [0], [1], [0, 0, 1, 1], [], []>} : vector<64x64xbf16>, vector<64x8xbf16>, vector<64x8xf32> -> vector<64x8xf32>
    %cst_260 = arith.constant 0.000000e+00 : f32
    %392 = vector.broadcast %cst_260 : f32 to vector<16x32xf32>
    %393 = vector.extract_strided_slice %391 {offsets = [0, 0], sizes = [16, 8], strides = [1, 1]} : vector<64x8xf32> to vector<16x8xf32>
    %394 = arith.truncf %393 : vector<16x8xf32> to vector<16x8xbf16>
    %c0_261 = arith.constant 0 : index
    %c0_262 = arith.constant 0 : index
    %c0_263 = arith.constant 0 : index
    %395 = vector.load %arg21[%c0_261, %c0_262, %c0_263] : memref<4x8x32xbf16, #tpu.memory_space<vmem>>, vector<1x8x32xbf16>
    %396 = vector.shape_cast %395 : vector<1x8x32xbf16> to vector<8x32xbf16>
    %cst_264 = arith.constant dense<0.000000e+00> : vector<16x32xf32>
    %397 = tpu.matmul %394, %396, %cst_264 {dimension_numbers = #tpu.dot_dimension_numbers<[1], [0], [0], [1], [0, 0, 1, 1], [], []>} : vector<16x8xbf16>, vector<8x32xbf16>, vector<16x32xf32> -> vector<16x32xf32>
    %398 = arith.addf %392, %397 : vector<16x32xf32>
    %399 = vector.extract_strided_slice %391 {offsets = [16, 0], sizes = [16, 8], strides = [1, 1]} : vector<64x8xf32> to vector<16x8xf32>
    %400 = arith.truncf %399 : vector<16x8xf32> to vector<16x8xbf16>
    %c1_265 = arith.constant 1 : index
    %c0_266 = arith.constant 0 : index
    %c0_267 = arith.constant 0 : index
    %401 = vector.load %arg21[%c1_265, %c0_266, %c0_267] : memref<4x8x32xbf16, #tpu.memory_space<vmem>>, vector<1x8x32xbf16>
    %402 = vector.shape_cast %401 : vector<1x8x32xbf16> to vector<8x32xbf16>
    %cst_268 = arith.constant dense<0.000000e+00> : vector<16x32xf32>
    %403 = tpu.matmul %400, %402, %cst_268 {dimension_numbers = #tpu.dot_dimension_numbers<[1], [0], [0], [1], [0, 0, 1, 1], [], []>} : vector<16x8xbf16>, vector<8x32xbf16>, vector<16x32xf32> -> vector<16x32xf32>
    %404 = arith.addf %398, %403 : vector<16x32xf32>
    %405 = vector.extract_strided_slice %391 {offsets = [32, 0], sizes = [16, 8], strides = [1, 1]} : vector<64x8xf32> to vector<16x8xf32>
    %406 = arith.truncf %405 : vector<16x8xf32> to vector<16x8xbf16>
    %c2_269 = arith.constant 2 : index
    %c0_270 = arith.constant 0 : index
    %c0_271 = arith.constant 0 : index
    %407 = vector.load %arg21[%c2_269, %c0_270, %c0_271] : memref<4x8x32xbf16, #tpu.memory_space<vmem>>, vector<1x8x32xbf16>
    %408 = vector.shape_cast %407 : vector<1x8x32xbf16> to vector<8x32xbf16>
    %cst_272 = arith.constant dense<0.000000e+00> : vector<16x32xf32>
    %409 = tpu.matmul %406, %408, %cst_272 {dimension_numbers = #tpu.dot_dimension_numbers<[1], [0], [0], [1], [0, 0, 1, 1], [], []>} : vector<16x8xbf16>, vector<8x32xbf16>, vector<16x32xf32> -> vector<16x32xf32>
    %410 = arith.addf %404, %409 : vector<16x32xf32>
    %411 = vector.extract_strided_slice %391 {offsets = [48, 0], sizes = [16, 8], strides = [1, 1]} : vector<64x8xf32> to vector<16x8xf32>
    %412 = arith.truncf %411 : vector<16x8xf32> to vector<16x8xbf16>
    %c3_273 = arith.constant 3 : index
    %c0_274 = arith.constant 0 : index
    %c0_275 = arith.constant 0 : index
    %413 = vector.load %arg21[%c3_273, %c0_274, %c0_275] : memref<4x8x32xbf16, #tpu.memory_space<vmem>>, vector<1x8x32xbf16>
    %414 = vector.shape_cast %413 : vector<1x8x32xbf16> to vector<8x32xbf16>
    %cst_276 = arith.constant dense<0.000000e+00> : vector<16x32xf32>
    %415 = tpu.matmul %412, %414, %cst_276 {dimension_numbers = #tpu.dot_dimension_numbers<[1], [0], [0], [1], [0, 0, 1, 1], [], []>} : vector<16x8xbf16>, vector<8x32xbf16>, vector<16x32xf32> -> vector<16x32xf32>
    %416 = arith.addf %410, %415 : vector<16x32xf32>
    %417 = vector.broadcast %312 : vector<1x32xf32> to vector<16x32xf32>
    %418 = arith.addf %416, %417 : vector<16x32xf32>
    %c10 = arith.constant 10 : index
    %c0_277 = arith.constant 0 : index
    %419 = vector.load %arg26[%c10, %c0_277] : memref<15x32xf32, #tpu.memory_space<vmem>>, vector<1x32xf32>
    %c11 = arith.constant 11 : index
    %c0_278 = arith.constant 0 : index
    %420 = vector.load %arg26[%c11, %c0_278] : memref<15x32xf32, #tpu.memory_space<vmem>>, vector<1x32xf32>
    %cst_279 = arith.constant dense<0.000000e+00> : vector<16xf32>
    %421 = vector.multi_reduction <add>, %418, %cst_279 [1] : vector<16x32xf32> to vector<16xf32>
    %422 = vector.shape_cast %421 : vector<16xf32> to vector<16x1xf32>
    %cst_280 = arith.constant 3.200000e+01 : f32
    %423 = vector.broadcast %cst_280 : f32 to vector<16x1xf32>
    %424 = arith.divf %422, %423 : vector<16x1xf32>
    %425 = vector.broadcast %424 : vector<16x1xf32> to vector<16x32xf32>
    %426 = arith.subf %418, %425 : vector<16x32xf32>
    %427 = arith.mulf %426, %426 : vector<16x32xf32>
    %cst_281 = arith.constant dense<0.000000e+00> : vector<16xf32>
    %428 = vector.multi_reduction <add>, %427, %cst_281 [1] : vector<16x32xf32> to vector<16xf32>
    %429 = vector.shape_cast %428 : vector<16xf32> to vector<16x1xf32>
    %cst_282 = arith.constant 3.200000e+01 : f32
    %430 = vector.broadcast %cst_282 : f32 to vector<16x1xf32>
    %431 = arith.divf %429, %430 : vector<16x1xf32>
    %432 = vector.broadcast %424 : vector<16x1xf32> to vector<16x32xf32>
    %433 = arith.subf %418, %432 : vector<16x32xf32>
    %cst_283 = arith.constant 9.99999974E-6 : f32
    %434 = vector.broadcast %cst_283 : f32 to vector<16x1xf32>
    %435 = arith.addf %431, %434 : vector<16x1xf32>
    %436 = math.rsqrt %435 : vector<16x1xf32>
    %437 = vector.broadcast %436 : vector<16x1xf32> to vector<16x32xf32>
    %438 = arith.mulf %433, %437 : vector<16x32xf32>
    %439 = vector.broadcast %419 : vector<1x32xf32> to vector<16x32xf32>
    %440 = arith.mulf %439, %438 : vector<16x32xf32>
    %441 = vector.broadcast %420 : vector<1x32xf32> to vector<16x32xf32>
    %442 = arith.addf %440, %441 : vector<16x32xf32>
    %c1_284 = arith.constant 1 : index
    %c0_285 = arith.constant 0 : index
    %443 = vector.load %arg27[%c1_284, %c0_285] : memref<2x64xf32, #tpu.memory_space<vmem>>, vector<1x64xf32>
    %c12 = arith.constant 12 : index
    %c0_286 = arith.constant 0 : index
    %444 = vector.load %arg26[%c12, %c0_286] : memref<15x32xf32, #tpu.memory_space<vmem>>, vector<1x32xf32>
    %445 = arith.truncf %442 : vector<16x32xf32> to vector<16x32xbf16>
    %c0_287 = arith.constant 0 : index
    %c0_288 = arith.constant 0 : index
    %446 = vector.load %arg22[%c0_287, %c0_288] : memref<32x64xbf16, #tpu.memory_space<vmem>>, vector<32x64xbf16>
    %cst_289 = arith.constant dense<0.000000e+00> : vector<16x64xf32>
    %447 = tpu.matmul %445, %446, %cst_289 {dimension_numbers = #tpu.dot_dimension_numbers<[1], [0], [0], [1], [0, 0, 1, 1], [], []>} : vector<16x32xbf16>, vector<32x64xbf16>, vector<16x64xf32> -> vector<16x64xf32>
    %448 = vector.broadcast %443 : vector<1x64xf32> to vector<16x64xf32>
    %449 = arith.addf %447, %448 : vector<16x64xf32>
    %cst_290 = arith.constant 0.000000e+00 : f32
    %450 = vector.broadcast %cst_290 : f32 to vector<16x64xf32>
    %451 = arith.maximumf %449, %450 : vector<16x64xf32>
    %452 = arith.truncf %451 : vector<16x64xf32> to vector<16x64xbf16>
    %c0_291 = arith.constant 0 : index
    %c0_292 = arith.constant 0 : index
    %453 = vector.load %arg23[%c0_291, %c0_292] : memref<64x32xbf16, #tpu.memory_space<vmem>>, vector<64x32xbf16>
    %cst_293 = arith.constant dense<0.000000e+00> : vector<16x32xf32>
    %454 = tpu.matmul %452, %453, %cst_293 {dimension_numbers = #tpu.dot_dimension_numbers<[1], [0], [0], [1], [0, 0, 1, 1], [], []>} : vector<16x64xbf16>, vector<64x32xbf16>, vector<16x32xf32> -> vector<16x32xf32>
    %455 = vector.broadcast %444 : vector<1x32xf32> to vector<16x32xf32>
    %456 = arith.addf %454, %455 : vector<16x32xf32>
    %457 = arith.addf %456, %309 : vector<16x32xf32>
    %c13 = arith.constant 13 : index
    %c0_294 = arith.constant 0 : index
    %458 = vector.load %arg26[%c13, %c0_294] : memref<15x32xf32, #tpu.memory_space<vmem>>, vector<1x32xf32>
    %c14 = arith.constant 14 : index
    %c0_295 = arith.constant 0 : index
    %459 = vector.load %arg26[%c14, %c0_295] : memref<15x32xf32, #tpu.memory_space<vmem>>, vector<1x32xf32>
    %cst_296 = arith.constant dense<0.000000e+00> : vector<16xf32>
    %460 = vector.multi_reduction <add>, %457, %cst_296 [1] : vector<16x32xf32> to vector<16xf32>
    %461 = vector.shape_cast %460 : vector<16xf32> to vector<16x1xf32>
    %cst_297 = arith.constant 3.200000e+01 : f32
    %462 = vector.broadcast %cst_297 : f32 to vector<16x1xf32>
    %463 = arith.divf %461, %462 : vector<16x1xf32>
    %464 = vector.broadcast %463 : vector<16x1xf32> to vector<16x32xf32>
    %465 = arith.subf %457, %464 : vector<16x32xf32>
    %466 = arith.mulf %465, %465 : vector<16x32xf32>
    %cst_298 = arith.constant dense<0.000000e+00> : vector<16xf32>
    %467 = vector.multi_reduction <add>, %466, %cst_298 [1] : vector<16x32xf32> to vector<16xf32>
    %468 = vector.shape_cast %467 : vector<16xf32> to vector<16x1xf32>
    %cst_299 = arith.constant 3.200000e+01 : f32
    %469 = vector.broadcast %cst_299 : f32 to vector<16x1xf32>
    %470 = arith.divf %468, %469 : vector<16x1xf32>
    %471 = vector.broadcast %463 : vector<16x1xf32> to vector<16x32xf32>
    %472 = arith.subf %457, %471 : vector<16x32xf32>
    %cst_300 = arith.constant 9.99999974E-6 : f32
    %473 = vector.broadcast %cst_300 : f32 to vector<16x1xf32>
    %474 = arith.addf %470, %473 : vector<16x1xf32>
    %475 = math.rsqrt %474 : vector<16x1xf32>
    %476 = vector.broadcast %475 : vector<16x1xf32> to vector<16x32xf32>
    %477 = arith.mulf %472, %476 : vector<16x32xf32>
    %478 = vector.broadcast %458 : vector<1x32xf32> to vector<16x32xf32>
    %479 = arith.mulf %478, %477 : vector<16x32xf32>
    %480 = vector.broadcast %459 : vector<1x32xf32> to vector<16x32xf32>
    %481 = arith.addf %479, %480 : vector<16x32xf32>
    %482 = arith.truncf %481 : vector<16x32xf32> to vector<16x32xbf16>
    %c0_301 = arith.constant 0 : index
    %c0_302 = arith.constant 0 : index
    %483 = vector.load %arg24[%c0_301, %c0_302] : memref<32x128xbf16, #tpu.memory_space<vmem>>, vector<32x128xbf16>
    %cst_303 = arith.constant dense<0.000000e+00> : vector<16x128xf32>
    %484 = tpu.matmul %482, %483, %cst_303 {dimension_numbers = #tpu.dot_dimension_numbers<[1], [0], [0], [1], [0, 0, 1, 1], [], []>} : vector<16x32xbf16>, vector<32x128xbf16>, vector<16x128xf32> -> vector<16x128xf32>
    %c0_304 = arith.constant 0 : index
    %c0_305 = arith.constant 0 : index
    %485 = vector.load %arg25[%c0_304, %c0_305] : memref<1x128xf32, #tpu.memory_space<vmem>>, vector<1x128xf32>
    %486 = vector.broadcast %485 : vector<1x128xf32> to vector<16x128xf32>
    %487 = arith.addf %484, %486 : vector<16x128xf32>
    %c0_306 = arith.constant 0 : index
    %c0_307 = arith.constant 0 : index
    %488 = vector.load %arg28[%c0_306, %c0_307] : memref<16x128xf32, #tpu.memory_space<vmem>>, vector<16x128xf32>
    tpu.vector_store %arg28[%c0_306, %c0_307], %487 {strides = array<i32>} : memref<16x128xf32, #tpu.memory_space<vmem>>, vector<16x128xf32>,
    return
  }
}

</mosaic_0001>

<bundles_post_ra>
// kernel: transformer_forward.1
= control target key start
LH: loop header
LB: loop body
LE: loop exit
PB: predicated region body
PF: predicated region fallthrough
CT: control target
= control target key end

     0   :  { %s5996_s0 = inlined_call_operand.vmem [shape: f32[16,32], index: 0, kind: input, shape index: {}]   ;;  %s5997_s1 = inlined_call_operand.vmem [shape: f32[16,32], index: 1, kind: input, shape index: {}]   ;;  %s5998_s2 = inlined_call_operand.vmem [shape: f32[64,64], index: 2, kind: input, shape index: {}]   ;;  %s5999_s3 = inlined_call_operand.vmem [shape: f32[64,64], index: 3, kind: input, shape index: {}]   ;;  %s6000_s4 = inlined_call_operand.vmem [shape: f32[64,64], index: 4, kind: input, shape index: {}]   ;;  %s6001_s5 = inlined_call_operand.vmem [shape: bf16[4,32,8], index: 5, kind: input, shape index: {}]   ;;  %s6002_s6 = inlined_call_operand.vmem [shape: bf16[4,32,16], index: 6, kind: input, shape index: {}]   ;;  %s6003_s7 = inlined_call_operand.vmem [shape: f32[4,1,8], index: 7, kind: input, shape index: {}]   ;;  %s6004_s8 = inlined_call_operand.vmem [shape: f32[4,1,16], index: 8, kind: input, shape index: {}]   ;;  %s6005_s9 = inlined_call_operand.vmem [shape: bf16[4,8,32], index: 9, kind: input, shape index: {}]   ;;  %s6006_s10 = inlined_call_operand.vmem [shape: bf16[32,64], index: 10, kind: input, shape index: {}]   ;;  %s6007_s11 = inlined_call_operand.vmem [shape: bf16[64,32], index: 11, kind: input, shape index: {}]   ;;  %s6008_s12 = inlined_call_operand.vmem [shape: bf16[4,32,8], index: 12, kind: input, shape index: {}]   ;;  %s6009_s13 = inlined_call_operand.vmem [shape: bf16[4,32,16], index: 13, kind: input, shape index: {}]   ;;  %s6010_s14 = inlined_call_operand.vmem [shape: f32[4,1,8], index: 14, kind: input, shape index: {}]   ;;  %s6011_s15 = inlined_call_operand.vmem [shape: f32[4,1,16], index: 15, kind: input, shape index: {}]   ;;  %s6012_s16 = inlined_call_operand.vmem [shape: bf16[4,8,32], index: 16, kind: input, shape index: {}]   ;;  %s6013_s17 = inlined_call_operand.vmem [shape: bf16[4,32,8], index: 17, kind: input, shape index: {}]   ;;  %s6014_s18 = inlined_call_operand.vmem [shape: bf16[4,32,16], index: 18, kind: input, shape index: {}]   ;;  %s6015_s19 = inlined_call_operand.vmem [shape: f32[4,1,8], index: 19, kind: input, shape index: {}]   ;;  %s6016_s20 = inlined_call_operand.vmem [shape: f32[4,1,16], index: 20, kind: input, shape index: {}]   ;;  %s6017_s21 = inlined_call_operand.vmem [shape: bf16[4,8,32], index: 21, kind: input, shape index: {}]   ;;  %s6018_s22 = inlined_call_operand.vmem [shape: bf16[32,64], index: 22, kind: input, shape index: {}]   ;;  %s6019_s23 = inlined_call_operand.vmem [shape: bf16[64,32], index: 23, kind: input, shape index: {}]   ;;  %s6020_s24 = inlined_call_operand.vmem [shape: bf16[32,128], index: 24, kind: input, shape index: {}]   ;;  %s6021_s25 = inlined_call_operand.vmem [shape: f32[1,128], index: 25, kind: input, shape index: {}]   ;;  %s6022_s26 = inlined_call_operand.vmem [shape: f32[15,32], index: 26, kind: input, shape index: {}]   ;;  %s6023_s27 = inlined_call_operand.vmem [shape: f32[2,64], index: 27, kind: input, shape index: {}]   ;;  %s6024_s28 = inlined_call_operand.hbm [shape: f32[16,128], index: 28, kind: output, shape index: {}]  }
   0x1   :  { %6038 = sst [smem:[#allocation5_spill]] %s5996_s0 }
   0x2   :  { %6039 = sst [smem:[#allocation6_spill]] %s5997_s1 }
   0x3   :  { %6040 = sst [smem:[#allocation7_spill]] %s5998_s2 }
   0x4   :  { %6041 = sst [smem:[#allocation8_spill]] %s5999_s3 }
   0x5   :  { %6042 = sst [smem:[#allocation9_spill]] %s6000_s4 }
   0x6   :  { %6043 = sst [smem:[#allocation10_spill]] %s6001_s5 }
   0x7   :  { %6044 = sst [smem:[#allocation11_spill]] %s6002_s6 }
   0x8   :  { %6045 = sst [smem:[#allocation12_spill]] %s6003_s7 }
   0x9   :  { %6046 = sst [smem:[#allocation13_spill]] %s6004_s8 }
   0xa   :  { %6047 = sst [smem:[#allocation14_spill]] %s6005_s9 }
   0xb   :  { %6048 = sst [smem:[#allocation15_spill]] %s6006_s10 }
   0xc   :  { %6049 = sst [smem:[#allocation16_spill]] %s6007_s11 }
   0xd   :  { %6050 = sst [smem:[#allocation17_spill]] %s6008_s12 }
   0xe   :  { %s6051_s9 = sld [smem:[#allocation11_spill]]  ;;  %v4889_v1 = vmov 0.0   ;;  %vm4890_vm0 = vmmov 0   ;;  %s6052_s0 = sld [smem:[#allocation5_spill]]  ;;  %vm129_vm1 = vcmask 261120  }
   0xf   :  { %4269 = vmatprep.subr.bf16.mxu1 %v4889_v1  ;;  %4261 = vmatprep.subr.bf16.mxu0 %v4889_v1  ;;  %s6053_s12 = sld [smem:[#allocation10_spill]] }
  0x10   :  { %4273 = vmatprep.mubr.msk.bf16.mxu1 %vm4890_vm0, %v4889_v1  ;;  %4265 = vmatprep.mubr.msk.bf16.mxu0 %vm4890_vm0, %v4889_v1 }
  0x14   :  { %v4687_v0 = vld [vmem:[%s6051_s9] sm:$0xff]   ;;  %v4688_v2 = vld [vmem:[%s6051_s9 + $0x8] sm:$0xff]   ;;  %v4689_v7 = vld [vmem:[%s6051_s9 + $0x10] sm:$0xff]  }
  0x15   :  { %4270 = vmatpush3.bf16.msra.mxu1 %v4687_v0  ;;  %v5053_v3 = vld [vmem:[%s6052_s0] sm:$0xff]  ;;  %v5058_v4 = vld [vmem:[%s6052_s0 + $0x8] sm:$0xff]  ;;  %v4690_v9 = vld [vmem:[%s6051_s9 + $0x18] sm:$0xff]  }
  0x16   :  { %4271 = vmatprep.subr.bf16.mxu1 %v4889_v1  ;;  %v95_v5 = vpack.c.bf16 %v5058_v4, %v5053_v3  ;;  %v4691_v6 = vld [vmem:[%s6053_s12] sm:$0xff]   ;;  %v4693_v8 = vld [vmem:[%s6053_s12 + $0x8] sm:$0xff]   ;;  %v4695_v10 = vld [vmem:[%s6053_s12 + $0x10] sm:$0xff]  }
  0x17   :  { %4262 = vmatpush3.bf16.msra.mxu0 %v4691_v6  ;;  %v4692_v11 = vld [vmem:[%s6051_s9 + $0x20] sm:$0xff]   ;;  %v4697_v12 = vld [vmem:[%s6053_s12 + $0x18] sm:$0xff]   ;;  %v4694_v13 = vld [vmem:[%s6051_s9 + $0x28] sm:$0xff]  }
  0x18   :  { %4263 = vmatprep.subr.bf16.mxu0 %v4889_v1  ;;  %v4699_v14 = vld [vmem:[%s6053_s12 + $0x20] sm:$0xff]   ;;  %v4696_v15 = vld [vmem:[%s6051_s9 + $0x30] sm:$0xff]   ;;  %v4700_v16 = vld [vmem:[%s6053_s12 + $0x28] sm:$0xff]  }
  0x19   :  { %4272 = vmatpush3.bf16.msra.mxu1 %v4688_v2  ;;  %v4698_v17 = vld [vmem:[%s6051_s9 + $0x38] sm:$0xff]   ;;  %v4701_v18 = vld [vmem:[%s6053_s12 + $0x30] sm:$0xff]  }
  0x1a   :  { %4285 = vmatprep.subr.bf16.mxu1 %v4889_v1  ;;  %v4702_v19 = vld [vmem:[%s6053_s12 + $0x38] sm:$0xff]  }
  0x1b   :  { %4264 = vmatpush3.bf16.msra.mxu0 %v4693_v8 }
  0x1c   :  { %4274 = vmatmul.mubr.msk.bf16.vlgmr.msra.gmra.mrb[0].mxu1 %vm129_vm1, %v95_v5  ;;  %4277 = vmatprep.subr.bf16.mxu0 %v4889_v1 }
  0x1d   :  { %4286 = vmatpush3.bf16.msra.mxu1 %v4689_v7  ;;  %4289 = vmatprep.mubr.msk.bf16.mxu1 %vm4890_vm0, %v4889_v1 }
  0x1e   :  { %4287 = vmatprep.subr.bf16.mxu1 %v4889_v1  ;;  %4266 = vmatmul.mubr.msk.bf16.vlgmr.msra.gmra.mrb[0].mxu0 %vm129_vm1, %v95_v5 }
  0x1f   :  { %4278 = vmatpush3.bf16.msra.mxu0 %v4695_v10  ;;  %4281 = vmatprep.mubr.msk.bf16.mxu0 %vm4890_vm0, %v4889_v1 }
  0x20   :  { %4279 = vmatprep.subr.bf16.mxu0 %v4889_v1 }
  0x21   :  { %4288 = vmatpush3.bf16.msra.mxu1 %v4690_v9 }
  0x22   :  { %4301 = vmatprep.subr.bf16.mxu1 %v4889_v1 }
  0x23   :  { %4280 = vmatpush3.bf16.msra.mxu0 %v4697_v12 }
  0x24   :  { %4290 = vmatmul.mubr.msk.bf16.vlgmr.msra.gmra.mrb[4].mxu1 %vm129_vm1, %v95_v5  ;;  %4293 = vmatprep.subr.bf16.mxu0 %v4889_v1 }
  0x25   :  { %4302 = vmatpush3.bf16.msra.mxu1 %v4692_v11  ;;  %4305 = vmatprep.mubr.msk.bf16.mxu1 %vm4890_vm0, %v4889_v1 }
  0x26   :  { %4303 = vmatprep.subr.bf16.mxu1 %v4889_v1  ;;  %4282 = vmatmul.mubr.msk.bf16.vlgmr.msra.gmra.mrb[4].mxu0 %vm129_vm1, %v95_v5 }
  0x27   :  { %4294 = vmatpush3.bf16.msra.mxu0 %v4699_v14  ;;  %4297 = vmatprep.mubr.msk.bf16.mxu0 %vm4890_vm0, %v4889_v1 }
  0x28   :  { %4295 = vmatprep.subr.bf16.mxu0 %v4889_v1 }
  0x29   :  { %4304 = vmatpush3.bf16.msra.mxu1 %v4694_v13 }
  0x2a   :  { %4317 = vmatprep.subr.bf16.mxu1 %v4889_v1 }
  0x2b   :  { %4296 = vmatpush3.bf16.msra.mxu0 %v4700_v16 }
  0x2c   :  { %4306 = vmatmul.mubr.msk.bf16.vlgmr.msra.gmra.mrb[8].mxu1 %vm129_vm1, %v95_v5  ;;  %4309 = vmatprep.subr.bf16.mxu0 %v4889_v1 }
  0x2d   :  { %4318 = vmatpush3.bf16.msra.mxu1 %v4696_v15  ;;  %4321 = vmatprep.mubr.msk.bf16.mxu1 %vm4890_vm0, %v4889_v1 }
  0x2e   :  { %4319 = vmatprep.subr.bf16.mxu1 %v4889_v1  ;;  %4298 = vmatmul.mubr.msk.bf16.vlgmr.msra.gmra.mrb[8].mxu0 %vm129_vm1, %v95_v5 }
  0x2f   :  { %4310 = vmatpush3.bf16.msra.mxu0 %v4701_v18  ;;  %4313 = vmatprep.mubr.msk.bf16.mxu0 %vm4890_vm0, %v4889_v1 }
  0x30   :  { %4311 = vmatprep.subr.bf16.mxu0 %v4889_v1 }
  0x31   :  { %4320 = vmatpush3.bf16.msra.mxu1 %v4698_v17 }
  0x33   :  { %4312 = vmatpush3.bf16.msra.mxu0 %v4702_v19 }
  0x34   :  { %4322 = vmatmul.mubr.msk.bf16.vlgmr.msra.gmra.mrb[12].mxu1 %vm129_vm1, %v95_v5 }
  0x36   :  { %4314 = vmatmul.mubr.msk.bf16.vlgmr.msra.gmra.mrb[12].mxu0 %vm129_vm1, %v95_v5 }
  0x37   :  { %33 = vsyncpa [#allocation3], 0  ;;  %s6054_s4 = sld [smem:[#allocation13_spill]]  ;;  %s6055_s5 = sld [smem:[#allocation12_spill]]  ;;  %vm642_vm2 = vcmask 64512   ;;  %vm748_vm3 = vcmask 523264  }
  0x38   :  { %s6057_s6 = sld [smem:[#allocation14_spill]]  ;;  %vm942_vm4 = vcmask 1043456   ;;  %s6058_s8 = sld [smem:[#allocation15_spill]] }
  0x39   :  { %s6059_s0 = sld [smem:[#allocation16_spill]]  ;;  %s6061_s11 = sld [smem:[#allocation6_spill]] }
  0x3d   :  { %v3834_v20 = vld [vmem:[%s6054_s4] ss:$0 sm:$0xff]  ;;  %v3852_v34 = vld [vmem:[%s6054_s4 + $0x1] ss:$0 sm:$0xff]  ;;  %v3870_v51 = vld [vmem:[%s6054_s4 + $0x2] ss:$0 sm:$0xff] }
  0x3e   :  { %v3830_v27 = vld [vmem:[%s6055_s5] ss:$0 sm:$0xff]  ;;  %v3843_v44 = vld [vmem:[%s6055_s5 + $0x1] ss:$0 sm:$0xff]  ;;  %v3861_v61 = vld [vmem:[%s6055_s5 + $0x2] ss:$0 sm:$0xff] }
  0x3f   :  { %v3888_v7 = vld [vmem:[%s6054_s4 + $0x3] ss:$0 sm:$0xff]  ;;  %s4892_s4 = smov [#allocation2]  }
  0x40   :  { %v3879_v17 = vld [vmem:[%s6055_s5 + $0x3] ss:$0 sm:$0xff]  ;;  %s6056_s5 = sld [smem:[#allocation7_spill]]  ;;  %s3819_s30 = sshll.u32 %s4892_s4, 4  ;;  %s3820_s30 = int_to_ptr.vmem [resolvable:$true] %s3819_s30 }
  0x41   :  { %p4870_p1 = scmp.lt.s32.totalorder %s3820_s30, %s3820_s30 }
  0xef   :  { %v231_v21 = vpop.f32.mrb[0].mxu1 }
  0xf0   :  { %v4275_v22 = vpop.f32.mrb[1].mxu1  ;;  %v232_v24 = vadd.f32 %v3834_v20, %v231_v21 }
  0xf1   :  { %v234_v23 = vpop.f32.mrb[2].mxu1  ;;  %v167_v29 = vpop.f32.mrb[0].mxu0 }
  0xf2   :  { %v235_v25 = vadd.f32 %v3834_v20, %v234_v23  ;;  %v4276_v26 = vpop.f32.mrb[3].mxu1  ;;  %v168_v30 = vadd.f32 %v3830_v27, %v167_v29  ;;  %v4267_v31 = vpop.f32.mrb[1].mxu0  ;;  %v99_v29 = vld [vmem:[%s6056_s5 + $0x10] sm:$0xff] }
  0xf3   :  { %v170_v33 = vpop.f32.mrb[2].mxu0 }
  0xf4   :  { %v5146_v28 = vpack.c.bf16 %v235_v25, %v232_v24  ;;  %v171_v36 = vadd.f32 %v3830_v27, %v170_v33  ;;  %v4268_v37 = vpop.f32.mrb[3].mxu0 }
  0xf6   :  { %4669 = vmatprep.subr.msk.bf16.mxu0 %vm642_vm2, %v5146_v28  ;;  %v656_v32 = vsel %vm642_vm2, %v5146_v28, 0  ;;  %v634_v40 = vpack.c.bf16 %v171_v36, %v168_v30 }
  0xf7   :  { %v363_v35 = vpop.f32.mrb[4].mxu1  ;;  %4326 = vmatpush3.bf16.xpose.msra.mxu0 %v656_v32  ;;  %v97_v32 = vld [vmem:[%s6056_s5] sm:$0xff] }
  0xf8   :  { %v4291_v38 = vpop.f32.mrb[5].mxu1  ;;  %v364_v41 = vadd.f32 %v3852_v34, %v363_v35  ;;  %4333 = vmatprep.mubr.msk.bf16.mxu0 %vm642_vm2, %v634_v40  ;;  %v100_v35 = vld [vmem:[%s6056_s5 + $0x18] sm:$0xff] }
  0xf9   :  { %v366_v39 = vpop.f32.mrb[6].mxu1  ;;  %v297_v46 = vpop.f32.mrb[4].mxu0 }
  0xfa   :  { %v367_v42 = vadd.f32 %v3852_v34, %v366_v39  ;;  %v4292_v43 = vpop.f32.mrb[7].mxu1  ;;  %v298_v47 = vadd.f32 %v3843_v44, %v297_v46  ;;  %v4283_v48 = vpop.f32.mrb[5].mxu0  ;;  %v98_v39 = vld [vmem:[%s6056_s5 + $0x8] sm:$0xff] }
  0xfb   :  { %v300_v50 = vpop.f32.mrb[6].mxu0 }
  0xfc   :  { %v5159_v45 = vpack.c.bf16 %v367_v42, %v364_v41  ;;  %v301_v53 = vadd.f32 %v3843_v44, %v300_v50  ;;  %v4284_v54 = vpop.f32.mrb[7].mxu0 }
  0xfe   :  { %4670 = vmatprep.subr.msk.bf16.mxu0 %vm642_vm2, %v5159_v45  ;;  %v659_v49 = vsel %vm642_vm2, %v5159_v45, 0  ;;  %v635_v57 = vpack.c.bf16 %v301_v53, %v298_v47 }
  0xff   :  { %v495_v52 = vpop.f32.mrb[8].mxu1  ;;  %4328 = vmatpush3.bf16.xpose.msra.mxu0 %v659_v49 }
 0x100   :  { %v4307_v55 = vpop.f32.mrb[9].mxu1  ;;  %v496_v58 = vadd.f32 %v3870_v51, %v495_v52  ;;  %v103_v52 = vld [vmem:[%s6056_s5 + $0x30] sm:$0xff] }
 0x101   :  { %v498_v56 = vpop.f32.mrb[10].mxu1  ;;  %v429_v63 = vpop.f32.mrb[8].mxu0 }
 0x102   :  { %v499_v59 = vadd.f32 %v3870_v51, %v498_v56  ;;  %v4308_v60 = vpop.f32.mrb[11].mxu1  ;;  %v430_v0 = vadd.f32 %v3861_v61, %v429_v63  ;;  %v4299_v2 = vpop.f32.mrb[9].mxu0  ;;  %v101_v51 = vld [vmem:[%s6056_s5 + $0x20] sm:$0xff]  ;;  %v104_v56 = vld [vmem:[%s6056_s5 + $0x38] sm:$0xff] }
 0x103   :  { %v432_v6 = vpop.f32.mrb[10].mxu0 }
 0x104   :  { %v5171_v62 = vpack.c.bf16 %v499_v59, %v496_v58  ;;  %v433_v9 = vadd.f32 %v3861_v61, %v432_v6  ;;  %v4300_v10 = vpop.f32.mrb[11].mxu0  ;;  %v102_v59 = vld [vmem:[%s6056_s5 + $0x28] sm:$0xff]  ;;  %s4891_s5 = smov 120  }
 0x106   :  { %4671 = vmatprep.subr.msk.bf16.mxu0 %vm642_vm2, %v5171_v62  ;;  %v662_v5 = vsel %vm642_vm2, %v5171_v62, 0  ;;  %v636_v13 = vpack.c.bf16 %v433_v9, %v430_v0 }
 0x107   :  { %v627_v8 = vpop.f32.mrb[12].mxu1  ;;  %4330 = vmatpush3.bf16.xpose.msra.mxu0 %v662_v5 }
 0x108   :  { %v4323_v11 = vpop.f32.mrb[13].mxu1  ;;  %v628_v14 = vadd.f32 %v3888_v7, %v627_v8 }
 0x109   :  { %v630_v12 = vpop.f32.mrb[14].mxu1  ;;  %v561_v19 = vpop.f32.mrb[12].mxu0 }
 0x10a   :  { %v631_v15 = vadd.f32 %v3888_v7, %v630_v12  ;;  %v4324_v16 = vpop.f32.mrb[15].mxu1  ;;  %v562_v20 = vadd.f32 %v3879_v17, %v561_v19  ;;  %v4315_v21 = vpop.f32.mrb[13].mxu0 }
 0x10b   :  { %v564_v23 = vpop.f32.mrb[14].mxu0 }
 0x10c   :  { %v5183_v18 = vpack.c.bf16 %v631_v15, %v628_v14  ;;  %v565_v24 = vadd.f32 %v3879_v17, %v564_v23  ;;  %v4316_v25 = vpop.f32.mrb[15].mxu0 }
 0x10e   :  { %4672 = vmatprep.subr.msk.bf16.mxu0 %vm642_vm2, %v5183_v18  ;;  %v665_v22 = vsel %vm642_vm2, %v5183_v18, 0  ;;  %v637_v26 = vpack.c.bf16 %v565_v24, %v562_v20 }
 0x10f   :  { %4332 = vmatpush3.bf16.xpose.msra.mxu0 %v665_v22 }
 0x110   :  { %4369 = vmatprep.subr.bf16.mxu0 %v4889_v1 }
 0x116   :  { %4334 = vmatmul.mubr.msk.bf16.vlgmr.msra.gmra.mrb[16].mxu0 %vm642_vm2, %v635_v57 }
 0x117   :  { %4337 = vmatprep.mubr.msk.bf16.mxu0 %vm642_vm2, %v636_v13 }
 0x11e   :  { %4338 = vmatmul.mubr.msk.bf16.gmra.mrb[20].mxu0 %vm642_vm2, %v637_v26 }
 0x11f   :  { %4371 = vmatprep.mubr.msk.bf16.mxu0 %vm4890_vm0, %v4889_v1 }
 0x1e9   :  { %v4335_v27 = vpop.f32.mrb[16].mxu0 }
 0x1ea   :  { %v734_v30 = vmul.f32 0.35355338, %v4335_v27  ;;  %v701_v31 = vpop.f32.mrb[17].mxu0 }
 0x1eb   :  { %v732_v33 = vmul.f32 0.35355338, %v701_v31  ;;  %v4336_v34 = vpop.f32.mrb[18].mxu0 }
 0x1ec   :  { %v735_v36 = vmul.f32 0.35355338, %v4336_v34  ;;  %v704_v37 = vpop.f32.mrb[19].mxu0  ;;  %v742_v38 = vadd.f32 %v734_v30, %v99_v29 }
 0x1ed   :  { %v733_v40 = vmul.f32 0.35355338, %v704_v37  ;;  %v740_v41 = vadd.f32 %v732_v33, %v97_v32 }
 0x1ee   :  { %v755_v42 = vsel %vm748_vm3, %v742_v38, -inf  ;;  %v743_v43 = vadd.f32 %v735_v36, %v100_v35 }
 0x1ef   :  { %756 = vmax.xlane.f32.xlu1 %v755_v42  ;;  %v749_v44 = vsel %vm748_vm3, %v740_v41, -inf  ;;  %v741_v46 = vadd.f32 %v733_v40, %v98_v39 }
 0x1f0   :  { %750 = vmax.xlane.f32.xlu0 %v749_v44  ;;  %v758_v50 = vsel %vm748_vm3, %v743_v43, -inf }
 0x1f1   :  { %v4339_v47 = vpop.f32.mrb[20].mxu0  ;;  %v752_v55 = vsel %vm748_vm3, %v741_v46, -inf }
 0x1f2   :  { %v738_v48 = vmul.f32 0.35355338, %v4339_v47  ;;  %v717_v49 = vpop.f32.mrb[21].mxu0 }
 0x1f3   :  { %v736_v53 = vmul.f32 0.35355338, %v717_v49  ;;  %759 = vmax.xlane.f32.xlu1 %v758_v50  ;;  %v4340_v54 = vpop.f32.mrb[22].mxu0 }
 0x1f4   :  { %v739_v57 = vmul.f32 0.35355338, %v4340_v54  ;;  %753 = vmax.xlane.f32.xlu0 %v752_v55  ;;  %v720_v58 = vpop.f32.mrb[23].mxu0  ;;  %v746_v63 = vadd.f32 %v738_v48, %v103_v52 }
 0x1f5   :  { %v737_v60 = vmul.f32 0.35355338, %v720_v58  ;;  %v744_v61 = vadd.f32 %v736_v53, %v101_v51 }
 0x1f6   :  { %v747_v0 = vadd.f32 %v739_v57, %v104_v56  ;;  %v767_v7 = vsel %vm748_vm3, %v746_v63, -inf }
 0x1f7   :  { %v761_v2 = vsel %vm748_vm3, %v744_v61, -inf  ;;  %v745_v5 = vadd.f32 %v737_v60, %v102_v59 }
 0x1f8   :  { %762 = vmax.xlane.f32.xlu0 %v761_v2  ;;  %v770_v6 = vsel %vm748_vm3, %v747_v0, -inf }
 0x1f9   :  { %771 = vmax.xlane.f32.xlu1 %v770_v6  ;;  %v764_v8 = vsel %vm748_vm3, %v745_v5, -inf }
 0x1fc   :  { %768 = vmax.xlane.f32.xlu0 %v767_v7 }
 0x1fd   :  { %765 = vmax.xlane.f32.xlu1 %v764_v8  ;;  %v3900_v8 = vld [vmem:[%s6057_s6 + $0x4] sm:$0xf] }
 0x27c   :  { %v757_v9 = vpop.xlane.xlu1 %756 }
 0x27d   :  { %v775_v10 = vsub.f32 %v742_v38, %v757_v9  ;;  %v751_v11 = vpop.xlane.xlu0 %750 }
 0x27e   :  { %v773_v12 = vsub.f32 %v740_v41, %v751_v11  ;;  %v944_v11 = vsel %vm942_vm4, %v3900_v8, 0 }
 0x27f   :  { %v785_v13 = vmul.f32 1.442695, %v775_v10 }
 0x280   :  { %v781_v14 = vmul.f32 1.442695, %v773_v12  ;;  %v760_v15 = vpop.xlane.xlu1 %759 }
 0x281   :  { %4749 = vpow2.f32 %v785_v13  ;;  %v776_v16 = vsub.f32 %v743_v43, %v760_v15  ;;  %v754_v17 = vpop.xlane.xlu0 %753 }
 0x282   :  { %v774_v19 = vsub.f32 %v741_v46, %v754_v17  ;;  %4751 = vpow2.f32 %v781_v14 }
 0x283   :  { %v787_v20 = vmul.f32 1.442695, %v776_v16 }
 0x284   :  { %v783_v21 = vmul.f32 1.442695, %v774_v19 }
 0x285   :  { %4753 = vpow2.f32 %v787_v20  ;;  %v763_v22 = vpop.xlane.xlu0 %762 }
 0x286   :  { %4755 = vpow2.f32 %v783_v21  ;;  %v777_v23 = vsub.f32 %v744_v61, %v763_v22  ;;  %v772_v41 = vpop.xlane.xlu1 %771 }
 0x287   :  { %v780_v42 = vsub.f32 %v747_v0, %v772_v41 }
 0x288   :  { %v789_v27 = vmul.f32 1.442695, %v777_v23  ;;  %v3903_v23 = vld [vmem:[%s6057_s6 + $0x8] sm:$0xf] }
 0x289   :  { %v769_v24 = vpop.xlane.xlu0 %768  ;;  %v795_v44 = vmul.f32 1.442695, %v780_v42 }
 0x28a   :  { %v779_v25 = vsub.f32 %v746_v63, %v769_v24  ;;  %v766_v43 = vpop.xlane.xlu1 %765  ;;  %v1041_v24 = vsel %vm942_vm4, %v3903_v23, 0 }
 0x28b   :  { %v5227_v26 = vpop.eup %4749  ;;  %v778_v46 = vsub.f32 %v745_v5, %v766_v43  ;;  %4370 = vmatpush3.bf16.msra.mxu0 %v1041_v24 }
 0x28c   :  { %v793_v29 = vmul.f32 1.442695, %v779_v25  ;;  %v803_v30 = vsel %vm748_vm3, %v5227_v26, 0.0  ;;  %v4752_v31 = vpop.eup %4751  ;;  %4381 = vmatprep.subr.bf16.mxu0 %v4889_v1 }
 0x28d   :  { %804 = vadd.xlane.f32.xlu0 %v803_v30  ;;  %v797_v33 = vsel %vm748_vm3, %v4752_v31, 0.0  ;;  %v791_v47 = vmul.f32 1.442695, %v778_v46 }
 0x28e   :  { %4757 = vpow2.f32 %v793_v29 }
 0x28f   :  { %v5231_v32 = vpop.eup %4753  ;;  %4759 = vpow2.f32 %v789_v27 }
 0x290   :  { %v806_v34 = vsel %vm748_vm3, %v5231_v32, 0.0  ;;  %v4756_v35 = vpop.eup %4755  ;;  %4761 = vpow2.f32 %v795_v44 }
 0x291   :  { %798 = vadd.xlane.f32.xlu0 %v797_v33  ;;  %807 = vadd.xlane.f32.xlu1 %v806_v34  ;;  %v800_v36 = vsel %vm748_vm3, %v4756_v35, 0.0  ;;  %4763 = vpow2.f32 %v791_v47 }
 0x295   :  { %801 = vadd.xlane.f32.xlu1 %v800_v36 }
 0x298   :  { %v5237_v37 = vpop.eup %4757 }
 0x299   :  { %v815_v38 = vsel %vm748_vm3, %v5237_v37, 0.0  ;;  %v5241_v39 = vpop.eup %4759 }
 0x29a   :  { %816 = vadd.xlane.f32.xlu0 %v815_v38  ;;  %v809_v40 = vsel %vm748_vm3, %v5241_v39, 0.0  ;;  %v4762_v48 = vpop.eup %4761 }
 0x29b   :  { %v818_v49 = vsel %vm748_vm3, %v4762_v48, 0.0  ;;  %v4764_v50 = vpop.eup %4763 }
 0x29e   :  { %810 = vadd.xlane.f32.xlu0 %v809_v40 }
 0x2a6   :  { %847 = vrot.lane.b32.xlu1 %v5159_v45, %s4891_s5  ;;  %v812_v45 = vsel %vm748_vm3, %v4764_v50, 0.0 }
 0x2aa   :  { %849 = vrot.lane.b32.xlu1 %v5171_v62, %s4891_s5 }
 0x2b4   :  { %845 = vrot.lane.b32.xlu0 %v5146_v28, %s4891_s5 }
 0x2ce   :  { %819 = vadd.xlane.f32.xlu1 %v818_v49 }
 0x2d2   :  { %813 = vadd.xlane.f32.xlu1 %v812_v45 }
 0x2e3   :  { %851 = vrot.lane.b32.xlu1 %v5183_v18, %s4891_s5 }
 0x31a   :  { %v805_v62 = vpop.xlane.xlu0 %804 }
 0x31e   :  { %v799_v28 = vpop.xlane.xlu0 %798  ;;  %v808_v51 = vpop.xlane.xlu1 %807 }
 0x31f   :  { %4765 = vrcp.f32 %v799_v28 }
 0x322   :  { %v802_v52 = vpop.xlane.xlu1 %801 }
 0x323   :  { %4767 = vrcp.f32 %v802_v52 }
 0x324   :  { %4769 = vrcp.f32 %v808_v51 }
 0x325   :  { %4771 = vrcp.f32 %v805_v62 }
 0x326   :  { %v848_v59 = vpop.permute.xlu1 %847 }
 0x327   :  { %v817_v53 = vpop.xlane.xlu0 %816 }
 0x329   :  { %v4766_v54 = vpop.eup %4765 }
 0x32a   :  { %v829_v57 = vmul.f32 %v4766_v54, %v4752_v31  ;;  %v850_v18 = vpop.permute.xlu1 %849 }
 0x32b   :  { %v811_v55 = vpop.xlane.xlu0 %810 }
 0x32d   :  { %v4768_v56 = vpop.eup %4767 }
 0x32e   :  { %v830_v58 = vmul.f32 %v4768_v56, %v4756_v35  ;;  %v4770_v0 = vpop.eup %4769  ;;  %v3905_v35 = vld [vmem:[%s6057_s6 + $0xc] sm:$0xf]  ;;  %v3907_v56 = vld [vmem:[%s6022_s26] ss:$0 sm:$0xff] }
 0x32f   :  { %v846_v60 = vpop.permute.xlu0 %845  ;;  %v4772_v5 = vpop.eup %4771  ;;  %v832_v6 = vmul.f32 %v4770_v0, %v5231_v32  ;;  %v1093_v40 = vsel %vm942_vm4, %v3905_v35, 0 }
 0x330   :  { %4341 = vmatprep.subr.bf16.mxu1 %v846_v60  ;;  %v837_v61 = vpack.c.bf16 %v830_v58, %v829_v57  ;;  %v831_v9 = vmul.f32 %v4772_v5, %v5227_v26  ;;  %v935_v26 = vld [vmem:[%s6057_s6] sm:$0xf] }
 0x331   :  { %4342 = vmatpush3.bf16.msra.mxu1 %v846_v60  ;;  %v991_v32 = vsel %vm942_vm4, %v935_v26, 0 }
 0x332   :  { %4343 = vmatprep.subr.bf16.mxu1 %v848_v59  ;;  %4349 = vmatprep.mubr.msk.bf16.mxu1 %vm748_vm3, %v837_v61  ;;  %v838_v10 = vpack.c.bf16 %v832_v6, %v831_v9 }
 0x335   :  { %4344 = vmatpush3.bf16.msra.mxu1 %v848_v59 }
 0x336   :  { %4345 = vmatprep.subr.bf16.mxu1 %v850_v18 }
 0x339   :  { %4346 = vmatpush3.bf16.msra.mxu1 %v850_v18 }
 0x35b   :  { %v820_v63 = vpop.xlane.xlu1 %819 }
 0x35c   :  { %4773 = vrcp.f32 %v820_v63 }
 0x35d   :  { %4775 = vrcp.f32 %v811_v55 }
 0x35e   :  { %4777 = vrcp.f32 %v817_v53 }
 0x35f   :  { %v814_v2 = vpop.xlane.xlu1 %813 }
 0x360   :  { %4779 = vrcp.f32 %v814_v2 }
 0x363   :  { %v852_v7 = vpop.permute.xlu1 %851 }
 0x364   :  { %4347 = vmatprep.subr.bf16.mxu1 %v852_v7 }
 0x365   :  { %4348 = vmatpush3.bf16.msra.mxu1 %v852_v7 }
 0x366   :  { %4357 = vmatprep.subr.bf16.mxu1 %v4889_v1  ;;  %v4774_v12 = vpop.eup %4773 }
 0x367   :  { %v4776_v13 = vpop.eup %4775  ;;  %v836_v16 = vmul.f32 %v4774_v12, %v4762_v48 }
 0x368   :  { %4350 = vmatmul.mubr.msk.bf16.vlgmr.msra.gmra.mrb[16].mxu1 %vm748_vm3, %v838_v10  ;;  %v4778_v14 = vpop.eup %4777  ;;  %v833_v17 = vmul.f32 %v4776_v13, %v5241_v39 }
 0x369   :  { %4358 = vmatpush3.bf16.msra.mxu1 %v944_v11  ;;  %v835_v20 = vmul.f32 %v4778_v14, %v5237_v37 }
 0x36a   :  { %v4780_v15 = vpop.eup %4779  ;;  %4363 = vmatprep.subr.bf16.mxu1 %v4889_v1 }
 0x36b   :  { %v834_v19 = vmul.f32 %v4780_v15, %v4764_v50  ;;  %v840_v22 = vpack.c.bf16 %v836_v16, %v835_v20  ;;  %v4714_v20 = vld [vmem:[%s6059_s0 + $0x8] sm:$0xff]  }
 0x36d   :  { %v839_v21 = vpack.c.bf16 %v834_v19, %v833_v17  ;;  %v4704_v17 = vld [vmem:[%s6058_s8 + $0x8] sm:$0xff]   ;;  %v4712_v19 = vld [vmem:[%s6059_s0] sm:$0xff]  }
 0x36f   :  { %4353 = vmatprep.mubr.msk.bf16.mxu1 %vm748_vm3, %v839_v21 }
 0x370   :  { %4354 = vmatmul.mubr.msk.bf16.gmra.mrb[20].mxu1 %vm748_vm3, %v840_v22 }
 0x371   :  { %4359 = vmatprep.mubr.msk.bf16.mxu1 %vm4890_vm0, %v4889_v1 }
 0x43b   :  { %v4351_v25 = vpop.f32.mrb[16].mxu1 }
 0x43c   :  { %v903_v27 = vpop.f32.mrb[17].mxu1 }
 0x43d   :  { %v4352_v29 = vpop.f32.mrb[18].mxu1 }
 0x43e   :  { %v936_v30 = vpack.c.bf16 %v4352_v29, %v4351_v25  ;;  %v906_v31 = vpop.f32.mrb[19].mxu1 }
 0x43f   :  { %v934_v33 = vpack.c.bf16 %v906_v31, %v903_v27 }
 0x440   :  { %4360 = vmatmul.mubr.msk.bf16.vlgmr.msra.gmra.mrb[24].mxu1 %vm642_vm2, %v936_v30  ;;  %v3908_v30 = vld [vmem:[%s6022_s26 + $0x1] ss:$0 sm:$0xff] }
 0x441   :  { %4364 = vmatpush3.bf16.msra.mxu1 %v991_v32  ;;  %4365 = vmatprep.mubr.msk.bf16.mxu1 %vm4890_vm0, %v4889_v1 }
 0x442   :  { %4375 = vmatprep.subr.bf16.mxu1 %v4889_v1 }
 0x443   :  { %v4355_v34 = vpop.f32.mrb[20].mxu1 }
 0x444   :  { %v919_v36 = vpop.f32.mrb[21].mxu1 }
 0x445   :  { %v4356_v37 = vpop.f32.mrb[22].mxu1 }
 0x446   :  { %v1086_v38 = vpack.c.bf16 %v4356_v37, %v4355_v34  ;;  %v922_v39 = vpop.f32.mrb[23].mxu1  ;;  %v3909_v34 = vld [vmem:[%s6022_s26 + $0x2] ss:$0 sm:$0xff] }
 0x447   :  { %v1034_v41 = vpack.c.bf16 %v922_v39, %v919_v36 }
 0x448   :  { %4366 = vmatmul.mubr.msk.bf16.vlgmr.msra.gmra.mrb[28].mxu1 %vm642_vm2, %v934_v33 }
 0x449   :  { %4372 = vmatmul.mubr.msk.bf16.vlgmr.msra.gmra.mrb[24].mxu0 %vm642_vm2, %v1034_v41  ;;  %4376 = vmatpush3.bf16.msra.mxu1 %v1093_v40  ;;  %v5347_v41 = vld [vmem:[%s6061_s11] sm:$0xff] }
 0x44a   :  { %4377 = vmatprep.mubr.msk.bf16.mxu1 %vm4890_vm0, %v4889_v1  ;;  %4385 = vmatprep.mubr.msk.bf16.mxu0 %vm4890_vm0, %v4889_v1 }
 0x44b   :  { %4389 = vmatprep.subr.bf16.mxu1 %v4889_v1 }
 0x450   :  { %4378 = vmatmul.mubr.msk.bf16.vlgmr.msra.gmra.mrb[32].mxu1 %vm642_vm2, %v1086_v38 }
 0x451   :  { %4397 = vmatprep.mubr.msk.bf16.mxu1 %vm4890_vm0, %v4889_v1  ;;  %4390 = vmatpush3.bf16.msra.mxu1 %v4712_v19 }
 0x452   :  { %4391 = vmatprep.subr.bf16.mxu1 %v4889_v1 }
 0x455   :  { %4392 = vmatpush3.bf16.msra.mxu1 %v4714_v20 }
 0x456   :  { %4393 = vmatprep.subr.bf16.mxu1 %v4889_v1 }
 0x513   :  { %v980_v42 = vpop.f32.mrb[24].mxu1 }
 0x514   :  { %v4361_v43 = vpop.f32.mrb[25].mxu1 }
 0x515   :  { %v983_v44 = vpop.f32.mrb[26].mxu1 }
 0x516   :  { %v4362_v46 = vpop.f32.mrb[27].mxu1 }
 0x517   :  { %v4708_v46 = vld [vmem:[%s6009_s13 + $0x8] sm:$0xff]  }
 0x51b   :  { %v1027_v47 = vpop.f32.mrb[28].mxu1 }
 0x51c   :  { %v1028_v48 = vadd.f32 %v1027_v47, %v980_v42  ;;  %v4367_v49 = vpop.f32.mrb[29].mxu1  ;;  %v1077_v50 = vpop.f32.mrb[24].mxu0  ;;  %v5352_v42 = vld [vmem:[%s6061_s11 + $0x8] sm:$0xff]  ;;  %v4709_v47 = vld [vmem:[%s6009_s13 + $0x10] sm:$0xff]  }
 0x51d   :  { %v1030_v45 = vpop.f32.mrb[30].mxu1  ;;  %v4373_v62 = vpop.f32.mrb[25].mxu0  ;;  %v5357_v43 = vpack.c.bf16 %v5352_v42, %v5347_v41  ;;  %v4711_v49 = vld [vmem:[%s6009_s13 + $0x20] sm:$0xff]  }
 0x51e   :  { %v1084_v28 = vadd.f32 %v1077_v50, %v1028_v48  ;;  %v1031_v51 = vadd.f32 %v1030_v45, %v983_v44  ;;  %v4368_v52 = vpop.f32.mrb[31].mxu1  ;;  %v1080_v53 = vpop.f32.mrb[26].mxu0  ;;  %v4707_v44 = vld [vmem:[%s6009_s13] sm:$0xff]   ;;  %v4710_v48 = vld [vmem:[%s6009_s13 + $0x18] sm:$0xff]   ;;  %v4713_v50 = vld [vmem:[%s6009_s13 + $0x28] sm:$0xff]  }
 0x51f   :  { %v4374_v54 = vpop.f32.mrb[27].mxu0  ;;  %v4715_v45 = vld [vmem:[%s6009_s13 + $0x30] sm:$0xff]   ;;  %v3910_v52 = vld [vmem:[%s6023_s27] ss:$0 sm:$0xff] }
 0x520   :  { %v1085_v55 = vadd.f32 %v1080_v53, %v1031_v51  ;;  %v4716_v62 = vld [vmem:[%s6059_s0 + $0x10] sm:$0xff]   ;;  %v4718_v51 = vld [vmem:[%s6059_s0 + $0x18] sm:$0xff]  }
 0x521   :  { %4394 = vmatpush3.bf16.msra.mxu1 %v4716_v62 }
 0x522   :  { %4395 = vmatprep.subr.bf16.mxu1 %v4889_v1 }
 0x523   :  { %v1129_v57 = vpop.f32.mrb[32].mxu1 }
 0x524   :  { %v1136_v58 = vadd.f32 %v1129_v57, %v1084_v28  ;;  %v4379_v59 = vpop.f32.mrb[33].mxu1  ;;  %v4717_v28 = vld [vmem:[%s6009_s13 + $0x38] sm:$0xff]   ;;  %s6062_s13 = sld [smem:[#allocation8_spill]] }
 0x525   :  { %v1132_v60 = vpop.f32.mrb[34].mxu1  ;;  %4396 = vmatpush3.bf16.msra.mxu1 %v4718_v51 }
 0x526   :  { %v1142_v61 = vadd.f32 %v3907_v56, %v1136_v58  ;;  %v1137_v18 = vadd.f32 %v1132_v60, %v1085_v55  ;;  %v4380_v63 = vpop.f32.mrb[35].mxu1  ;;  %4417 = vmatprep.subr.bf16.mxu1 %v4889_v1 }
 0x528   :  { %v1143_v0 = vadd.f32 %v3907_v56, %v1137_v18  ;;  %v1144_v2 = vadd.f32 %v1142_v61, %v5053_v3  ;;  %v3922_v18 = vld [vmem:[%s6010_s14] ss:$0 sm:$0xff] }
 0x52a   :  { %v1148_v5 = vsel %vm129_vm1, %v1144_v2, 0.0  ;;  %v1145_v6 = vadd.f32 %v1143_v0, %v5058_v4  ;;  %v4703_v4 = vld [vmem:[%s6058_s8] sm:$0xff]   ;;  %s6060_s8 = sld [smem:[#allocation17_spill]] }
 0x52b   :  { %1149 = vadd.xlane.f32.xlu0 %v1148_v5  ;;  %4382 = vmatpush3.bf16.msra.mxu0 %v4703_v4 }
 0x52c   :  { %v1151_v7 = vsel %vm129_vm1, %v1145_v6, 0.0  ;;  %4383 = vmatprep.subr.bf16.mxu0 %v4889_v1 }
 0x52d   :  { %1152 = vadd.xlane.f32.xlu1 %v1151_v7 }
 0x52f   :  { %4384 = vmatpush3.bf16.msra.mxu0 %v4704_v17 }
 0x530   :  { %4401 = vmatprep.subr.bf16.mxu0 %v4889_v1  ;;  %v4705_v38 = vld [vmem:[%s6060_s8] sm:$0xff]   ;;  %v4706_v40 = vld [vmem:[%s6060_s8 + $0x8] sm:$0xff]   ;;  %v4719_v61 = vld [vmem:[%s6060_s8 + $0x10] sm:$0xff]  }
 0x531   :  { %v4723_v20 = vld [vmem:[%s6060_s8 + $0x30] sm:$0xff]  }
 0x5b8   :  { %v1150_v8 = vpop.xlane.xlu0 %1149 }
 0x5b9   :  { %v1155_v9 = vmul.f32 0.03125, %v1150_v8 }
 0x5ba   :  { %v1153_v10 = vpop.xlane.xlu1 %1152 }
 0x5bb   :  { %v1157_v11 = vsub.f32 %v1144_v2, %v1155_v9  ;;  %v1156_v12 = vmul.f32 0.03125, %v1153_v10 }
 0x5bd   :  { %v1158_v13 = vsub.f32 %v1145_v6, %v1156_v12  ;;  %v1159_v14 = vmul.f32 %v1157_v11, %v1157_v11  ;;  %v4720_v6 = vld [vmem:[%s6060_s8 + $0x18] sm:$0xff]   ;;  %v3926_v12 = vld [vmem:[%s6011_s15] ss:$0 sm:$0xff] }
 0x5bf   :  { %v1161_v15 = vsel %vm129_vm1, %v1159_v14, 0.0  ;;  %v1160_v16 = vmul.f32 %v1158_v13, %v1158_v13 }
 0x5c0   :  { %1162 = vadd.xlane.f32.xlu0 %v1161_v15 }
 0x5c1   :  { %v1164_v3 = vsel %vm129_vm1, %v1160_v16, 0.0  ;;  %v4722_v16 = vld [vmem:[%s6060_s8 + $0x28] sm:$0xff]  }
 0x5c4   :  { %1165 = vadd.xlane.f32.xlu0 %v1164_v3 }
 0x64d   :  { %v1163_v21 = vpop.xlane.xlu0 %1162 }
 0x64e   :  { %v1167_v22 = vmul.f32 0.03125, %v1163_v21  ;;  %v3944_v21 = vld [vmem:[%s6011_s15 + $0x1] ss:$0 sm:$0xff] }
 0x650   :  { %v1169_v23 = vadd.f32 1e-05, %v1167_v22 }
 0x651   :  { %v1166_v24 = vpop.xlane.xlu0 %1165 }
 0x652   :  { %4781 = vrsqrt.f32 %v1169_v23  ;;  %v1168_v25 = vmul.f32 0.03125, %v1166_v24 }
 0x654   :  { %v1170_v26 = vadd.f32 1e-05, %v1168_v25  ;;  %v4724_v25 = vld [vmem:[%s6060_s8 + $0x38] sm:$0xff]  }
 0x656   :  { %4783 = vrsqrt.f32 %v1170_v26 }
 0x65c   :  { %v4782_v27 = vpop.eup %4781 }
 0x65d   :  { %v1173_v29 = vmul.f32 %v4782_v27, %v1157_v11  ;;  %v4721_v11 = vld [vmem:[%s6060_s8 + $0x20] sm:$0xff]  }
 0x65f   :  { %v1179_v32 = vmul.f32 %v3908_v30, %v1173_v29 }
 0x660   :  { %v4784_v31 = vpop.eup %4783 }
 0x661   :  { %v1174_v33 = vmul.f32 %v4784_v31, %v1158_v13  ;;  %v5329_v36 = vadd.f32 %v3909_v34, %v1179_v32  ;;  %v3962_v31 = vld [vmem:[%s6011_s15 + $0x2] ss:$0 sm:$0xff] }
 0x663   :  { %v1180_v35 = vmul.f32 %v3908_v30, %v1174_v33 }
 0x665   :  { %v5331_v37 = vadd.f32 %v3909_v34, %v1180_v35 }
 0x667   :  { %v1189_v39 = vpack.c.bf16 %v5331_v37, %v5329_v36 }
 0x669   :  { %4386 = vmatmul.mubr.msk.bf16.vlgmr.msra.gmra.mrb[28].mxu0 %vm129_vm1, %v1189_v39 }
 0x66a   :  { %4402 = vmatpush3.bf16.msra.mxu0 %v4705_v38  ;;  %4405 = vmatprep.mubr.msk.bf16.mxu0 %vm4890_vm0, %v4889_v1 }
 0x66b   :  { %4403 = vmatprep.subr.bf16.mxu0 %v4889_v1 }
 0x66e   :  { %4404 = vmatpush3.bf16.msra.mxu0 %v4706_v40 }
 0x66f   :  { %4409 = vmatprep.subr.bf16.mxu0 %v4889_v1 }
 0x671   :  { %4406 = vmatmul.mubr.msk.bf16.vlgmr.msra.gmra.mrb[32].mxu0 %vm129_vm1, %v5357_v43 }
 0x672   :  { %4410 = vmatpush3.bf16.msra.mxu0 %v4707_v44  ;;  %4413 = vmatprep.mubr.msk.bf16.mxu0 %vm4890_vm0, %v4889_v1 }
 0x673   :  { %4411 = vmatprep.subr.bf16.mxu0 %v4889_v1 }
 0x676   :  { %4412 = vmatpush3.bf16.msra.mxu0 %v4708_v46 }
 0x677   :  { %4425 = vmatprep.subr.bf16.mxu0 %v4889_v1 }
 0x679   :  { %4414 = vmatmul.mubr.msk.bf16.vlgmr.msra.gmra.mrb[36].mxu0 %vm129_vm1, %v5357_v43 }
 0x67a   :  { %4426 = vmatpush3.bf16.msra.mxu0 %v4709_v47  ;;  %4429 = vmatprep.mubr.msk.bf16.mxu0 %vm4890_vm0, %v4889_v1  ;;  %v3980_v47 = vld [vmem:[%s6011_s15 + $0x3] ss:$0 sm:$0xff]  ;;  %s6063_s15 = sld [smem:[#allocation9_spill]] }
 0x67b   :  { %4427 = vmatprep.subr.bf16.mxu0 %v4889_v1 }
 0x67e   :  { %4428 = vmatpush3.bf16.msra.mxu0 %v4710_v48 }
 0x67f   :  { %4441 = vmatprep.subr.bf16.mxu0 %v4889_v1 }
 0x681   :  { %4430 = vmatmul.mubr.msk.bf16.vlgmr.msra.gmra.mrb[40].mxu0 %vm129_vm1, %v5357_v43 }
 0x682   :  { %4442 = vmatpush3.bf16.msra.mxu0 %v4711_v49  ;;  %4445 = vmatprep.mubr.msk.bf16.mxu0 %vm4890_vm0, %v4889_v1 }
 0x683   :  { %4443 = vmatprep.subr.bf16.mxu0 %v4889_v1 }
 0x686   :  { %4444 = vmatpush3.bf16.msra.mxu0 %v4713_v50 }
 0x687   :  { %4457 = vmatprep.subr.bf16.mxu0 %v4889_v1 }
 0x689   :  { %4446 = vmatmul.mubr.msk.bf16.vlgmr.msra.gmra.mrb[44].mxu0 %vm129_vm1, %v5357_v43 }
 0x68a   :  { %4461 = vmatprep.mubr.msk.bf16.mxu0 %vm4890_vm0, %v4889_v1  ;;  %4458 = vmatpush3.bf16.msra.mxu0 %v4715_v45 }
 0x68b   :  { %4459 = vmatprep.subr.bf16.mxu0 %v4889_v1 }
 0x68e   :  { %4460 = vmatpush3.bf16.msra.mxu0 %v4717_v28 }
 0x691   :  { %4462 = vmatmul.mubr.msk.bf16.vlgmr.msra.gmra.mrb[48].mxu0 %vm129_vm1, %v5357_v43 }
 0x73c   :  { %v1247_v53 = vpop.f32.mrb[28].mxu0 }
 0x73d   :  { %v1248_v54 = vadd.f32 %v3910_v52, %v1247_v53  ;;  %v4387_v55 = vpop.f32.mrb[29].mxu0 }
 0x73e   :  { %v1250_v56 = vpop.f32.mrb[30].mxu0 }
 0x73f   :  { %v1251_v57 = vadd.f32 %v3910_v52, %v1250_v56  ;;  %v4388_v58 = vpop.f32.mrb[31].mxu0  ;;  %v1254_v59 = vmax.f32 %v1248_v54, 0.0 }
 0x741   :  { %v1255_v60 = vmax.f32 %v1251_v57, 0.0  ;;  %v3935_v57 = vld [vmem:[%s6010_s14 + $0x1] ss:$0 sm:$0xff] }
 0x743   :  { %v1256_v63 = vpack.c.bf16 %v1255_v60, %v1254_v59 }
 0x744   :  { %v1449_v0 = vpop.f32.mrb[32].mxu0 }
 0x745   :  { %4398 = vmatmul.mubr.msk.bf16.vlgmr.msra.gmra.mrb[36].mxu1 %vm748_vm3, %v1256_v63  ;;  %v1450_v2 = vadd.f32 %v3922_v18, %v1449_v0  ;;  %v4407_v5 = vpop.f32.mrb[33].mxu0 }
 0x746   :  { %4418 = vmatpush3.bf16.msra.mxu1 %v4719_v61  ;;  %4421 = vmatprep.mubr.msk.bf16.mxu1 %vm4890_vm0, %v4889_v1  ;;  %v1452_v7 = vpop.f32.mrb[34].mxu0 }
 0x747   :  { %4419 = vmatprep.subr.bf16.mxu1 %v4889_v1  ;;  %v1453_v8 = vadd.f32 %v3922_v18, %v1452_v7  ;;  %v4408_v9 = vpop.f32.mrb[35].mxu0 }
 0x749   :  { %v1916_v10 = vpack.c.bf16 %v1453_v8, %v1450_v2  ;;  %v3953_v2 = vld [vmem:[%s6010_s14 + $0x2] ss:$0 sm:$0xff] }
 0x74a   :  { %4420 = vmatpush3.bf16.msra.mxu1 %v4720_v6 }
 0x74b   :  { %4433 = vmatprep.subr.bf16.mxu1 %v4889_v1 }
 0x74c   :  { %v1513_v13 = vpop.f32.mrb[36].mxu0 }
 0x74d   :  { %4422 = vmatmul.mubr.msk.bf16.vlgmr.msra.gmra.mrb[40].mxu1 %vm129_vm1, %v5357_v43  ;;  %v1514_v14 = vadd.f32 %v3926_v12, %v1513_v13  ;;  %v4415_v15 = vpop.f32.mrb[37].mxu0 }
 0x74e   :  { %4434 = vmatpush3.bf16.msra.mxu1 %v4721_v11  ;;  %4437 = vmatprep.mubr.msk.bf16.mxu1 %vm4890_vm0, %v4889_v1  ;;  %v1516_v3 = vpop.f32.mrb[38].mxu0 }
 0x74f   :  { %4435 = vmatprep.subr.bf16.mxu1 %v4889_v1  ;;  %v1517_v4 = vadd.f32 %v3926_v12, %v1516_v3  ;;  %v4416_v17 = vpop.f32.mrb[39].mxu0  ;;  %v3971_v12 = vld [vmem:[%s6010_s14 + $0x3] ss:$0 sm:$0xff] }
 0x751   :  { %v5448_v19 = vpack.c.bf16 %v1517_v4, %v1514_v14 }
 0x752   :  { %4436 = vmatpush3.bf16.msra.mxu1 %v4722_v16 }
 0x753   :  { %4449 = vmatprep.subr.bf16.mxu1 %v4889_v1  ;;  %v1937_v40 = vsel %vm642_vm2, %v5448_v19, 0 }
 0x754   :  { %v1645_v22 = vpop.f32.mrb[40].mxu0 }
 0x755   :  { %4438 = vmatmul.mubr.msk.bf16.vlgmr.msra.gmra.mrb[44].mxu1 %vm129_vm1, %v5357_v43  ;;  %v1646_v23 = vadd.f32 %v3944_v21, %v1645_v22  ;;  %v4431_v24 = vpop.f32.mrb[41].mxu0  ;;  %v1380_v22 = vld [vmem:[%s6062_s13] sm:$0xff] }
 0x756   :  { %4450 = vmatpush3.bf16.msra.mxu1 %v4723_v20  ;;  %4453 = vmatprep.mubr.msk.bf16.mxu1 %vm4890_vm0, %v4889_v1  ;;  %v1648_v26 = vpop.f32.mrb[42].mxu0 }
 0x757   :  { %4451 = vmatprep.subr.bf16.mxu1 %v4889_v1  ;;  %v1649_v27 = vadd.f32 %v3944_v21, %v1648_v26  ;;  %v4432_v29 = vpop.f32.mrb[43].mxu0 }
 0x758   :  { %v1382_v29 = vld [vmem:[%s6062_s13 + $0x10] sm:$0xff] }
 0x759   :  { %v5465_v30 = vpack.c.bf16 %v1649_v27, %v1646_v23  ;;  %v1381_v27 = vld [vmem:[%s6062_s13 + $0x8] sm:$0xff] }
 0x75a   :  { %4452 = vmatpush3.bf16.msra.mxu1 %v4724_v25 }
 0x75b   :  { %4673 = vmatprep.subr.msk.bf16.mxu1 %vm642_vm2, %v5448_v19  ;;  %v1940_v46 = vsel %vm642_vm2, %v5465_v30, 0 }
 0x75c   :  { %v1777_v32 = vpop.f32.mrb[44].mxu0 }
 0x75d   :  { %4454 = vmatmul.mubr.msk.bf16.vlgmr.msra.gmra.mrb[48].mxu1 %vm129_vm1, %v5357_v43  ;;  %v1778_v33 = vadd.f32 %v3962_v31, %v1777_v32  ;;  %v4447_v34 = vpop.f32.mrb[45].mxu0 }
 0x75e   :  { %4473 = vmatprep.mubr.msk.bf16.mxu1 %vm642_vm2, %v1916_v10  ;;  %v1780_v35 = vpop.f32.mrb[46].mxu0  ;;  %v1383_v34 = vld [vmem:[%s6062_s13 + $0x18] sm:$0xff] }
 0x75f   :  { %v1781_v38 = vadd.f32 %v3962_v31, %v1780_v35  ;;  %v4448_v39 = vpop.f32.mrb[47].mxu0 }
 0x761   :  { %v5477_v44 = vpack.c.bf16 %v1781_v38, %v1778_v33 }
 0x763   :  { %4466 = vmatpush3.bf16.xpose.msra.mxu1 %v1937_v40  ;;  %v1943_v43 = vsel %vm642_vm2, %v5477_v44, 0 }
 0x764   :  { %4674 = vmatprep.subr.msk.bf16.mxu1 %vm642_vm2, %v5465_v30  ;;  %v1909_v48 = vpop.f32.mrb[48].mxu0 }
 0x765   :  { %v1910_v49 = vadd.f32 %v3980_v47, %v1909_v48  ;;  %v4463_v50 = vpop.f32.mrb[49].mxu0 }
 0x766   :  { %v1912_v45 = vpop.f32.mrb[50].mxu0 }
 0x767   :  { %v1913_v62 = vadd.f32 %v3980_v47, %v1912_v45  ;;  %v4464_v28 = vpop.f32.mrb[51].mxu0  ;;  %v1384_v45 = vld [vmem:[%s6062_s13 + $0x20] sm:$0xff] }
 0x769   :  { %v5490_v51 = vpack.c.bf16 %v1913_v62, %v1910_v49  ;;  %v1386_v62 = vld [vmem:[%s6062_s13 + $0x30] sm:$0xff] }
 0x76b   :  { %4468 = vmatpush3.bf16.xpose.msra.mxu1 %v1940_v46  ;;  %v1946_v52 = vsel %vm642_vm2, %v5490_v51, 0 }
 0x76c   :  { %4675 = vmatprep.subr.msk.bf16.mxu1 %vm642_vm2, %v5477_v44 }
 0x773   :  { %4470 = vmatpush3.bf16.xpose.msra.mxu1 %v1943_v43 }
 0x774   :  { %4676 = vmatprep.subr.msk.bf16.mxu1 %vm642_vm2, %v5490_v51 }
 0x77b   :  { %4472 = vmatpush3.bf16.xpose.msra.mxu1 %v1946_v52 }
 0x77c   :  { %4509 = vmatprep.subr.bf16.mxu1 %v4889_v1 }
 0x818   :  { %v5497_v53 = vpop.f32.mrb[36].mxu1 }
 0x819   :  { %v4399_v54 = vpop.f32.mrb[37].mxu1 }
 0x81a   :  { %v5499_v55 = vpop.f32.mrb[38].mxu1  ;;  %v1387_v54 = vld [vmem:[%s6062_s13 + $0x38] sm:$0xff] }
 0x81b   :  { %v4400_v56 = vpop.f32.mrb[39].mxu1 }
 0x820   :  { %v1579_v58 = vpop.f32.mrb[40].mxu1 }
 0x821   :  { %v4423_v59 = vpop.f32.mrb[41].mxu1  ;;  %v1580_v61 = vadd.f32 %v3935_v57, %v1579_v58  ;;  %v1385_v58 = vld [vmem:[%s6062_s13 + $0x28] sm:$0xff] }
 0x822   :  { %v1582_v60 = vpop.f32.mrb[42].mxu1 }
 0x823   :  { %v1583_v18 = vadd.f32 %v3935_v57, %v1582_v60  ;;  %v4424_v63 = vpop.f32.mrb[43].mxu1 }
 0x825   :  { %v1917_v0 = vpack.c.bf16 %v1583_v18, %v1580_v61 }
 0x827   :  { %4474 = vmatmul.mubr.msk.bf16.vlgmr.msra.gmra.mrb[52].mxu1 %vm642_vm2, %v1917_v0 }
 0x828   :  { %v1711_v5 = vpop.f32.mrb[44].mxu1 }
 0x829   :  { %v1712_v6 = vadd.f32 %v3953_v2, %v1711_v5  ;;  %v4439_v7 = vpop.f32.mrb[45].mxu1 }
 0x82a   :  { %v1714_v8 = vpop.f32.mrb[46].mxu1 }
 0x82b   :  { %v1715_v9 = vadd.f32 %v3953_v2, %v1714_v8  ;;  %v4440_v10 = vpop.f32.mrb[47].mxu1 }
 0x82d   :  { %v1918_v11 = vpack.c.bf16 %v1715_v9, %v1712_v6 }
 0x82f   :  { %4477 = vmatprep.mubr.msk.bf16.mxu1 %vm642_vm2, %v1918_v11 }
 0x830   :  { %v1843_v13 = vpop.f32.mrb[48].mxu1 }
 0x831   :  { %v1844_v14 = vadd.f32 %v3971_v12, %v1843_v13  ;;  %v4455_v15 = vpop.f32.mrb[49].mxu1 }
 0x832   :  { %v1846_v16 = vpop.f32.mrb[50].mxu1 }
 0x833   :  { %v1847_v3 = vadd.f32 %v3971_v12, %v1846_v16  ;;  %v4456_v4 = vpop.f32.mrb[51].mxu1 }
 0x835   :  { %v1919_v17 = vpack.c.bf16 %v1847_v3, %v1844_v14 }
 0x837   :  { %4478 = vmatmul.mubr.msk.bf16.gmra.mrb[56].mxu1 %vm642_vm2, %v1919_v17 }
 0x838   :  { %4511 = vmatprep.mubr.msk.bf16.mxu1 %vm4890_vm0, %v4889_v1 }
 0x8fa   :  { %v4475_v20 = vpop.f32.mrb[52].mxu1 }
 0x8fb   :  { %v1982_v21 = vpop.f32.mrb[53].mxu1  ;;  %v2015_v23 = vmul.f32 0.35355338, %v4475_v20 }
 0x8fc   :  { %v2013_v24 = vmul.f32 0.35355338, %v1982_v21  ;;  %v4476_v25 = vpop.f32.mrb[54].mxu1 }
 0x8fd   :  { %v1985_v26 = vpop.f32.mrb[55].mxu1  ;;  %v2016_v31 = vmul.f32 0.35355338, %v4476_v25  ;;  %v2023_v39 = vadd.f32 %v2015_v23, %v1382_v29 }
 0x8fe   :  { %v2014_v32 = vmul.f32 0.35355338, %v1985_v26  ;;  %v2021_v33 = vadd.f32 %v2013_v24, %v1380_v22 }
 0x8ff   :  { %v2024_v46 = vadd.f32 %v2016_v31, %v1383_v34  ;;  %v2035_v43 = vsel %vm748_vm3, %v2023_v39, -inf }
 0x900   :  { %v2029_v35 = vsel %vm748_vm3, %v2021_v33, -inf  ;;  %v2022_v38 = vadd.f32 %v2014_v32, %v1381_v27 }
 0x901   :  { %2030 = vmax.xlane.f32.xlu0 %v2029_v35  ;;  %v2038_v47 = vsel %vm748_vm3, %v2024_v46, -inf }
 0x902   :  { %v2032_v40 = vsel %vm748_vm3, %v2022_v38, -inf }
 0x903   :  { %2033 = vmax.xlane.f32.xlu1 %v2032_v40 }
 0x905   :  { %2036 = vmax.xlane.f32.xlu0 %v2035_v43 }
 0x907   :  { %2039 = vmax.xlane.f32.xlu1 %v2038_v47 }
 0x90a   :  { %v4479_v48 = vpop.f32.mrb[56].mxu1 }
 0x90b   :  { %v2019_v49 = vmul.f32 0.35355338, %v4479_v48  ;;  %v1998_v50 = vpop.f32.mrb[57].mxu1 }
 0x90c   :  { %v2017_v28 = vmul.f32 0.35355338, %v1998_v50  ;;  %v4480_v52 = vpop.f32.mrb[58].mxu1 }
 0x90d   :  { %v2020_v56 = vmul.f32 0.35355338, %v4480_v52  ;;  %v2001_v57 = vpop.f32.mrb[59].mxu1  ;;  %v2027_v61 = vadd.f32 %v2019_v49, %v1386_v62  ;;  %v3914_v62 = vld [vmem:[%s6022_s26 + $0x3] ss:$0 sm:$0xff] }
 0x90e   :  { %v2018_v59 = vmul.f32 0.35355338, %v2001_v57  ;;  %v2025_v60 = vadd.f32 %v2017_v28, %v1384_v45 }
 0x90f   :  { %v2028_v18 = vadd.f32 %v2020_v56, %v1387_v54  ;;  %v2047_v5 = vsel %vm748_vm3, %v2027_v61, -inf  ;;  %v1334_v56 = vadd.f32 %v3914_v62, %v5499_v55 }
 0x910   :  { %v2041_v63 = vsel %vm748_vm3, %v2025_v60, -inf  ;;  %v2026_v0 = vadd.f32 %v2018_v59, %v1385_v58 }
 0x911   :  { %2042 = vmax.xlane.f32.xlu0 %v2041_v63  ;;  %v2050_v2 = vsel %vm748_vm3, %v2028_v18, -inf  ;;  %v1338_v57 = vadd.f32 %v1334_v56, %v5331_v37 }
 0x912   :  { %2051 = vmax.xlane.f32.xlu1 %v2050_v2  ;;  %v2044_v6 = vsel %vm748_vm3, %v2026_v0, -inf }
 0x913   :  { %v1344_v58 = vsel %vm129_vm1, %v1338_v57, 0.0 }
 0x915   :  { %2048 = vmax.xlane.f32.xlu0 %v2047_v5 }
 0x916   :  { %2045 = vmax.xlane.f32.xlu1 %v2044_v6 }
 0x98e   :  { %v2031_v7 = vpop.xlane.xlu0 %2030 }
 0x98f   :  { %v2053_v8 = vsub.f32 %v2021_v33, %v2031_v7 }
 0x990   :  { %v2034_v9 = vpop.xlane.xlu1 %2033 }
 0x991   :  { %v2054_v11 = vsub.f32 %v2022_v38, %v2034_v9  ;;  %v2061_v13 = vmul.f32 1.442695, %v2053_v8 }
 0x992   :  { %v2037_v10 = vpop.xlane.xlu0 %2036 }
 0x993   :  { %v2055_v12 = vsub.f32 %v2023_v39, %v2037_v10  ;;  %v2063_v3 = vmul.f32 1.442695, %v2054_v11 }
 0x994   :  { %v2040_v14 = vpop.xlane.xlu1 %2039 }
 0x995   :  { %v2065_v15 = vmul.f32 1.442695, %v2055_v12  ;;  %v2056_v16 = vsub.f32 %v2024_v46, %v2040_v14 }
 0x997   :  { %4785 = vpow2.f32 %v2065_v15  ;;  %v2067_v4 = vmul.f32 1.442695, %v2056_v16 }
 0x998   :  { %4787 = vpow2.f32 %v2061_v13 }
 0x999   :  { %4789 = vpow2.f32 %v2067_v4 }
 0x99a   :  { %4791 = vpow2.f32 %v2063_v3 }
 0x99e   :  { %v2043_v17 = vpop.xlane.xlu0 %2042 }
 0x99f   :  { %v2057_v21 = vsub.f32 %v2025_v60, %v2043_v17  ;;  %v2052_v46 = vpop.xlane.xlu1 %2051 }
 0x9a0   :  { %v2060_v43 = vsub.f32 %v2028_v18, %v2052_v46 }
 0x9a1   :  { %v5547_v20 = vpop.eup %4785  ;;  %v2069_v31 = vmul.f32 1.442695, %v2057_v21 }
 0x9a2   :  { %v4788_v22 = vpop.eup %4787  ;;  %v2049_v23 = vpop.xlane.xlu0 %2048  ;;  %v2083_v24 = vsel %vm748_vm3, %v5547_v20, 0.0  ;;  %v2075_v48 = vmul.f32 1.442695, %v2060_v43 }
 0x9a3   :  { %v5551_v25 = vpop.eup %4789  ;;  %v2059_v26 = vsub.f32 %v2027_v61, %v2049_v23  ;;  %2084 = vadd.xlane.f32.xlu0 %v2083_v24  ;;  %v2077_v33 = vsel %vm748_vm3, %v4788_v22, 0.0  ;;  %v2046_v47 = vpop.xlane.xlu1 %2045 }
 0x9a4   :  { %v2086_v27 = vsel %vm748_vm3, %v5551_v25, 0.0  ;;  %v4792_v29 = vpop.eup %4791  ;;  %v2058_v49 = vsub.f32 %v2026_v0, %v2046_v47 }
 0x9a5   :  { %v2073_v32 = vmul.f32 1.442695, %v2059_v26  ;;  %2087 = vadd.xlane.f32.xlu1 %v2086_v27  ;;  %v2080_v34 = vsel %vm748_vm3, %v4792_v29, 0.0 }
 0x9a6   :  { %v2071_v50 = vmul.f32 1.442695, %v2058_v49 }
 0x9a7   :  { %4793 = vpow2.f32 %v2073_v32  ;;  %2078 = vadd.xlane.f32.xlu0 %v2077_v33  ;;  %v3992_v32 = vld [vmem:[%s6012_s16 + $0x4] sm:$0xf] }
 0x9a8   :  { %4795 = vpow2.f32 %v2069_v31  ;;  %v2223_v33 = vsel %vm942_vm4, %v3992_v32, 0 }
 0x9a9   :  { %2081 = vadd.xlane.f32.xlu1 %v2080_v34  ;;  %4797 = vpow2.f32 %v2075_v48  ;;  %v3995_v34 = vld [vmem:[%s6012_s16 + $0x8] sm:$0xf] }
 0x9aa   :  { %4799 = vpow2.f32 %v2071_v50 }
 0x9b1   :  { %v5557_v35 = vpop.eup %4793 }
 0x9b2   :  { %v2095_v38 = vsel %vm748_vm3, %v5557_v35, 0.0  ;;  %v5561_v39 = vpop.eup %4795 }
 0x9b3   :  { %2096 = vadd.xlane.f32.xlu0 %v2095_v38  ;;  %v2089_v40 = vsel %vm748_vm3, %v5561_v39, 0.0  ;;  %v4798_v45 = vpop.eup %4797 }
 0x9b4   :  { %v4800_v28 = vpop.eup %4799 }
 0x9b5   :  { %v2092_v52 = vsel %vm748_vm3, %v4800_v28, 0.0 }
 0x9b7   :  { %2090 = vadd.xlane.f32.xlu0 %v2089_v40 }
 0x9ba   :  { %2127 = vrot.lane.b32.xlu1 %v5465_v30, %s4891_s5  ;;  %v2098_v30 = vsel %vm748_vm3, %v4798_v45, 0.0 }
 0x9be   :  { %2129 = vrot.lane.b32.xlu1 %v5477_v44, %s4891_s5  ;;  %v1331_v44 = vadd.f32 %v3914_v62, %v5497_v53 }
 0x9cd   :  { %2125 = vrot.lane.b32.xlu0 %v5448_v19, %s4891_s5  ;;  %v5578_v19 = vadd.f32 %v1331_v44, %v5329_v36 }
 0x9cf   :  { %v1341_v54 = vsel %vm129_vm1, %v5578_v19, 0.0 }
 0x9e2   :  { %2099 = vadd.xlane.f32.xlu1 %v2098_v30 }
 0x9e6   :  { %2093 = vadd.xlane.f32.xlu1 %v2092_v52 }
 0x9ec   :  { %1342 = vadd.xlane.f32.xlu0 %v1341_v54 }
 0x9f7   :  { %2131 = vrot.lane.b32.xlu1 %v5490_v51, %s4891_s5 }
 0xa1b   :  { %1345 = vadd.xlane.f32.xlu1 %v1344_v58 }
 0xa30   :  { %v2085_v53 = vpop.xlane.xlu0 %2084 }
 0xa32   :  { %v2088_v59 = vpop.xlane.xlu1 %2087 }
 0xa34   :  { %v2079_v60 = vpop.xlane.xlu0 %2078 }
 0xa35   :  { %4801 = vrcp.f32 %v2079_v60 }
 0xa36   :  { %v2082_v36 = vpop.xlane.xlu1 %2081 }
 0xa37   :  { %4803 = vrcp.f32 %v2082_v36 }
 0xa38   :  { %4805 = vrcp.f32 %v2088_v59 }
 0xa39   :  { %4807 = vrcp.f32 %v2085_v53 }
 0xa3a   :  { %v2128_v55 = vpop.permute.xlu1 %2127 }
 0xa3e   :  { %v2130_v6 = vpop.permute.xlu1 %2129 }
 0xa3f   :  { %v4802_v61 = vpop.eup %4801 }
 0xa40   :  { %v2097_v18 = vpop.xlane.xlu0 %2096  ;;  %v2109_v0 = vmul.f32 %v4802_v61, %v4788_v22 }
 0xa41   :  { %v4804_v63 = vpop.eup %4803 }
 0xa42   :  { %v2110_v2 = vmul.f32 %v4804_v63, %v4792_v29  ;;  %v4806_v8 = vpop.eup %4805 }
 0xa43   :  { %v4808_v10 = vpop.eup %4807  ;;  %v2112_v11 = vmul.f32 %v4806_v8, %v5551_v25 }
 0xa44   :  { %v2091_v5 = vpop.xlane.xlu0 %2090  ;;  %v2117_v51 = vpack.c.bf16 %v2110_v2, %v2109_v0  ;;  %v2111_v13 = vmul.f32 %v4808_v10, %v5547_v20 }
 0xa46   :  { %4489 = vmatprep.mubr.msk.bf16.mxu0 %vm748_vm3, %v2117_v51  ;;  %v2118_v14 = vpack.c.bf16 %v2112_v11, %v2111_v13 }
 0xa48   :  { %v2126_v37 = vpop.permute.xlu0 %2125 }
 0xa49   :  { %4481 = vmatprep.subr.bf16.mxu0 %v2126_v37 }
 0xa4a   :  { %4482 = vmatpush3.bf16.msra.mxu0 %v2126_v37 }
 0xa4b   :  { %4483 = vmatprep.subr.bf16.mxu0 %v2128_v55 }
 0xa4e   :  { %4484 = vmatpush3.bf16.msra.mxu0 %v2128_v55 }
 0xa4f   :  { %4485 = vmatprep.subr.bf16.mxu0 %v2130_v6 }
 0xa52   :  { %4486 = vmatpush3.bf16.msra.mxu0 %v2130_v6 }
 0xa6f   :  { %v2100_v7 = vpop.xlane.xlu1 %2099 }
 0xa70   :  { %4809 = vrcp.f32 %v2100_v7  ;;  %v3999_v7 = vld [vmem:[%s6022_s26 + $0x6] ss:$0 sm:$0xff] }
 0xa71   :  { %4811 = vrcp.f32 %v2091_v5 }
 0xa72   :  { %4813 = vrcp.f32 %v2097_v18 }
 0xa73   :  { %v2094_v9 = vpop.xlane.xlu1 %2093 }
 0xa74   :  { %4815 = vrcp.f32 %v2094_v9 }
 0xa77   :  { %v2132_v12 = vpop.permute.xlu1 %2131 }
 0xa78   :  { %4487 = vmatprep.subr.bf16.mxu0 %v2132_v12 }
 0xa79   :  { %4488 = vmatpush3.bf16.msra.mxu0 %v2132_v12  ;;  %v1343_v6 = vpop.xlane.xlu0 %1342 }
 0xa7a   :  { %4497 = vmatprep.subr.bf16.mxu0 %v4889_v1  ;;  %v4810_v15 = vpop.eup %4809  ;;  %v1347_v12 = vmul.f32 0.03125, %v1343_v6  ;;  %v4000_v6 = vld [vmem:[%s6022_s26 + $0x7] ss:$0 sm:$0xff] }
 0xa7b   :  { %v4812_v16 = vpop.eup %4811  ;;  %v2116_v17 = vmul.f32 %v4810_v15, %v4798_v45  ;;  %v3997_v45 = vld [vmem:[%s6012_s16 + $0xc] sm:$0xf] }
 0xa7c   :  { %4490 = vmatmul.mubr.msk.bf16.vlgmr.msra.gmra.mrb[52].mxu0 %vm748_vm3, %v2118_v14  ;;  %v4814_v3 = vpop.eup %4813  ;;  %v2113_v21 = vmul.f32 %v4812_v16, %v5561_v39  ;;  %v2215_v39 = vld [vmem:[%s6012_s16] sm:$0xf]  ;;  %v2372_v52 = vsel %vm942_vm4, %v3997_v45, 0 }
 0xa7d   :  { %v2115_v23 = vmul.f32 %v4814_v3, %v5557_v35  ;;  %4498 = vmatpush3.bf16.msra.mxu0 %v2223_v33  ;;  %v2320_v35 = vsel %vm942_vm4, %v3995_v34, 0  ;;  %v2270_v48 = vsel %vm942_vm4, %v2215_v39, 0 }
 0xa7e   :  { %v4816_v4 = vpop.eup %4815  ;;  %4503 = vmatprep.subr.bf16.mxu0 %v4889_v1  ;;  %4510 = vmatpush3.bf16.msra.mxu1 %v2320_v35 }
 0xa7f   :  { %v2114_v22 = vmul.f32 %v4816_v4, %v4800_v28  ;;  %v2120_v25 = vpack.c.bf16 %v2116_v17, %v2115_v23  ;;  %4521 = vmatprep.subr.bf16.mxu1 %v4889_v1  ;;  %v1349_v4 = vsub.f32 %v5578_v19, %v1347_v12 }
 0xa81   :  { %v2119_v24 = vpack.c.bf16 %v2114_v22, %v2113_v21  ;;  %v1351_v23 = vmul.f32 %v1349_v4, %v1349_v4 }
 0xa83   :  { %4493 = vmatprep.mubr.msk.bf16.mxu0 %vm748_vm3, %v2119_v24  ;;  %v1353_v24 = vsel %vm129_vm1, %v1351_v23, 0.0 }
 0xa84   :  { %4494 = vmatmul.mubr.msk.bf16.gmra.mrb[56].mxu0 %vm748_vm3, %v2120_v25  ;;  %v4725_v25 = vld [vmem:[%s6014_s18] sm:$0xff]  }
 0xa85   :  { %4499 = vmatprep.mubr.msk.bf16.mxu0 %vm4890_vm0, %v4889_v1 }
 0xaa8   :  { %v1346_v20 = vpop.xlane.xlu1 %1345 }
 0xaa9   :  { %v1348_v26 = vmul.f32 0.03125, %v1346_v20 }
 0xaab   :  { %v5598_v27 = vsub.f32 %v1338_v57, %v1348_v26 }
 0xaad   :  { %v1352_v29 = vmul.f32 %v5598_v27, %v5598_v27 }
 0xaaf   :  { %v1356_v31 = vsel %vm129_vm1, %v1352_v29, 0.0 }
 0xab0   :  { %1357 = vadd.xlane.f32.xlu1 %v1356_v31 }
 0xb4f   :  { %v4491_v38 = vpop.f32.mrb[52].mxu0 }
 0xb50   :  { %v2183_v40 = vpop.f32.mrb[53].mxu0 }
 0xb51   :  { %v4492_v46 = vpop.f32.mrb[54].mxu0 }
 0xb52   :  { %v2216_v43 = vpack.c.bf16 %v4492_v46, %v4491_v38  ;;  %v2186_v47 = vpop.f32.mrb[55].mxu0 }
 0xb53   :  { %v2214_v49 = vpack.c.bf16 %v2186_v47, %v2183_v40 }
 0xb54   :  { %4500 = vmatmul.mubr.msk.bf16.vlgmr.msra.gmra.mrb[60].mxu0 %vm642_vm2, %v2216_v43 }
 0xb55   :  { %4504 = vmatpush3.bf16.msra.mxu0 %v2270_v48  ;;  %4505 = vmatprep.mubr.msk.bf16.mxu0 %vm4890_vm0, %v4889_v1 }
 0xb56   :  { %4515 = vmatprep.subr.bf16.mxu0 %v4889_v1 }
 0xb57   :  { %v4495_v50 = vpop.f32.mrb[56].mxu0 }
 0xb58   :  { %v2199_v62 = vpop.f32.mrb[57].mxu0 }
 0xb59   :  { %v4496_v30 = vpop.f32.mrb[58].mxu0 }
 0xb5a   :  { %v2365_v28 = vpack.c.bf16 %v4496_v30, %v4495_v50  ;;  %v2202_v44 = vpop.f32.mrb[59].mxu0  ;;  %v3920_v50 = vld [vmem:[%s6022_s26 + $0x4] ss:$0 sm:$0xff] }
 0xb5b   :  { %v2313_v54 = vpack.c.bf16 %v2202_v44, %v2199_v62 }
 0xb5c   :  { %4506 = vmatmul.mubr.msk.bf16.vlgmr.msra.gmra.mrb[64].mxu0 %vm642_vm2, %v2214_v49 }
 0xb5d   :  { %4512 = vmatmul.mubr.msk.bf16.vlgmr.msra.gmra.mrb[60].mxu1 %vm642_vm2, %v2313_v54  ;;  %4516 = vmatpush3.bf16.msra.mxu0 %v2372_v52 }
 0xb5e   :  { %4517 = vmatprep.mubr.msk.bf16.mxu0 %vm4890_vm0, %v4889_v1  ;;  %4529 = vmatprep.subr.bf16.mxu0 %v4889_v1 }
 0xb5f   :  { %4525 = vmatprep.mubr.msk.bf16.mxu1 %vm4890_vm0, %v4889_v1 }
 0xb64   :  { %4518 = vmatmul.mubr.msk.bf16.vlgmr.msra.gmra.mrb[68].mxu0 %vm642_vm2, %v2365_v28  ;;  %v3921_v28 = vld [vmem:[%s6022_s26 + $0x5] ss:$0 sm:$0xff] }
 0xb65   :  { %4533 = vmatprep.mubr.msk.bf16.mxu0 %vm4890_vm0, %v4889_v1  ;;  %4530 = vmatpush3.bf16.msra.mxu0 %v4725_v25 }
 0xb66   :  { %4531 = vmatprep.subr.bf16.mxu0 %v4889_v1 }
 0xc27   :  { %v2259_v56 = vpop.f32.mrb[60].mxu0 }
 0xc28   :  { %v4501_v57 = vpop.f32.mrb[61].mxu0 }
 0xc29   :  { %v2262_v58 = vpop.f32.mrb[62].mxu0 }
 0xc2a   :  { %v4502_v53 = vpop.f32.mrb[63].mxu0 }
 0xc2b   :  { %v4730_v53 = vld [vmem:[%s6014_s18 + $0x28] sm:$0xff]  }
 0xc2f   :  { %v2306_v59 = vpop.f32.mrb[64].mxu0 }
 0xc30   :  { %v2307_v60 = vadd.f32 %v2306_v59, %v2259_v56  ;;  %v4507_v36 = vpop.f32.mrb[65].mxu0  ;;  %v2356_v61 = vpop.f32.mrb[60].mxu1  ;;  %v4727_v56 = vld [vmem:[%s6014_s18 + $0x10] sm:$0xff]   ;;  %v4733_v59 = vld [vmem:[%s6013_s17] sm:$0xff]  }
 0xc31   :  { %v2309_v18 = vpop.f32.mrb[66].mxu0  ;;  %v4513_v63 = vpop.f32.mrb[61].mxu1  ;;  %4522 = vmatpush3.bf16.msra.mxu1 %v4733_v59  ;;  %v4731_v36 = vld [vmem:[%s6014_s18 + $0x30] sm:$0xff]   ;;  %v4002_v59 = vld [vmem:[%s6015_s19] ss:$0 sm:$0xff] }
 0xc32   :  { %v2363_v0 = vadd.f32 %v2356_v61, %v2307_v60  ;;  %v2310_v2 = vadd.f32 %v2309_v18, %v2262_v58  ;;  %v4508_v5 = vpop.f32.mrb[67].mxu0  ;;  %v2359_v51 = vpop.f32.mrb[62].mxu1  ;;  %v4729_v58 = vld [vmem:[%s6014_s18 + $0x20] sm:$0xff]   ;;  %v4734_v60 = vld [vmem:[%s6013_s17 + $0x8] sm:$0xff]   ;;  %4523 = vmatprep.subr.bf16.mxu1 %v4889_v1  ;;  %v4732_v61 = vld [vmem:[%s6014_s18 + $0x38] sm:$0xff]  }
 0xc33   :  { %v4514_v55 = vpop.f32.mrb[63].mxu1 }
 0xc34   :  { %v2364_v37 = vadd.f32 %v2359_v51, %v2310_v2 }
 0xc35   :  { %4524 = vmatpush3.bf16.msra.mxu1 %v4734_v60 }
 0xc36   :  { %4537 = vmatprep.subr.bf16.mxu1 %v4889_v1 }
 0xc37   :  { %v2408_v8 = vpop.f32.mrb[68].mxu0 }
 0xc38   :  { %v2415_v9 = vadd.f32 %v2408_v8, %v2363_v0  ;;  %v4519_v10 = vpop.f32.mrb[69].mxu0 }
 0xc39   :  { %v2411_v11 = vpop.f32.mrb[70].mxu0  ;;  %v4001_v10 = vld [vmem:[%s6022_s26 + $0x8] ss:$0 sm:$0xff] }
 0xc3a   :  { %v2421_v13 = vadd.f32 %v3999_v7, %v2415_v9  ;;  %v2416_v14 = vadd.f32 %v2411_v11, %v2364_v37  ;;  %v4520_v15 = vpop.f32.mrb[71].mxu0 }
 0xc3c   :  { %v2422_v16 = vadd.f32 %v3999_v7, %v2416_v14  ;;  %v2423_v3 = vadd.f32 %v2421_v13, %v5347_v41  ;;  %v4726_v41 = vld [vmem:[%s6014_s18 + $0x8] sm:$0xff]   ;;  %v4735_v14 = vld [vmem:[%s6013_s17 + $0x10] sm:$0xff]  }
 0xc3d   :  { %4532 = vmatpush3.bf16.msra.mxu0 %v4726_v41 }
 0xc3e   :  { %v2427_v17 = vsel %vm129_vm1, %v2423_v3, 0.0  ;;  %v2424_v21 = vadd.f32 %v2422_v16, %v5352_v42  ;;  %4545 = vmatprep.subr.bf16.mxu0 %v4889_v1  ;;  %v1358_v42 = vpop.xlane.xlu1 %1357  ;;  %v4736_v16 = vld [vmem:[%s6013_s17 + $0x18] sm:$0xff]  }
 0xc3f   :  { %2428 = vadd.xlane.f32.xlu0 %v2427_v17  ;;  %v1360_v19 = vmul.f32 0.03125, %v1358_v42  ;;  %v4739_v17 = vld [vmem:[%s6013_s17 + $0x30] sm:$0xff]  }
 0xc40   :  { %v2430_v22 = vsel %vm129_vm1, %v2424_v21, 0.0 }
 0xc41   :  { %v1362_v29 = vadd.f32 1e-05, %v1360_v19 }
 0xc43   :  { %2431 = vadd.xlane.f32.xlu0 %v2430_v22  ;;  %4817 = vrsqrt.f32 %v1362_v29  ;;  %v4006_v22 = vld [vmem:[%s6016_s20] ss:$0 sm:$0xff]  ;;  %v4024_v29 = vld [vmem:[%s6016_s20 + $0x1] ss:$0 sm:$0xff] }
 0xc47   :  { %1354 = vadd.xlane.f32.xlu0 %v1353_v24 }
 0xc4d   :  { %v4818_v48 = vpop.eup %4817 }
 0xc4e   :  { %v1366_v49 = vmul.f32 %v4818_v48, %v5598_v27  ;;  %v4728_v27 = vld [vmem:[%s6014_s18 + $0x18] sm:$0xff]  }
 0xc50   :  { %v1372_v62 = vmul.f32 %v3920_v50, %v1366_v49 }
 0xc52   :  { %v1378_v54 = vadd.f32 %v3921_v28, %v1372_v62 }
 0xccc   :  { %v2429_v20 = vpop.xlane.xlu0 %2428 }
 0xccd   :  { %v2433_v26 = vmul.f32 0.03125, %v2429_v20 }
 0xccf   :  { %v5652_v31 = vsub.f32 %v2423_v3, %v2433_v26  ;;  %v4737_v3 = vld [vmem:[%s6013_s17 + $0x20] sm:$0xff]  }
 0xcd0   :  { %v2432_v32 = vpop.xlane.xlu0 %2431 }
 0xcd1   :  { %v2434_v33 = vmul.f32 0.03125, %v2432_v32  ;;  %v2437_v34 = vmul.f32 %v5652_v31, %v5652_v31 }
 0xcd3   :  { %v5656_v35 = vsub.f32 %v2424_v21, %v2434_v33  ;;  %v2439_v38 = vsel %vm129_vm1, %v2437_v34, 0.0  ;;  %v4740_v21 = vld [vmem:[%s6013_s17 + $0x38] sm:$0xff]  }
 0xcd4   :  { %2440 = vadd.xlane.f32.xlu0 %v2439_v38  ;;  %v1355_v39 = vpop.xlane.xlu0 %1354 }
 0xcd5   :  { %v1359_v40 = vmul.f32 0.03125, %v1355_v39  ;;  %v2438_v46 = vmul.f32 %v5656_v35, %v5656_v35 }
 0xcd7   :  { %v1361_v43 = vadd.f32 1e-05, %v1359_v40  ;;  %v2442_v47 = vsel %vm129_vm1, %v2438_v46, 0.0  ;;  %v4042_v46 = vld [vmem:[%s6016_s20 + $0x2] ss:$0 sm:$0xff] }
 0xcd8   :  { %2443 = vadd.xlane.f32.xlu1 %v2442_v47 }
 0xcd9   :  { %4819 = vrsqrt.f32 %v1361_v43 }
 0xce3   :  { %v4820_v45 = vpop.eup %4819 }
 0xce4   :  { %v1365_v30 = vmul.f32 %v4820_v45, %v1349_v4  ;;  %v4738_v4 = vld [vmem:[%s6013_s17 + $0x28] sm:$0xff]  }
 0xce6   :  { %v1371_v44 = vmul.f32 %v3920_v50, %v1365_v30 }
 0xce8   :  { %v1377_v52 = vadd.f32 %v3921_v28, %v1371_v44  ;;  %v4060_v28 = vld [vmem:[%s6016_s20 + $0x3] ss:$0 sm:$0xff] }
 0xcea   :  { %v1379_v57 = vpack.c.bf16 %v1378_v54, %v1377_v52 }
 0xcec   :  { %4534 = vmatmul.mubr.msk.bf16.vlgmr.msra.gmra.mrb[72].mxu0 %vm129_vm1, %v1379_v57 }
 0xced   :  { %4546 = vmatpush3.bf16.msra.mxu0 %v4727_v56  ;;  %4549 = vmatprep.mubr.msk.bf16.mxu0 %vm4890_vm0, %v4889_v1 }
 0xcee   :  { %4547 = vmatprep.subr.bf16.mxu0 %v4889_v1 }
 0xcf1   :  { %4548 = vmatpush3.bf16.msra.mxu0 %v4728_v27 }
 0xcf2   :  { %4561 = vmatprep.subr.bf16.mxu0 %v4889_v1 }
 0xcf4   :  { %4550 = vmatmul.mubr.msk.bf16.vlgmr.msra.gmra.mrb[76].mxu0 %vm129_vm1, %v1379_v57 }
 0xcf5   :  { %4562 = vmatpush3.bf16.msra.mxu0 %v4729_v58  ;;  %4565 = vmatprep.mubr.msk.bf16.mxu0 %vm4890_vm0, %v4889_v1 }
 0xcf6   :  { %4563 = vmatprep.subr.bf16.mxu0 %v4889_v1 }
 0xcf9   :  { %4564 = vmatpush3.bf16.msra.mxu0 %v4730_v53 }
 0xcfa   :  { %4577 = vmatprep.subr.bf16.mxu0 %v4889_v1 }
 0xcfc   :  { %4566 = vmatmul.mubr.msk.bf16.vlgmr.msra.gmra.mrb[80].mxu0 %vm129_vm1, %v1379_v57 }
 0xcfd   :  { %4578 = vmatpush3.bf16.msra.mxu0 %v4731_v36  ;;  %4581 = vmatprep.mubr.msk.bf16.mxu0 %vm4890_vm0, %v4889_v1 }
 0xcfe   :  { %4579 = vmatprep.subr.bf16.mxu0 %v4889_v1 }
 0xd01   :  { %4580 = vmatpush3.bf16.msra.mxu0 %v4732_v61 }
 0xd04   :  { %4582 = vmatmul.mubr.msk.bf16.vlgmr.msra.gmra.mrb[84].mxu0 %vm129_vm1, %v1379_v57 }
 0xd61   :  { %v2441_v18 = vpop.xlane.xlu0 %2440 }
 0xd62   :  { %v2445_v63 = vmul.f32 0.03125, %v2441_v18 }
 0xd64   :  { %v2447_v0 = vadd.f32 1e-05, %v2445_v63 }
 0xd65   :  { %v2444_v2 = vpop.xlane.xlu1 %2443 }
 0xd66   :  { %4821 = vrsqrt.f32 %v2447_v0  ;;  %v2446_v5 = vmul.f32 0.03125, %v2444_v2 }
 0xd68   :  { %v2448_v51 = vadd.f32 1e-05, %v2446_v5  ;;  %v4015_v5 = vld [vmem:[%s6015_s19 + $0x1] ss:$0 sm:$0xff] }
 0xd6a   :  { %4823 = vrsqrt.f32 %v2448_v51 }
 0xd70   :  { %v4822_v55 = vpop.eup %4821 }
 0xd71   :  { %v2451_v37 = vmul.f32 %v4822_v55, %v5652_v31 }
 0xd73   :  { %v2457_v8 = vmul.f32 %v4000_v6, %v2451_v37 }
 0xd74   :  { %v4824_v7 = vpop.eup %4823 }
 0xd75   :  { %v2452_v9 = vmul.f32 %v4824_v7, %v5656_v35  ;;  %v5718_v12 = vadd.f32 %v4001_v10, %v2457_v8 }
 0xd77   :  { %v2458_v11 = vmul.f32 %v4000_v6, %v2452_v9 }
 0xd79   :  { %v5720_v13 = vadd.f32 %v4001_v10, %v2458_v11  ;;  %v4033_v10 = vld [vmem:[%s6015_s19 + $0x2] ss:$0 sm:$0xff] }
 0xd7b   :  { %v2465_v15 = vpack.c.bf16 %v5720_v13, %v5718_v12 }
 0xd7d   :  { %4526 = vmatmul.mubr.msk.bf16.vlgmr.msra.gmra.mrb[64].mxu1 %vm129_vm1, %v2465_v15 }
 0xd7e   :  { %4538 = vmatpush3.bf16.msra.mxu1 %v4735_v14  ;;  %4541 = vmatprep.mubr.msk.bf16.mxu1 %vm4890_vm0, %v4889_v1 }
 0xd7f   :  { %4539 = vmatprep.subr.bf16.mxu1 %v4889_v1 }
 0xd82   :  { %4540 = vmatpush3.bf16.msra.mxu1 %v4736_v16 }
 0xd83   :  { %4553 = vmatprep.subr.bf16.mxu1 %v4889_v1 }
 0xd85   :  { %4542 = vmatmul.mubr.msk.bf16.vlgmr.msra.gmra.mrb[68].mxu1 %vm129_vm1, %v2465_v15 }
 0xd86   :  { %4554 = vmatpush3.bf16.msra.mxu1 %v4737_v3  ;;  %4557 = vmatprep.mubr.msk.bf16.mxu1 %vm4890_vm0, %v4889_v1 }
 0xd87   :  { %4555 = vmatprep.subr.bf16.mxu1 %v4889_v1 }
 0xd8a   :  { %4556 = vmatpush3.bf16.msra.mxu1 %v4738_v4 }
 0xd8b   :  { %4569 = vmatprep.subr.bf16.mxu1 %v4889_v1 }
 0xd8d   :  { %4558 = vmatmul.mubr.msk.bf16.vlgmr.msra.gmra.mrb[72].mxu1 %vm129_vm1, %v2465_v15 }
 0xd8e   :  { %4570 = vmatpush3.bf16.msra.mxu1 %v4739_v17  ;;  %4573 = vmatprep.mubr.msk.bf16.mxu1 %vm4890_vm0, %v4889_v1 }
 0xd8f   :  { %4571 = vmatprep.subr.bf16.mxu1 %v4889_v1 }
 0xd92   :  { %4572 = vmatpush3.bf16.msra.mxu1 %v4740_v21  ;;  %v4051_v21 = vld [vmem:[%s6015_s19 + $0x3] ss:$0 sm:$0xff] }
 0xd95   :  { %4574 = vmatmul.mubr.msk.bf16.vlgmr.msra.gmra.mrb[76].mxu1 %vm129_vm1, %v2465_v15 }
 0xdbf   :  { %v2602_v23 = vpop.f32.mrb[72].mxu0 }
 0xdc0   :  { %v4535_v24 = vpop.f32.mrb[73].mxu0  ;;  %v2603_v41 = vadd.f32 %v4006_v22, %v2602_v23 }
 0xdc1   :  { %v2605_v25 = vpop.f32.mrb[74].mxu0 }
 0xdc2   :  { %v2606_v42 = vadd.f32 %v4006_v22, %v2605_v25  ;;  %v4536_v19 = vpop.f32.mrb[75].mxu0 }
 0xdc4   :  { %v5760_v20 = vpack.c.bf16 %v2606_v42, %v2603_v41 }
 0xdc6   :  { %4677 = vmatprep.subr.msk.bf16.mxu1 %vm642_vm2, %v5760_v20  ;;  %v3026_v26 = vsel %vm642_vm2, %v5760_v20, 0 }
 0xdc7   :  { %v2734_v31 = vpop.f32.mrb[76].mxu0  ;;  %4586 = vmatpush3.bf16.xpose.msra.mxu1 %v3026_v26 }
 0xdc8   :  { %v4551_v32 = vpop.f32.mrb[77].mxu0  ;;  %v2735_v34 = vadd.f32 %v4024_v29, %v2734_v31  ;;  %v2466_v31 = vld [vmem:[%s6063_s15] sm:$0xff] }
 0xdc9   :  { %v2737_v33 = vpop.f32.mrb[78].mxu0 }
 0xdca   :  { %v2738_v35 = vadd.f32 %v4024_v29, %v2737_v33  ;;  %v4552_v38 = vpop.f32.mrb[79].mxu0 }
 0xdcb   :  { %v2467_v38 = vld [vmem:[%s6063_s15 + $0x8] sm:$0xff] }
 0xdcc   :  { %v5769_v39 = vpack.c.bf16 %v2738_v35, %v2735_v34 }
 0xdce   :  { %4678 = vmatprep.subr.msk.bf16.mxu1 %vm642_vm2, %v5769_v39  ;;  %v3029_v40 = vsel %vm642_vm2, %v5769_v39, 0 }
 0xdcf   :  { %v2866_v43 = vpop.f32.mrb[80].mxu0  ;;  %4588 = vmatpush3.bf16.xpose.msra.mxu1 %v3029_v40  ;;  %v2468_v40 = vld [vmem:[%s6063_s15 + $0x10] sm:$0xff] }
 0xdd0   :  { %v4567_v47 = vpop.f32.mrb[81].mxu0  ;;  %v2867_v49 = vadd.f32 %v4042_v46, %v2866_v43 }
 0xdd1   :  { %v2869_v48 = vpop.f32.mrb[82].mxu0 }
 0xdd2   :  { %v2870_v50 = vadd.f32 %v4042_v46, %v2869_v48  ;;  %v4568_v45 = vpop.f32.mrb[83].mxu0  ;;  %v2469_v48 = vld [vmem:[%s6063_s15 + $0x18] sm:$0xff] }
 0xdd4   :  { %v5778_v62 = vpack.c.bf16 %v2870_v50, %v2867_v49 }
 0xdd6   :  { %4679 = vmatprep.subr.msk.bf16.mxu1 %vm642_vm2, %v5778_v62  ;;  %v3032_v30 = vsel %vm642_vm2, %v5778_v62, 0 }
 0xdd7   :  { %v2998_v44 = vpop.f32.mrb[84].mxu0  ;;  %4590 = vmatpush3.bf16.xpose.msra.mxu1 %v3032_v30 }
 0xdd8   :  { %v4583_v52 = vpop.f32.mrb[85].mxu0  ;;  %v2999_v56 = vadd.f32 %v4060_v28, %v2998_v44 }
 0xdd9   :  { %v3001_v54 = vpop.f32.mrb[86].mxu0 }
 0xdda   :  { %v3002_v57 = vadd.f32 %v4060_v28, %v3001_v54  ;;  %v4584_v27 = vpop.f32.mrb[87].mxu0 }
 0xddc   :  { %v5787_v58 = vpack.c.bf16 %v3002_v57, %v2999_v56  ;;  %v2470_v57 = vld [vmem:[%s6063_s15 + $0x20] sm:$0xff] }
 0xdde   :  { %4680 = vmatprep.subr.msk.bf16.mxu1 %vm642_vm2, %v5787_v58  ;;  %v3035_v53 = vsel %vm642_vm2, %v5787_v58, 0 }
 0xddf   :  { %4592 = vmatpush3.bf16.xpose.msra.mxu1 %v3035_v53 }
 0xde0   :  { %4629 = vmatprep.subr.bf16.mxu1 %v4889_v1 }
 0xe50   :  { %v2535_v60 = vpop.f32.mrb[64].mxu1 }
 0xe51   :  { %v4527_v36 = vpop.f32.mrb[65].mxu1  ;;  %v2536_v18 = vadd.f32 %v4002_v59, %v2535_v60  ;;  %v2473_v60 = vld [vmem:[%s6063_s15 + $0x38] sm:$0xff] }
 0xe52   :  { %v2538_v61 = vpop.f32.mrb[66].mxu1 }
 0xe53   :  { %v2539_v63 = vadd.f32 %v4002_v59, %v2538_v61  ;;  %v4528_v0 = vpop.f32.mrb[67].mxu1 }
 0xe55   :  { %v3005_v2 = vpack.c.bf16 %v2539_v63, %v2536_v18  ;;  %v2472_v18 = vld [vmem:[%s6063_s15 + $0x30] sm:$0xff] }
 0xe57   :  { %4593 = vmatprep.mubr.msk.bf16.mxu1 %vm642_vm2, %v3005_v2  ;;  %v2471_v2 = vld [vmem:[%s6063_s15 + $0x28] sm:$0xff] }
 0xe58   :  { %v2668_v51 = vpop.f32.mrb[68].mxu1 }
 0xe59   :  { %v4543_v55 = vpop.f32.mrb[69].mxu1  ;;  %v2669_v6 = vadd.f32 %v4015_v5, %v2668_v51 }
 0xe5a   :  { %v2671_v37 = vpop.f32.mrb[70].mxu1 }
 0xe5b   :  { %v2672_v7 = vadd.f32 %v4015_v5, %v2671_v37  ;;  %v4544_v8 = vpop.f32.mrb[71].mxu1 }
 0xe5d   :  { %v3006_v9 = vpack.c.bf16 %v2672_v7, %v2669_v6 }
 0xe5f   :  { %4594 = vmatmul.mubr.msk.bf16.vlgmr.msra.gmra.mrb[80].mxu1 %vm642_vm2, %v3006_v9 }
 0xe60   :  { %v2800_v11 = vpop.f32.mrb[72].mxu1 }
 0xe61   :  { %v4559_v14 = vpop.f32.mrb[73].mxu1  ;;  %v2801_v16 = vadd.f32 %v4033_v10, %v2800_v11 }
 0xe62   :  { %v2803_v15 = vpop.f32.mrb[74].mxu1 }
 0xe63   :  { %v2804_v3 = vadd.f32 %v4033_v10, %v2803_v15  ;;  %v4560_v4 = vpop.f32.mrb[75].mxu1 }
 0xe65   :  { %v3007_v17 = vpack.c.bf16 %v2804_v3, %v2801_v16 }
 0xe67   :  { %4597 = vmatprep.mubr.msk.bf16.mxu1 %vm642_vm2, %v3007_v17 }
 0xe68   :  { %v2932_v22 = vpop.f32.mrb[76].mxu1 }
 0xe69   :  { %v4575_v23 = vpop.f32.mrb[77].mxu1  ;;  %v2933_v25 = vadd.f32 %v4051_v21, %v2932_v22 }
 0xe6a   :  { %v2935_v24 = vpop.f32.mrb[78].mxu1 }
 0xe6b   :  { %v2936_v41 = vadd.f32 %v4051_v21, %v2935_v24  ;;  %v4576_v42 = vpop.f32.mrb[79].mxu1 }
 0xe6d   :  { %v3008_v19 = vpack.c.bf16 %v2936_v41, %v2933_v25 }
 0xe6f   :  { %4598 = vmatmul.mubr.msk.bf16.gmra.mrb[84].mxu1 %vm642_vm2, %v3008_v19 }
 0xe70   :  { %4631 = vmatprep.mubr.msk.bf16.mxu1 %vm4890_vm0, %v4889_v1 }
 0xf32   :  { %v4595_v26 = vpop.f32.mrb[80].mxu1 }
 0xf33   :  { %v3071_v29 = vpop.f32.mrb[81].mxu1  ;;  %v3104_v32 = vmul.f32 0.35355338, %v4595_v26 }
 0xf34   :  { %v3102_v33 = vmul.f32 0.35355338, %v3071_v29  ;;  %v4596_v34 = vpop.f32.mrb[82].mxu1 }
 0xf35   :  { %v3074_v35 = vpop.f32.mrb[83].mxu1  ;;  %v3105_v46 = vmul.f32 0.35355338, %v4596_v34  ;;  %v3112_v45 = vadd.f32 %v3104_v32, %v2468_v40 }
 0xf36   :  { %v3103_v43 = vmul.f32 0.35355338, %v3074_v35  ;;  %v3110_v47 = vadd.f32 %v3102_v33, %v2466_v31 }
 0xf37   :  { %v3113_v28 = vadd.f32 %v3105_v46, %v2469_v48  ;;  %v3124_v44 = vsel %vm748_vm3, %v3112_v45, -inf }
 0xf38   :  { %v3118_v49 = vsel %vm748_vm3, %v3110_v47, -inf  ;;  %v3111_v50 = vadd.f32 %v3103_v43, %v2467_v38 }
 0xf39   :  { %3119 = vmax.xlane.f32.xlu0 %v3118_v49  ;;  %v3127_v52 = vsel %vm748_vm3, %v3113_v28, -inf }
 0xf3a   :  { %v3121_v30 = vsel %vm748_vm3, %v3111_v50, -inf }
 0xf3b   :  { %3122 = vmax.xlane.f32.xlu1 %v3121_v30 }
 0xf3d   :  { %3125 = vmax.xlane.f32.xlu0 %v3124_v44 }
 0xf3f   :  { %3128 = vmax.xlane.f32.xlu1 %v3127_v52 }
 0xf42   :  { %v4599_v54 = vpop.f32.mrb[84].mxu1 }
 0xf43   :  { %v3087_v56 = vpop.f32.mrb[85].mxu1  ;;  %v3108_v27 = vmul.f32 0.35355338, %v4599_v54 }
 0xf44   :  { %v3106_v53 = vmul.f32 0.35355338, %v3087_v56  ;;  %v4600_v59 = vpop.f32.mrb[86].mxu1 }
 0xf45   :  { %v3109_v36 = vmul.f32 0.35355338, %v4600_v59  ;;  %v3090_v61 = vpop.f32.mrb[87].mxu1  ;;  %v3116_v55 = vadd.f32 %v3108_v27, %v2472_v18 }
 0xf46   :  { %v3107_v63 = vmul.f32 0.35355338, %v3090_v61  ;;  %v3114_v0 = vadd.f32 %v3106_v53, %v2470_v57 }
 0xf47   :  { %v3117_v5 = vadd.f32 %v3109_v36, %v2473_v60  ;;  %v3136_v7 = vsel %vm748_vm3, %v3116_v55, -inf }
 0xf48   :  { %v3130_v51 = vsel %vm748_vm3, %v3114_v0, -inf  ;;  %v3115_v6 = vadd.f32 %v3107_v63, %v2471_v2 }
 0xf49   :  { %3131 = vmax.xlane.f32.xlu0 %v3130_v51  ;;  %v3139_v37 = vsel %vm748_vm3, %v3117_v5, -inf }
 0xf4a   :  { %3140 = vmax.xlane.f32.xlu1 %v3139_v37  ;;  %v3133_v8 = vsel %vm748_vm3, %v3115_v6, -inf }
 0xf4d   :  { %3137 = vmax.xlane.f32.xlu0 %v3136_v7 }
 0xf4e   :  { %3134 = vmax.xlane.f32.xlu1 %v3133_v8  ;;  %v4072_v8 = vld [vmem:[%s6017_s21 + $0x4] sm:$0xf] }
 0xfc6   :  { %v3120_v9 = vpop.xlane.xlu0 %3119 }
 0xfc7   :  { %v3142_v10 = vsub.f32 %v3110_v47, %v3120_v9 }
 0xfc8   :  { %v3123_v11 = vpop.xlane.xlu1 %3122 }
 0xfc9   :  { %v3143_v15 = vsub.f32 %v3111_v50, %v3123_v11  ;;  %v3150_v3 = vmul.f32 1.442695, %v3142_v10  ;;  %v3312_v11 = vsel %vm942_vm4, %v4072_v8, 0 }
 0xfca   :  { %v3126_v14 = vpop.xlane.xlu0 %3125 }
 0xfcb   :  { %v3144_v16 = vsub.f32 %v3112_v45, %v3126_v14  ;;  %v3152_v22 = vmul.f32 1.442695, %v3143_v15 }
 0xfcc   :  { %v3129_v4 = vpop.xlane.xlu1 %3128 }
 0xfcd   :  { %v3154_v17 = vmul.f32 1.442695, %v3144_v16  ;;  %v3145_v21 = vsub.f32 %v3113_v28, %v3129_v4 }
 0xfcf   :  { %4825 = vpow2.f32 %v3154_v17  ;;  %v3156_v23 = vmul.f32 1.442695, %v3145_v21 }
 0xfd0   :  { %4827 = vpow2.f32 %v3150_v3 }
 0xfd1   :  { %4829 = vpow2.f32 %v3156_v23 }
 0xfd2   :  { %4831 = vpow2.f32 %v3152_v22 }
 0xfd6   :  { %v3132_v24 = vpop.xlane.xlu0 %3131 }
 0xfd7   :  { %v3146_v41 = vsub.f32 %v3114_v0, %v3132_v24  ;;  %v3141_v49 = vpop.xlane.xlu1 %3140 }
 0xfd8   :  { %v3149_v50 = vsub.f32 %v3117_v5, %v3141_v49 }
 0xfd9   :  { %v5844_v25 = vpop.eup %4825  ;;  %v3158_v34 = vmul.f32 1.442695, %v3146_v41 }
 0xfda   :  { %v4828_v42 = vpop.eup %4827  ;;  %v3138_v19 = vpop.xlane.xlu0 %3137  ;;  %v3172_v26 = vsel %vm748_vm3, %v5844_v25, 0.0  ;;  %v3164_v30 = vmul.f32 1.442695, %v3149_v50 }
 0xfdb   :  { %v5848_v29 = vpop.eup %4829  ;;  %v3148_v31 = vsub.f32 %v3116_v55, %v3138_v19  ;;  %3173 = vadd.xlane.f32.xlu0 %v3172_v26  ;;  %v3166_v38 = vsel %vm748_vm3, %v4828_v42, 0.0  ;;  %v3135_v45 = vpop.xlane.xlu1 %3134  ;;  %v3304_v19 = vld [vmem:[%s6017_s21] sm:$0xf] }
 0xfdc   :  { %v3175_v32 = vsel %vm748_vm3, %v5848_v29, 0.0  ;;  %v4832_v33 = vpop.eup %4831  ;;  %v3147_v28 = vsub.f32 %v3115_v6, %v3135_v45 }
 0xfdd   :  { %v3162_v35 = vmul.f32 1.442695, %v3148_v31  ;;  %3176 = vadd.xlane.f32.xlu1 %v3175_v32  ;;  %v3169_v40 = vsel %vm748_vm3, %v4832_v33, 0.0 }
 0xfde   :  { %v3160_v44 = vmul.f32 1.442695, %v3147_v28 }
 0xfdf   :  { %4833 = vpow2.f32 %v3162_v35  ;;  %3167 = vadd.xlane.f32.xlu0 %v3166_v38  ;;  %v4077_v38 = vld [vmem:[%s6017_s21 + $0xc] sm:$0xf] }
 0xfe0   :  { %4835 = vpow2.f32 %v3158_v34 }
 0xfe1   :  { %3170 = vadd.xlane.f32.xlu1 %v3169_v40  ;;  %4837 = vpow2.f32 %v3164_v30 }
 0xfe2   :  { %4839 = vpow2.f32 %v3160_v44 }
 0xfe9   :  { %v5854_v46 = vpop.eup %4833 }
 0xfea   :  { %v3184_v43 = vsel %vm748_vm3, %v5854_v46, 0.0  ;;  %v5858_v47 = vpop.eup %4835 }
 0xfeb   :  { %3185 = vadd.xlane.f32.xlu0 %v3184_v43  ;;  %v3178_v48 = vsel %vm748_vm3, %v5858_v47, 0.0  ;;  %v4838_v52 = vpop.eup %4837 }
 0xfec   :  { %v3187_v54 = vsel %vm748_vm3, %v4838_v52, 0.0  ;;  %v4840_v56 = vpop.eup %4839 }
 0xfef   :  { %3179 = vadd.xlane.f32.xlu0 %v3178_v48  ;;  %v3461_v48 = vsel %vm942_vm4, %v4077_v38, 0 }
 0xff2   :  { %3216 = vrot.lane.b32.xlu1 %v5769_v39, %s4891_s5  ;;  %v3181_v39 = vsel %vm748_vm3, %v4840_v56, 0.0 }
 0xff6   :  { %3218 = vrot.lane.b32.xlu1 %v5778_v62, %s4891_s5 }
0x1005   :  { %3214 = vrot.lane.b32.xlu0 %v5760_v20, %s4891_s5 }
0x101a   :  { %3188 = vadd.xlane.f32.xlu1 %v3187_v54 }
0x101e   :  { %3182 = vadd.xlane.f32.xlu1 %v3181_v39 }
0x102f   :  { %3220 = vrot.lane.b32.xlu1 %v5787_v58, %s4891_s5 }
0x1068   :  { %v3174_v62 = vpop.xlane.xlu0 %3173 }
0x106a   :  { %v3177_v57 = vpop.xlane.xlu1 %3176 }
0x106c   :  { %v3168_v27 = vpop.xlane.xlu0 %3167 }
0x106d   :  { %4841 = vrcp.f32 %v3168_v27 }
0x106e   :  { %v3171_v20 = vpop.xlane.xlu1 %3170 }
0x106f   :  { %4843 = vrcp.f32 %v3171_v20 }
0x1070   :  { %4845 = vrcp.f32 %v3177_v57 }
0x1071   :  { %4847 = vrcp.f32 %v3174_v62 }
0x1072   :  { %v3217_v0 = vpop.permute.xlu1 %3216 }
0x1076   :  { %v3219_v58 = vpop.permute.xlu1 %3218 }
0x1077   :  { %v4842_v53 = vpop.eup %4841 }
0x1078   :  { %v3186_v59 = vpop.xlane.xlu0 %3185  ;;  %v3198_v36 = vmul.f32 %v4842_v53, %v4828_v42 }
0x1079   :  { %v4844_v60 = vpop.eup %4843 }
0x107a   :  { %v3199_v61 = vmul.f32 %v4844_v60, %v4832_v33  ;;  %v4846_v51 = vpop.eup %4845  ;;  %v3359_v33 = vsel %vm942_vm4, %v3304_v19, 0 }
0x107b   :  { %v4848_v37 = vpop.eup %4847  ;;  %v3201_v6 = vmul.f32 %v4846_v51, %v5848_v29 }
0x107c   :  { %v3180_v18 = vpop.xlane.xlu0 %3179  ;;  %v3206_v63 = vpack.c.bf16 %v3199_v61, %v3198_v36  ;;  %v3200_v9 = vmul.f32 %v4848_v37, %v5844_v25  ;;  %v4075_v25 = vld [vmem:[%s6017_s21 + $0x8] sm:$0xf] }
0x107d   :  { %v3409_v41 = vsel %vm942_vm4, %v4075_v25, 0  ;;  %v4079_v61 = vld [vmem:[%s6022_s26 + $0x9] ss:$0 sm:$0xff] }
0x107e   :  { %4609 = vmatprep.mubr.msk.bf16.mxu0 %vm748_vm3, %v3206_v63  ;;  %v3207_v10 = vpack.c.bf16 %v3201_v6, %v3200_v9  ;;  %4630 = vmatpush3.bf16.msra.mxu1 %v3409_v41 }
0x107f   :  { %4641 = vmatprep.subr.bf16.mxu1 %v4889_v1 }
0x1080   :  { %v3215_v2 = vpop.permute.xlu0 %3214 }
0x1081   :  { %4601 = vmatprep.subr.bf16.mxu0 %v3215_v2 }
0x1082   :  { %4602 = vmatpush3.bf16.msra.mxu0 %v3215_v2 }
0x1083   :  { %4603 = vmatprep.subr.bf16.mxu0 %v3217_v0 }
0x1086   :  { %4604 = vmatpush3.bf16.msra.mxu0 %v3217_v0 }
0x1087   :  { %4605 = vmatprep.subr.bf16.mxu0 %v3219_v58 }
0x108a   :  { %4606 = vmatpush3.bf16.msra.mxu0 %v3219_v58 }
0x10a7   :  { %v3189_v5 = vpop.xlane.xlu1 %3188 }
0x10a8   :  { %4849 = vrcp.f32 %v3189_v5 }
0x10a9   :  { %4851 = vrcp.f32 %v3180_v18 }
0x10aa   :  { %4853 = vrcp.f32 %v3186_v59 }
0x10ab   :  { %v3183_v55 = vpop.xlane.xlu1 %3182 }
0x10ac   :  { %4855 = vrcp.f32 %v3183_v55 }
0x10af   :  { %v3221_v7 = vpop.permute.xlu1 %3220 }
0x10b0   :  { %4607 = vmatprep.subr.bf16.mxu0 %v3221_v7 }
0x10b1   :  { %4608 = vmatpush3.bf16.msra.mxu0 %v3221_v7 }
0x10b2   :  { %4617 = vmatprep.subr.bf16.mxu0 %v4889_v1  ;;  %v4850_v14 = vpop.eup %4849 }
0x10b3   :  { %v4852_v15 = vpop.eup %4851  ;;  %v3205_v4 = vmul.f32 %v4850_v14, %v4838_v52 }
0x10b4   :  { %4610 = vmatmul.mubr.msk.bf16.vlgmr.msra.gmra.mrb[88].mxu0 %vm748_vm3, %v3207_v10  ;;  %v4854_v16 = vpop.eup %4853  ;;  %v3202_v17 = vmul.f32 %v4852_v15, %v5858_v47 }
0x10b5   :  { %4618 = vmatpush3.bf16.msra.mxu0 %v3312_v11  ;;  %v3204_v22 = vmul.f32 %v4854_v16, %v5854_v46 }
0x10b6   :  { %v4856_v3 = vpop.eup %4855  ;;  %4623 = vmatprep.subr.bf16.mxu0 %v4889_v1 }
0x10b7   :  { %v3203_v21 = vmul.f32 %v4856_v3, %v4840_v56  ;;  %v3209_v24 = vpack.c.bf16 %v3205_v4, %v3204_v22  ;;  %v4741_v4 = vld [vmem:[%s6018_s22] sm:$0xff]   ;;  %v4744_v22 = vld [vmem:[%s6019_s23 + $0x8] sm:$0xff]  }
0x10b9   :  { %v3208_v23 = vpack.c.bf16 %v3203_v21, %v3202_v17  ;;  %v4742_v17 = vld [vmem:[%s6018_s22 + $0x8] sm:$0xff]   ;;  %v4743_v21 = vld [vmem:[%s6019_s23] sm:$0xff]  }
0x10bb   :  { %4613 = vmatprep.mubr.msk.bf16.mxu0 %vm748_vm3, %v3208_v23 }
0x10bc   :  { %4614 = vmatmul.mubr.msk.bf16.gmra.mrb[92].mxu0 %vm748_vm3, %v3209_v24 }
0x10bd   :  { %4619 = vmatprep.mubr.msk.bf16.mxu0 %vm4890_vm0, %v4889_v1 }
0x1187   :  { %v4611_v42 = vpop.f32.mrb[88].mxu0 }
0x1188   :  { %v3272_v26 = vpop.f32.mrb[89].mxu0 }
0x1189   :  { %v4612_v29 = vpop.f32.mrb[90].mxu0 }
0x118a   :  { %v3305_v31 = vpack.c.bf16 %v4612_v29, %v4611_v42  ;;  %v3275_v32 = vpop.f32.mrb[91].mxu0 }
0x118b   :  { %v3303_v34 = vpack.c.bf16 %v3275_v32, %v3272_v26 }
0x118c   :  { %4620 = vmatmul.mubr.msk.bf16.vlgmr.msra.gmra.mrb[96].mxu0 %vm642_vm2, %v3305_v31  ;;  %v4080_v31 = vld [vmem:[%s6022_s26 + $0xa] ss:$0 sm:$0xff] }
0x118d   :  { %4624 = vmatpush3.bf16.msra.mxu0 %v3359_v33  ;;  %4625 = vmatprep.mubr.msk.bf16.mxu0 %vm4890_vm0, %v4889_v1 }
0x118e   :  { %4635 = vmatprep.subr.bf16.mxu0 %v4889_v1 }
0x118f   :  { %v4615_v35 = vpop.f32.mrb[92].mxu0 }
0x1190   :  { %v3288_v40 = vpop.f32.mrb[93].mxu0 }
0x1191   :  { %v4616_v46 = vpop.f32.mrb[94].mxu0 }
0x1192   :  { %v3454_v43 = vpack.c.bf16 %v4616_v46, %v4615_v35  ;;  %v3291_v47 = vpop.f32.mrb[95].mxu0  ;;  %v4081_v35 = vld [vmem:[%s6022_s26 + $0xb] ss:$0 sm:$0xff] }
0x1193   :  { %v3402_v49 = vpack.c.bf16 %v3291_v47, %v3288_v40  ;;  %v4745_v47 = vld [vmem:[%s6019_s23 + $0x10] sm:$0xff]  }
0x1194   :  { %4626 = vmatmul.mubr.msk.bf16.vlgmr.msra.gmra.mrb[100].mxu0 %vm642_vm2, %v3303_v34 }
0x1195   :  { %4632 = vmatmul.mubr.msk.bf16.vlgmr.msra.gmra.mrb[88].mxu1 %vm642_vm2, %v3402_v49  ;;  %4636 = vmatpush3.bf16.msra.mxu0 %v3461_v48  ;;  %v4746_v48 = vld [vmem:[%s6019_s23 + $0x18] sm:$0xff]   ;;  %v4082_v49 = vld [vmem:[%s6023_s27 + $0x1] ss:$0 sm:$0xff] }
0x1196   :  { %4637 = vmatprep.mubr.msk.bf16.mxu0 %vm4890_vm0, %v4889_v1  ;;  %4645 = vmatprep.mubr.msk.bf16.mxu1 %vm4890_vm0, %v4889_v1 }
0x1197   :  { %4649 = vmatprep.subr.bf16.mxu0 %v4889_v1  ;;  %4642 = vmatpush3.bf16.msra.mxu1 %v4741_v4  ;;  %v4092_v4 = vld [vmem:[%s6022_s26 + $0xd] ss:$0 sm:$0xff] }
0x1198   :  { %4643 = vmatprep.subr.bf16.mxu1 %v4889_v1 }
0x119b   :  { %4644 = vmatpush3.bf16.msra.mxu1 %v4742_v17 }
0x119c   :  { %4638 = vmatmul.mubr.msk.bf16.vlgmr.msra.gmra.mrb[104].mxu0 %vm642_vm2, %v3454_v43  ;;  %4661 = vmatprep.subr.bf16.mxu1 %v4889_v1 }
0x119d   :  { %4657 = vmatprep.mubr.msk.bf16.mxu0 %vm4890_vm0, %v4889_v1  ;;  %4650 = vmatpush3.bf16.msra.mxu0 %v4743_v21 }
0x119e   :  { %4651 = vmatprep.subr.bf16.mxu0 %v4889_v1 }
0x11a1   :  { %4652 = vmatpush3.bf16.msra.mxu0 %v4744_v22 }
0x11a2   :  { %4653 = vmatprep.subr.bf16.mxu0 %v4889_v1 }
0x11a5   :  { %4654 = vmatpush3.bf16.msra.mxu0 %v4745_v47 }
0x11a6   :  { %4655 = vmatprep.subr.bf16.mxu0 %v4889_v1 }
0x11a9   :  { %4656 = vmatpush3.bf16.msra.mxu0 %v4746_v48 }
0x125f   :  { %v3348_v50 = vpop.f32.mrb[96].mxu0 }
0x1260   :  { %v4621_v45 = vpop.f32.mrb[97].mxu0 }
0x1261   :  { %v3351_v30 = vpop.f32.mrb[98].mxu0 }
0x1262   :  { %v4622_v28 = vpop.f32.mrb[99].mxu0 }
0x1267   :  { %v3395_v44 = vpop.f32.mrb[100].mxu0 }
0x1268   :  { %v3396_v52 = vadd.f32 %v3395_v44, %v3348_v50  ;;  %v4627_v54 = vpop.f32.mrb[101].mxu0  ;;  %v3445_v56 = vpop.f32.mrb[88].mxu1 }
0x1269   :  { %v3398_v39 = vpop.f32.mrb[102].mxu0  ;;  %v4633_v62 = vpop.f32.mrb[89].mxu1 }
0x126a   :  { %v3452_v57 = vadd.f32 %v3445_v56, %v3396_v52  ;;  %v3399_v27 = vadd.f32 %v3398_v39, %v3351_v30  ;;  %v4628_v20 = vpop.f32.mrb[103].mxu0  ;;  %v3448_v53 = vpop.f32.mrb[90].mxu1  ;;  %v4086_v62 = vld [vmem:[%s6022_s26 + $0xc] ss:$0 sm:$0xff] }
0x126b   :  { %v4634_v59 = vpop.f32.mrb[91].mxu1 }
0x126c   :  { %v3453_v60 = vadd.f32 %v3448_v53, %v3399_v27 }
0x126f   :  { %v3497_v36 = vpop.f32.mrb[104].mxu0 }
0x1270   :  { %v3504_v18 = vadd.f32 %v3497_v36, %v3452_v57  ;;  %v4639_v63 = vpop.f32.mrb[105].mxu0 }
0x1271   :  { %v3500_v0 = vpop.f32.mrb[106].mxu0 }
0x1272   :  { %v3505_v2 = vadd.f32 %v3500_v0, %v3453_v60  ;;  %v4640_v58 = vpop.f32.mrb[107].mxu0  ;;  %v3510_v5 = vadd.f32 %v4079_v61, %v3504_v18 }
0x1274   :  { %v3514_v51 = vsel %vm129_vm1, %v3510_v5, 0.0  ;;  %v3511_v55 = vadd.f32 %v4079_v61, %v3505_v2 }
0x1275   :  { %3515 = vadd.xlane.f32.xlu0 %v3514_v51 }
0x1276   :  { %v3517_v37 = vsel %vm129_vm1, %v3511_v55, 0.0 }
0x1277   :  { %3518 = vadd.xlane.f32.xlu1 %v3517_v37 }
0x1302   :  { %v3516_v6 = vpop.xlane.xlu0 %3515 }
0x1303   :  { %v3520_v7 = vmul.f32 0.03125, %v3516_v6 }
0x1304   :  { %v3519_v8 = vpop.xlane.xlu1 %3518 }
0x1305   :  { %v3522_v9 = vsub.f32 %v3510_v5, %v3520_v7  ;;  %v3521_v10 = vmul.f32 0.03125, %v3519_v8  ;;  %v4748_v8 = vld [vmem:[%s6020_s24 + $0x8] sm:$0xff]  }
0x1307   :  { %v3523_v11 = vsub.f32 %v3511_v55, %v3521_v10  ;;  %v3524_v14 = vmul.f32 %v3522_v9, %v3522_v9 }
0x1309   :  { %v3526_v15 = vsel %vm129_vm1, %v3524_v14, 0.0  ;;  %v3525_v16 = vmul.f32 %v3523_v11, %v3523_v11 }
0x130a   :  { %3527 = vadd.xlane.f32.xlu0 %v3526_v15 }
0x130b   :  { %v3529_v3 = vsel %vm129_vm1, %v3525_v16, 0.0 }
0x130e   :  { %3530 = vadd.xlane.f32.xlu0 %v3529_v3 }
0x1397   :  { %v3528_v23 = vpop.xlane.xlu0 %3527 }
0x1398   :  { %v3532_v24 = vmul.f32 0.03125, %v3528_v23 }
0x139a   :  { %v3534_v25 = vadd.f32 1e-05, %v3532_v24 }
0x139b   :  { %v3531_v41 = vpop.xlane.xlu0 %3530 }
0x139c   :  { %4857 = vrsqrt.f32 %v3534_v25  ;;  %v3533_v42 = vmul.f32 0.03125, %v3531_v41 }
0x139e   :  { %v3535_v19 = vadd.f32 1e-05, %v3533_v42 }
0x13a0   :  { %4859 = vrsqrt.f32 %v3535_v19  ;;  %v4094_v19 = vld [vmem:[%s6021_s25] ss:$0 sm:$0xff] }
0x13a6   :  { %v4858_v26 = vpop.eup %4857 }
0x13a7   :  { %v3538_v29 = vmul.f32 %v4858_v26, %v3522_v9 }
0x13a9   :  { %v3544_v33 = vmul.f32 %v4080_v31, %v3538_v29 }
0x13aa   :  { %v4860_v32 = vpop.eup %4859 }
0x13ab   :  { %v3539_v34 = vmul.f32 %v4860_v32, %v3523_v11  ;;  %v3550_v40 = vadd.f32 %v4081_v35, %v3544_v33 }
0x13ad   :  { %v3545_v38 = vmul.f32 %v4080_v31, %v3539_v34 }
0x13af   :  { %v3551_v46 = vadd.f32 %v4081_v35, %v3545_v38 }
0x13b1   :  { %v3554_v43 = vpack.c.bf16 %v3551_v46, %v3550_v40 }
0x13b3   :  { %4646 = vmatmul.mubr.msk.bf16.vlgmr.msra.gmra.mrb[92].mxu1 %vm129_vm1, %v3554_v43 }
0x13b4   :  { %4665 = vmatprep.mubr.msk.bf16.mxu1 %vm4890_vm0, %v4889_v1 }
0x1486   :  { %v3612_v50 = vpop.f32.mrb[92].mxu1 }
0x1487   :  { %v3613_v45 = vadd.f32 %v4082_v49, %v3612_v50  ;;  %v4647_v30 = vpop.f32.mrb[93].mxu1 }
0x1488   :  { %v3615_v28 = vpop.f32.mrb[94].mxu1 }
0x1489   :  { %v3616_v44 = vadd.f32 %v4082_v49, %v3615_v28  ;;  %v4648_v52 = vpop.f32.mrb[95].mxu1  ;;  %v3619_v54 = vmax.f32 %v3613_v45, 0.0 }
0x148b   :  { %v3620_v56 = vmax.f32 %v3616_v44, 0.0 }
0x148d   :  { %v3621_v39 = vpack.c.bf16 %v3620_v56, %v3619_v54 }
0x148f   :  { %4658 = vmatmul.mubr.msk.bf16.vlgmr.msra.gmra.mrb[108].mxu0 %vm748_vm3, %v3621_v39 }
0x1562   :  { %v3695_v57 = vpop.f32.mrb[108].mxu0 }
0x1563   :  { %v3696_v27 = vadd.f32 %v4086_v62, %v3695_v57  ;;  %v4659_v20 = vpop.f32.mrb[109].mxu0 }
0x1564   :  { %v3698_v53 = vpop.f32.mrb[110].mxu0 }
0x1565   :  { %v3699_v59 = vadd.f32 %v4086_v62, %v3698_v53  ;;  %v4660_v60 = vpop.f32.mrb[111].mxu0  ;;  %v3702_v36 = vadd.f32 %v3696_v27, %v5718_v12 }
0x1567   :  { %v3706_v61 = vsel %vm129_vm1, %v3702_v36, 0.0  ;;  %v3703_v18 = vadd.f32 %v3699_v59, %v5720_v13  ;;  %v4747_v13 = vld [vmem:[%s6020_s24] sm:$0xff]  }
0x1568   :  { %3707 = vadd.xlane.f32.xlu0 %v3706_v61  ;;  %4662 = vmatpush3.bf16.msra.mxu1 %v4747_v13 }
0x1569   :  { %v3709_v63 = vsel %vm129_vm1, %v3703_v18, 0.0  ;;  %4663 = vmatprep.subr.bf16.mxu1 %v4889_v1  ;;  %v4093_v1 = vld [vmem:[%s6022_s26 + $0xe] ss:$0 sm:$0xff]  ;;  %s4865_s26 = scalar_lea.vmem %s3820_s30, 256 }
0x156a   :  { %3710 = vadd.xlane.f32.xlu1 %v3709_v63  ;;  %p4866_p0 = scmp.ne.s32.totalorder %s3820_s30, %s4865_s26  ;;  %p4871_p2 = scmp.lt.s32.totalorder %s4865_s26, %s4865_s26 }
0x156c   :  { %4664 = vmatpush3.bf16.msra.mxu1 %v4748_v8  ;;  %p4872_p3 = por %p4871_p2, %p4870_p1 }
0x156e   :  { %p4873_p4 = pnand %p4872_p3, %p4866_p0 }
0x15f5   :  { %v3708_v0 = vpop.xlane.xlu0 %3707 }
0x15f6   :  { %v3712_v2 = vmul.f32 0.03125, %v3708_v0 }
0x15f7   :  { %v3711_v58 = vpop.xlane.xlu1 %3710 }
0x15f8   :  { %v3714_v5 = vsub.f32 %v3702_v36, %v3712_v2  ;;  %v3713_v51 = vmul.f32 0.03125, %v3711_v58 }
0x15fa   :  { %v3715_v55 = vsub.f32 %v3703_v18, %v3713_v51  ;;  %v3716_v37 = vmul.f32 %v3714_v5, %v3714_v5 }
0x15fc   :  { %v3718_v6 = vsel %vm129_vm1, %v3716_v37, 0.0  ;;  %v3717_v7 = vmul.f32 %v3715_v55, %v3715_v55 }
0x15fd   :  { %3719 = vadd.xlane.f32.xlu0 %v3718_v6 }
0x15fe   :  { %v3721_v12 = vsel %vm129_vm1, %v3717_v7, 0.0 }
0x15ff   :  { %3722 = vadd.xlane.f32.xlu1 %v3721_v12 }
0x168a   :  { %v3720_v9 = vpop.xlane.xlu0 %3719 }
0x168b   :  { %v3724_v10 = vmul.f32 0.03125, %v3720_v9 }
0x168c   :  { %v3723_v11 = vpop.xlane.xlu1 %3722 }
0x168d   :  { %v3726_v14 = vadd.f32 1e-05, %v3724_v10  ;;  %v3725_v15 = vmul.f32 0.03125, %v3723_v11 }
0x168f   :  { %4861 = vrsqrt.f32 %v3726_v14  ;;  %v3727_v16 = vadd.f32 1e-05, %v3725_v15 }
0x1691   :  { %4863 = vrsqrt.f32 %v3727_v16 }
0x1699   :  { %v4862_v3 = vpop.eup %4861 }
0x169a   :  { %v3730_v17 = vmul.f32 %v4862_v3, %v3714_v5 }
0x169b   :  { %v4864_v21 = vpop.eup %4863 }
0x169c   :  { %v3736_v22 = vmul.f32 %v4092_v4, %v3730_v17  ;;  %v3731_v23 = vmul.f32 %v4864_v21, %v3715_v55 }
0x169e   :  { %v3737_v24 = vmul.f32 %v4092_v4, %v3731_v23  ;;  %v3742_v25 = vadd.f32 %v4093_v1, %v3736_v22 }
0x16a0   :  { %v3743_v41 = vadd.f32 %v4093_v1, %v3737_v24 }
0x16a2   :  { %v3744_v42 = vpack.c.bf16 %v3743_v41, %v3742_v25 }
0x16a4   :  { %4666 = vmatmul.mubr.msk.bf16.vlgmr.msra.gmra.mrb[96].mxu1 %vm129_vm1, %v3744_v42 }
0x1777   :  { %v3805_v26 = vpop.f32.mrb[96].mxu1 }
0x1778   :  { %v3806_v29 = vadd.f32 %v4094_v19, %v3805_v26  ;;  %v4667_v31 = vpop.f32.mrb[97].mxu1 }
0x1779   :  { %v3808_v32 = vpop.f32.mrb[98].mxu1 }
0x177a   :  { %3812 = vst [vmem:[#allocation2] sm:$0xff] %v3806_v29  ;;  %v3809_v33 = vadd.f32 %v4094_v19, %v3808_v32  ;;  %v4668_v34 = vpop.f32.mrb[99].mxu1 }
0x177c   :  { %3813 = vst [vmem:[#allocation2 + $0x8] sm:$0xff] %v3809_v33 }
0x177d   :  { %4876 = shalt.err (!%p4873_p4)
}
0x177e   :  { %s4877_s17 = scalar_lea.hbm %s6024_s28, 256 }
0x177f   :  { %p4878_p5 = scmp.ne.s32.totalorder %s6024_s28, %s4877_s17  ;;  %p4881_p6 = scmp.lt.u32.totalorder %s4877_s17, %s6024_s28 }
0x1781   :  { %p4883_p7 = pnand %p4881_p6, %p4878_p5 }
0x1783   :  { %4886 = shalt.err (!%p4883_p7)
}
0x1784   :  { %s4893_s11 = smov 128   ;;  %s4894_s13 = smov 8  }
0x1785   :  { %3825 = dma.vmem_to_hbm [thread:$0]  %s3820_s30, 256, %s6024_s28, [#allocation3], %s4893_s11, %s4893_s11, %s4894_s13  }
0x1786   :  { %4887 = dma.done.wait [#allocation3], 256  }
0x1787   :  { %4888 = vsyncadd [#allocation3], 4294967040 }
0x1788   :  { %3829 = vsyncpa [#allocation3], 1 }

</bundles_post_ra>
